<compile_context>
chip_gen: v5e
topology: v5e:2x2
jax: 0.10.0
libtpu: 0.0.40
codegen_flags: <defaults>
</compile_context>

<pallas_src>
import jax
import jax.numpy as jnp
import numpy as np
from jax import lax
from jax.experimental import pallas as pl
from jax.experimental.pallas import tpu as pltpu


# --------------------------------------------------------------------------- #
# helpers
# --------------------------------------------------------------------------- #
def _round_up(x, m):
    return (x + m - 1) // m * m


def _cdiv(a, b):
    return (a + b - 1) // b


def _vmem_budget_bytes():
    """Generation-aware VMEM budget: ~3/4 of the reported capacity, capped at
    100 MiB (v5e/v6e: 128 MiB -> ~96 MiB; v7x: 64 MiB per TC -> 48 MiB)."""
    cap = 64 * 1024 * 1024
    try:
        cap = int(pltpu.get_tpu_info().vmem_capacity_bytes)
    except Exception:
        pass
    return min(cap * 3 // 4, 100 * 1024 * 1024)


def _vmem_limit(need, budget):
    """Never clamp the scoped VMEM limit below the computed need."""
    lim = min(max(int(need * 5 // 4), 32 * 1024 * 1024), budget)
    return int(max(lim, need * 9 // 8))


# --------------------------------------------------------------------------- #
# one-time parameter folding (model-load time, not per forward call)
# --------------------------------------------------------------------------- #
def fold_conv_bn(weight, gamma, beta, running_mean, running_var, *,
                 stride=1, padding=0, eps=1e-5, cin_padded=None,
                 act_dtype=jnp.bfloat16):
    """Fold BatchNorm2d(eval) into the conv weight once.

    Returns a dict with
      w:    (kh*kw, Cinp, Coutp) act_dtype, BN scale folded in, Cin/Cout padded
      bias: (1, Coutp) f32 folded BN bias (zero in padded output channels)
    plus static layer metadata.  `cin_padded` lets a layer consume the
    zero-padded (lane-dense) channels of the previous layer directly.
    """
    Cout, Cin, kh, kw = weight.shape
    scale = gamma / jnp.sqrt(running_var + eps)                   # (Cout,)
    bias = beta - running_mean * scale                            # (Cout,)
    w = jnp.transpose(weight, (2, 3, 1, 0)).reshape(kh * kw, Cin, Cout)
    w = w.astype(jnp.float32) * scale[None, None, :]

    Coutp = _round_up(max(Cout, 128), 128)                        # lane-dense out
    Cinp = Cin if cin_padded is None else int(cin_padded)
    assert Cinp >= Cin, "cin_padded must be >= actual in_channels"
    w = jnp.pad(w, ((0, 0), (0, Cinp - Cin), (0, Coutp - Cout)))
    bias = jnp.pad(bias, (0, Coutp - Cout))                       # zero pad (load-bearing)
    return dict(
        w=w.astype(act_dtype),
        bias=bias.reshape(1, Coutp).astype(jnp.float32),
        kh=int(kh), kw=int(kw), stride=int(stride), padding=int(padding),
        cin=int(Cin), cinp=int(Cinp), cout=int(Cout), coutp=int(Coutp),
    )


# --------------------------------------------------------------------------- #
# 1x1 path: streamed matmul + bias + relu
# --------------------------------------------------------------------------- #
def _matmul_bias_relu_kernel(p_ref, w_ref, b_ref, o_ref):
    # p_ref: (tm, K) act tile     w_ref: (K, Coutp) resident
    # b_ref: (1, Coutp) resident  o_ref: (tm, Coutp) lane-dense output tile
    acc = jnp.dot(p_ref[...], w_ref[...], preferred_element_type=jnp.float32)
    o_ref[...] = jnp.maximum(acc + b_ref[...], 0.0).astype(o_ref.dtype)


def _vmem_bytes_1x1(tm, K, Coutp, out_isize, nbuf):
    # nbuf-buffered act tile + resident weight/bias (constant index maps ->
    # counted once) + double-buffered output tile.
    return (nbuf * tm * K * 2) + (K * Coutp * 2) + (Coutp * 4) \
        + (2 * tm * Coutp * out_isize)


def _pick_tm(M, K, Coutp, tm_max, out_isize, budget):
    if M <= 128:
        return M                              # single (full-extent) block
    # >= 4 grid steps: software pipelining + 2 steps per TC on v7x megacore.
    tm = min(max(64, (tm_max // 8) * 8), _round_up(_cdiv(M, 4), 8))
    tm = max(tm, 64)
    while tm > 64 and _vmem_bytes_1x1(tm, K, Coutp, out_isize, 2) > budget:
        tm = max(64, (tm // 2 // 8) * 8)
    return tm


def _conv_1x1(x, fold, out_dtype, budget, tm_max):
    s = fold['stride']
    if s > 1:
        x = x[:, ::s, ::s, :]
    N, Ho, Wo, K = x.shape
    Coutp = fold['coutp']
    M = N * Ho * Wo
    patches = x.reshape(M, K)
    w2d = fold['w'].reshape(K, Coutp)
    out_isize = jnp.dtype(out_dtype).itemsize

    tm = _pick_tm(M, K, Coutp, tm_max, out_isize, budget)
    n_steps = _cdiv(M, tm)
    nbuf = 3 if (n_steps >= 3 and
                 _vmem_bytes_1x1(tm, K, Coutp, out_isize, 3) <= budget) else 2
    need = _vmem_bytes_1x1(tm, K, Coutp, out_isize, nbuf)
    vlim = _vmem_limit(need, budget)

    def _call(patch_spec):
        return pl.pallas_call(
            _matmul_bias_relu_kernel,
            out_shape=jax.ShapeDtypeStruct((M, Coutp), out_dtype),
            grid_spec=pltpu.PrefetchScalarGridSpec(
                num_scalar_prefetch=0,
                grid=(n_steps,),
                in_specs=[
                    patch_spec,                                    # streamed acts
                    pl.BlockSpec((K, Coutp), lambda i: (0, 0)),    # resident weight
                    pl.BlockSpec((1, Coutp), lambda i: (0, 0)),    # resident bias
                ],
                out_specs=pl.BlockSpec((tm, Coutp), lambda i: (i, 0)),
            ),
            compiler_params=pltpu.CompilerParams(
                dimension_semantics=("parallel",),
                vmem_limit_bytes=vlim),
        )(patches, w2d, fold['bias'])

    plain_spec = pl.BlockSpec((tm, K), lambda i: (i, 0))
    out = None
    if nbuf >= 3:
        try:  # deeper patch pipelining when headroom allows; fall back safely
            buf_spec = pl.BlockSpec((tm, K), lambda i: (i, 0),
                                    pipeline_mode=pl.Buffered(3))
            out = _call(buf_spec)
        except Exception:
            out = None
    if out is None:
        out = _call(plain_spec)
    return out.reshape(N, Ho, Wo, Coutp)


# --------------------------------------------------------------------------- #
# kxk path: in-kernel "im2col" (per-tap accumulation over a resident input)
# --------------------------------------------------------------------------- #
def _make_conv_kxk_kernel(kh, kw, stride, th, wo, coutp):
    def kernel(x_ref, w_ref, b_ref, o_ref):
        # x_ref: (s, Hpad, Wph, Cinp) resident, W-phase-split padded input
        # w_ref: (kh*kw, Cinp, Coutp) resident scale-folded weights
        # b_ref: (1, Coutp) resident folded BN bias (f32)
        # o_ref: (1, th, Wo, Coutp) lane-dense output tile
        t = pl.program_id(1)
        bias = b_ref[...]
        for r in range(th):                       # static unroll over tile rows
            h0 = (t * th + r) * stride            # first input row of this output row
            acc = jnp.zeros((wo, coutp), jnp.float32)
            for i in range(kh):
                for j in range(kw):
                    row = x_ref[j % stride, h0 + i, pl.ds(j // stride, wo), :]
                    acc = acc + jnp.dot(row, w_ref[i * kw + j],
                                        preferred_element_type=jnp.float32)
            o_ref[0, r] = jnp.maximum(acc + bias, 0.0).astype(o_ref.dtype)
    return kernel


def _build_phase_input(x, kh, kw, stride, padding, Ho, Wo, n_h_tiles, th):
    """Pad spatially once and split the W axis by stride phase so every
    in-kernel tap read is a contiguous (Wo, Cin) slice.  Rows are padded so the
    partial last row-tile never reads out of bounds."""
    N, H, W, C = x.shape
    s = stride
    Hp_need = (n_h_tiles * th - 1) * s + kh
    Wph_need = (kw - 1) // s + Wo
    xp = jnp.pad(x, ((0, 0), (padding, padding), (padding, padding), (0, 0)))
    Hp = H + 2 * padding
    if Hp < Hp_need:
        xp = jnp.pad(xp, ((0, 0), (0, Hp_need - Hp), (0, 0), (0, 0)))
    xp = xp[:, :Hp_need]
    phases = []
    for p in range(s):
        ph = xp[:, :, p::s, :]
        wph = ph.shape[2]
        if wph < Wph_need:
            ph = jnp.pad(ph, ((0, 0), (0, 0), (0, Wph_need - wph), (0, 0)))
        else:
            ph = ph[:, :, :Wph_need, :]
        phases.append(ph)
    xph = jnp.stack(phases, axis=1).reshape(N * s, Hp_need, Wph_need, C)
    return xph


def _conv_kxk(x, fold, out_dtype, budget):
    N, H, W, Cinp = x.shape
    kh, kw, s, pad = fold['kh'], fold['kw'], fold['stride'], fold['padding']
    Coutp = fold['coutp']
    taps = kh * kw
    Ho = (H + 2 * pad - kh) // s + 1
    Wo = (W + 2 * pad - kw) // s + 1
    th = max(1, min(8 if taps <= 9 else 2, Ho))     # keep trace size bounded
    n_h_tiles = _cdiv(Ho, th)

    xph = _build_phase_input(x, kh, kw, s, pad, Ho, Wo, n_h_tiles, th)
    Hp, Wph = xph.shape[1], xph.shape[2]
    out_isize = jnp.dtype(out_dtype).itemsize

    need = (2 * s * Hp * Wph * Cinp * 2              # phase input (2 bufs across n)
            + 2 * taps * Cinp * Coutp * 2            # weights (conservative)
            + 2 * Coutp * 4
            + 2 * th * Wo * Coutp * out_isize)       # output tiles
    vlim = _vmem_limit(need, budget)

    kernel = _make_conv_kxk_kernel(kh, kw, s, th, Wo, Coutp)
    out = pl.pallas_call(
        kernel,
        out_shape=jax.ShapeDtypeStruct((N, Ho, Wo, Coutp), out_dtype),
        grid_spec=pltpu.PrefetchScalarGridSpec(
            num_scalar_prefetch=0,
            grid=(N, n_h_tiles),
            in_specs=[
                pl.BlockSpec((s, Hp, Wph, Cinp), lambda n, t: (n, 0, 0, 0)),
                pl.BlockSpec((taps, Cinp, Coutp), lambda n, t: (0, 0, 0)),
                pl.BlockSpec((1, Coutp), lambda n, t: (0, 0)),
            ],
            out_specs=pl.BlockSpec((1, th, Wo, Coutp), lambda n, t: (n, t, 0, 0)),
        ),
        compiler_params=pltpu.CompilerParams(
            dimension_semantics=("parallel", "parallel"),
            vmem_limit_bytes=vlim),
    )(xph, fold['w'], fold['bias'])
    return out


# --------------------------------------------------------------------------- #
# public forwards
# --------------------------------------------------------------------------- #
def conv_bn_relu_nhwc(x, fold, *, out_dtype=jnp.bfloat16, trim=False, tm=1024):
    """Fused conv2d(bias=False, groups=1) + BatchNorm2d(eval) + ReLU, NHWC.

    `fold` comes from fold_conv_bn (folded once at model load).  The output
    keeps the lane-dense 128-padded channels unless trim=True — feed it
    straight into the next folded layer (built with cin_padded=fold['coutp'])
    and trim once at the end of the chain."""
    budget = _vmem_budget_bytes()
    act_dtype = fold['w'].dtype
    x = x.astype(act_dtype)
    cinp = fold['cinp']
    c = x.shape[-1]
    assert c <= cinp, "input channels exceed folded weight's (padded) Cin"
    if c < cinp:
        x = jnp.pad(x, ((0, 0), (0, 0), (0, 0), (0, cinp - c)))

    if fold['kh'] == 1 and fold['kw'] == 1 and fold['padding'] == 0:
        out = _conv_1x1(x, fold, out_dtype, budget, tm)
    else:
        out = _conv_kxk(x, fold, out_dtype, budget)

    if trim:
        out = out[..., :fold['cout']]
    return out


def conv_layer_forward(x_nchw, weight, gamma, beta, running_mean, running_var, *,
                       stride=1, padding=0, eps=1e-5):
    """PyTorch ConvLayer / Conv1x1 forward semantics (NCHW in / NCHW out).
    Single-layer convenience wrapper (folds per call); for layer chains fold
    once with fold_conv_bn and stay in NHWC via conv_bn_relu_nhwc."""
    fold = fold_conv_bn(weight, gamma, beta, running_mean, running_var,
                        stride=stride, padding=padding, eps=eps)
    x = jnp.transpose(x_nchw, (0, 2, 3, 1))
    y = conv_bn_relu_nhwc(x, fold, out_dtype=x_nchw.dtype, trim=True)
    return jnp.transpose(y, (0, 3, 1, 2))


# --------------------------------------------------------------------------- #
# reference + tests
# --------------------------------------------------------------------------- #
def _reference_nchw(x, weight, gamma, beta, mean, var, stride, padding, eps=1e-5):
    conv = lax.conv_general_dilated(
        x, weight, window_strides=(stride, stride),
        padding=[(padding, padding), (padding, padding)],
        dimension_numbers=("NCHW", "OIHW", "NCHW"))
    sc = (gamma / jnp.sqrt(var + eps))[None, :, None, None]
    bi = (beta - mean * gamma / jnp.sqrt(var + eps))[None, :, None, None]
    return jnp.maximum(conv * sc + bi, 0.0)


if __name__ == "__main__":
    key = jax.random.PRNGKey(0)
    ks = jax.random.split(key, 8)

    def make_params(k, cin, cout, ksize):
        kw_, kg, kb, km, kv = jax.random.split(k, 5)
        w = jax.random.normal(kw_, (cout, cin, ksize, ksize), jnp.float32) * 0.1
        gamma = 1.0 + 0.1 * jax.random.normal(kg, (cout,), jnp.float32)
        beta = 0.1 * jax.random.normal(kb, (cout,), jnp.float32)
        mean = 0.1 * jax.random.normal(km, (cout,), jnp.float32)
        var = jnp.abs(1.0 + 0.1 * jax.random.normal(kv, (cout,), jnp.float32))
        return w, gamma, beta, mean, var

    # --- Test 1: ConvLayer(4, 8, 3, s1, p1) on (2, 4, 16, 16), in-kernel im2col
    x1 = jax.random.normal(ks[0], (2, 4, 16, 16), jnp.float32)
    p1 = make_params(ks[1], 4, 8, 3)
    out1 = jax.block_until_ready(conv_layer_forward(x1, *p1, stride=1, padding=1))
    ref1 = _reference_nchw(x1, *p1, 1, 1)
    np.testing.assert_allclose(np.asarray(out1), np.asarray(ref1),
                               rtol=2e-2, atol=3e-2)

    # --- Test 2: partial last row-tile (Ho=18 with th=8) ---
    x2 = jax.random.normal(ks[2], (2, 4, 18, 18), jnp.float32)
    out2 = jax.block_until_ready(conv_layer_forward(x2, *p1, stride=1, padding=1))
    ref2 = _reference_nchw(x2, *p1, 1, 1)
    np.testing.assert_allclose(np.asarray(out2), np.asarray(ref2),
                               rtol=2e-2, atol=3e-2)

    # --- Test 3: OSNet stem chain, bf16 NHWC end-to-end with padded-channel
    #     feed-through: ConvLayer(3, 8, 7, s2, p3) -> Conv1x1(8, 16) ---
    x3 = jax.random.normal(ks[3], (2, 3, 16, 16), jnp.float32)
    pa = make_params(ks[4], 3, 8, 7)
    pb = make_params(ks[5], 8, 16, 1)
    fa = fold_conv_bn(pa[0], *pa[1:], stride=2, padding=3)
    fb = fold_conv_bn(pb[0], *pb[1:], stride=1, padding=0, cin_padded=fa['coutp'])
    x3_nhwc = jnp.transpose(x3, (0, 2, 3, 1))
    y = conv_bn_relu_nhwc(x3_nhwc, fa, out_dtype=jnp.bfloat16)      # padded Cout fed through
    y = conv_bn_relu_nhwc(y, fb, out_dtype=jnp.float32, trim=True)  # trim once at chain end
    out3 = jax.block_until_ready(jnp.transpose(y, (0, 3, 1, 2)))
    ref3 = _reference_nchw(_reference_nchw(x3, *pa, 2, 3), *pb, 1, 0)
    np.testing.assert_allclose(np.asarray(out3), np.asarray(ref3),
                               rtol=3e-2, atol=5e-2)

    # --- Test 4: standalone Conv1x1(32, 64) NHWC with a multi-step 1-D grid ---
    x4 = jax.random.normal(ks[6], (2, 24, 24, 32), jnp.float32)
    p4 = make_params(ks[7], 32, 64, 1)
    f4 = fold_conv_bn(p4[0], *p4[1:], stride=1, padding=0)
    y4 = jax.block_until_ready(
        conv_bn_relu_nhwc(x4, f4, out_dtype=jnp.bfloat16, trim=True))
    ref4 = _reference_nchw(jnp.transpose(x4, (0, 3, 1, 2)), *p4, 1, 0)
    np.testing.assert_allclose(np.asarray(jnp.transpose(y4, (0, 3, 1, 2))),
                               np.asarray(ref4), rtol=2e-2, atol=3e-2)

    print("KERNEL_OK")
</pallas_src>

<mosaic_0001>
module attributes {stable_mosaic.version = 11 : i64} {
  func.func @kernel(%arg0: i32, %arg1: i32, %arg2: memref<1x18x18x4xbf16, #tpu.memory_space<vmem>>, %arg3: memref<9x4x128xbf16, #tpu.memory_space<vmem>>, %arg4: memref<1x128xf32, #tpu.memory_space<vmem>>, %arg5: memref<1x8x16x128xf32, #tpu.memory_space<vmem>>) attributes {dimension_semantics = [#tpu.dimension_semantics<parallel>, #tpu.dimension_semantics<parallel>], iteration_bounds = array<i64: 2, 2>, scalar_prefetch = 0 : i64, scratch_operands = 0 : i64, tpu.core_type = #tpu.core_type<tc>, window_params = [{transform_indices = @transform_0, window_bounds = array<i64: 1, 18, 18, 4>}, {pipeline_mode = #tpu.pipeline_mode<synchronous>, transform_indices = @transform_1, window_bounds = array<i64: 9, 4, 128>}, {pipeline_mode = #tpu.pipeline_mode<synchronous>, transform_indices = @transform_2, window_bounds = array<i64: 1, 128>}, {transform_indices = @transform_3, window_bounds = array<i64: 1, 8, 16, 128>}]} {
    %c0 = arith.constant 0 : index
    %c0_0 = arith.constant 0 : index
    %0 = vector.load %arg4[%c0, %c0_0] : memref<1x128xf32, #tpu.memory_space<vmem>>, vector<1x128xf32>
    %c8_i32 = arith.constant 8 : i32
    %1 = arith.muli %arg1, %c8_i32 : i32
    %c0_i32 = arith.constant 0 : i32
    %2 = arith.addi %1, %c0_i32 : i32
    %c1_i32 = arith.constant 1 : i32
    %3 = arith.muli %2, %c1_i32 : i32
    %cst = arith.constant 0.000000e+00 : f32
    %4 = vector.broadcast %cst : f32 to vector<16x128xf32>
    %c0_i32_1 = arith.constant 0 : i32
    %5 = arith.addi %3, %c0_i32_1 : i32
    %c0_2 = arith.constant 0 : index
    %6 = arith.index_cast %5 : i32 to index
    %c0_3 = arith.constant 0 : index
    %c0_4 = arith.constant 0 : index
    %7 = vector.load %arg2[%c0_2, %6, %c0_3, %c0_4] : memref<1x18x18x4xbf16, #tpu.memory_space<vmem>>, vector<1x1x16x4xbf16>
    %8 = vector.shape_cast %7 : vector<1x1x16x4xbf16> to vector<16x4xbf16>
    %c0_5 = arith.constant 0 : index
    %c0_6 = arith.constant 0 : index
    %c0_7 = arith.constant 0 : index
    %9 = vector.load %arg3[%c0_5, %c0_6, %c0_7] : memref<9x4x128xbf16, #tpu.memory_space<vmem>>, vector<1x4x128xbf16>
    %10 = vector.shape_cast %9 : vector<1x4x128xbf16> to vector<4x128xbf16>
    %cst_8 = arith.constant dense<0.000000e+00> : vector<16x128xf32>
    %11 = tpu.matmul %8, %10, %cst_8 {dimension_numbers = #tpu.dot_dimension_numbers<[1], [0], [0], [1], [0, 0, 1, 1], [], []>} : vector<16x4xbf16>, vector<4x128xbf16>, vector<16x128xf32> -> vector<16x128xf32>
    %12 = arith.addf %4, %11 : vector<16x128xf32>
    %c0_i32_9 = arith.constant 0 : i32
    %13 = arith.addi %3, %c0_i32_9 : i32
    %c0_10 = arith.constant 0 : index
    %14 = arith.index_cast %13 : i32 to index
    %c1 = arith.constant 1 : index
    %c0_11 = arith.constant 0 : index
    %15 = vector.load %arg2[%c0_10, %14, %c1, %c0_11] : memref<1x18x18x4xbf16, #tpu.memory_space<vmem>>, vector<1x1x16x4xbf16>
    %16 = vector.shape_cast %15 : vector<1x1x16x4xbf16> to vector<16x4xbf16>
    %c1_12 = arith.constant 1 : index
    %c0_13 = arith.constant 0 : index
    %c0_14 = arith.constant 0 : index
    %17 = vector.load %arg3[%c1_12, %c0_13, %c0_14] : memref<9x4x128xbf16, #tpu.memory_space<vmem>>, vector<1x4x128xbf16>
    %18 = vector.shape_cast %17 : vector<1x4x128xbf16> to vector<4x128xbf16>
    %cst_15 = arith.constant dense<0.000000e+00> : vector<16x128xf32>
    %19 = tpu.matmul %16, %18, %cst_15 {dimension_numbers = #tpu.dot_dimension_numbers<[1], [0], [0], [1], [0, 0, 1, 1], [], []>} : vector<16x4xbf16>, vector<4x128xbf16>, vector<16x128xf32> -> vector<16x128xf32>
    %20 = arith.addf %12, %19 : vector<16x128xf32>
    %c0_i32_16 = arith.constant 0 : i32
    %21 = arith.addi %3, %c0_i32_16 : i32
    %c0_17 = arith.constant 0 : index
    %22 = arith.index_cast %21 : i32 to index
    %c2 = arith.constant 2 : index
    %c0_18 = arith.constant 0 : index
    %23 = vector.load %arg2[%c0_17, %22, %c2, %c0_18] : memref<1x18x18x4xbf16, #tpu.memory_space<vmem>>, vector<1x1x16x4xbf16>
    %24 = vector.shape_cast %23 : vector<1x1x16x4xbf16> to vector<16x4xbf16>
    %c2_19 = arith.constant 2 : index
    %c0_20 = arith.constant 0 : index
    %c0_21 = arith.constant 0 : index
    %25 = vector.load %arg3[%c2_19, %c0_20, %c0_21] : memref<9x4x128xbf16, #tpu.memory_space<vmem>>, vector<1x4x128xbf16>
    %26 = vector.shape_cast %25 : vector<1x4x128xbf16> to vector<4x128xbf16>
    %cst_22 = arith.constant dense<0.000000e+00> : vector<16x128xf32>
    %27 = tpu.matmul %24, %26, %cst_22 {dimension_numbers = #tpu.dot_dimension_numbers<[1], [0], [0], [1], [0, 0, 1, 1], [], []>} : vector<16x4xbf16>, vector<4x128xbf16>, vector<16x128xf32> -> vector<16x128xf32>
    %28 = arith.addf %20, %27 : vector<16x128xf32>
    %c1_i32_23 = arith.constant 1 : i32
    %29 = arith.addi %3, %c1_i32_23 : i32
    %c0_24 = arith.constant 0 : index
    %30 = arith.index_cast %29 : i32 to index
    %c0_25 = arith.constant 0 : index
    %c0_26 = arith.constant 0 : index
    %31 = vector.load %arg2[%c0_24, %30, %c0_25, %c0_26] : memref<1x18x18x4xbf16, #tpu.memory_space<vmem>>, vector<1x1x16x4xbf16>
    %32 = vector.shape_cast %31 : vector<1x1x16x4xbf16> to vector<16x4xbf16>
    %c3 = arith.constant 3 : index
    %c0_27 = arith.constant 0 : index
    %c0_28 = arith.constant 0 : index
    %33 = vector.load %arg3[%c3, %c0_27, %c0_28] : memref<9x4x128xbf16, #tpu.memory_space<vmem>>, vector<1x4x128xbf16>
    %34 = vector.shape_cast %33 : vector<1x4x128xbf16> to vector<4x128xbf16>
    %cst_29 = arith.constant dense<0.000000e+00> : vector<16x128xf32>
    %35 = tpu.matmul %32, %34, %cst_29 {dimension_numbers = #tpu.dot_dimension_numbers<[1], [0], [0], [1], [0, 0, 1, 1], [], []>} : vector<16x4xbf16>, vector<4x128xbf16>, vector<16x128xf32> -> vector<16x128xf32>
    %36 = arith.addf %28, %35 : vector<16x128xf32>
    %c1_i32_30 = arith.constant 1 : i32
    %37 = arith.addi %3, %c1_i32_30 : i32
    %c0_31 = arith.constant 0 : index
    %38 = arith.index_cast %37 : i32 to index
    %c1_32 = arith.constant 1 : index
    %c0_33 = arith.constant 0 : index
    %39 = vector.load %arg2[%c0_31, %38, %c1_32, %c0_33] : memref<1x18x18x4xbf16, #tpu.memory_space<vmem>>, vector<1x1x16x4xbf16>
    %40 = vector.shape_cast %39 : vector<1x1x16x4xbf16> to vector<16x4xbf16>
    %c4 = arith.constant 4 : index
    %c0_34 = arith.constant 0 : index
    %c0_35 = arith.constant 0 : index
    %41 = vector.load %arg3[%c4, %c0_34, %c0_35] : memref<9x4x128xbf16, #tpu.memory_space<vmem>>, vector<1x4x128xbf16>
    %42 = vector.shape_cast %41 : vector<1x4x128xbf16> to vector<4x128xbf16>
    %cst_36 = arith.constant dense<0.000000e+00> : vector<16x128xf32>
    %43 = tpu.matmul %40, %42, %cst_36 {dimension_numbers = #tpu.dot_dimension_numbers<[1], [0], [0], [1], [0, 0, 1, 1], [], []>} : vector<16x4xbf16>, vector<4x128xbf16>, vector<16x128xf32> -> vector<16x128xf32>
    %44 = arith.addf %36, %43 : vector<16x128xf32>
    %c1_i32_37 = arith.constant 1 : i32
    %45 = arith.addi %3, %c1_i32_37 : i32
    %c0_38 = arith.constant 0 : index
    %46 = arith.index_cast %45 : i32 to index
    %c2_39 = arith.constant 2 : index
    %c0_40 = arith.constant 0 : index
    %47 = vector.load %arg2[%c0_38, %46, %c2_39, %c0_40] : memref<1x18x18x4xbf16, #tpu.memory_space<vmem>>, vector<1x1x16x4xbf16>
    %48 = vector.shape_cast %47 : vector<1x1x16x4xbf16> to vector<16x4xbf16>
    %c5 = arith.constant 5 : index
    %c0_41 = arith.constant 0 : index
    %c0_42 = arith.constant 0 : index
    %49 = vector.load %arg3[%c5, %c0_41, %c0_42] : memref<9x4x128xbf16, #tpu.memory_space<vmem>>, vector<1x4x128xbf16>
    %50 = vector.shape_cast %49 : vector<1x4x128xbf16> to vector<4x128xbf16>
    %cst_43 = arith.constant dense<0.000000e+00> : vector<16x128xf32>
    %51 = tpu.matmul %48, %50, %cst_43 {dimension_numbers = #tpu.dot_dimension_numbers<[1], [0], [0], [1], [0, 0, 1, 1], [], []>} : vector<16x4xbf16>, vector<4x128xbf16>, vector<16x128xf32> -> vector<16x128xf32>
    %52 = arith.addf %44, %51 : vector<16x128xf32>
    %c2_i32 = arith.constant 2 : i32
    %53 = arith.addi %3, %c2_i32 : i32
    %c0_44 = arith.constant 0 : index
    %54 = arith.index_cast %53 : i32 to index
    %c0_45 = arith.constant 0 : index
    %c0_46 = arith.constant 0 : index
    %55 = vector.load %arg2[%c0_44, %54, %c0_45, %c0_46] : memref<1x18x18x4xbf16, #tpu.memory_space<vmem>>, vector<1x1x16x4xbf16>
    %56 = vector.shape_cast %55 : vector<1x1x16x4xbf16> to vector<16x4xbf16>
    %c6 = arith.constant 6 : index
    %c0_47 = arith.constant 0 : index
    %c0_48 = arith.constant 0 : index
    %57 = vector.load %arg3[%c6, %c0_47, %c0_48] : memref<9x4x128xbf16, #tpu.memory_space<vmem>>, vector<1x4x128xbf16>
    %58 = vector.shape_cast %57 : vector<1x4x128xbf16> to vector<4x128xbf16>
    %cst_49 = arith.constant dense<0.000000e+00> : vector<16x128xf32>
    %59 = tpu.matmul %56, %58, %cst_49 {dimension_numbers = #tpu.dot_dimension_numbers<[1], [0], [0], [1], [0, 0, 1, 1], [], []>} : vector<16x4xbf16>, vector<4x128xbf16>, vector<16x128xf32> -> vector<16x128xf32>
    %60 = arith.addf %52, %59 : vector<16x128xf32>
    %c2_i32_50 = arith.constant 2 : i32
    %61 = arith.addi %3, %c2_i32_50 : i32
    %c0_51 = arith.constant 0 : index
    %62 = arith.index_cast %61 : i32 to index
    %c1_52 = arith.constant 1 : index
    %c0_53 = arith.constant 0 : index
    %63 = vector.load %arg2[%c0_51, %62, %c1_52, %c0_53] : memref<1x18x18x4xbf16, #tpu.memory_space<vmem>>, vector<1x1x16x4xbf16>
    %64 = vector.shape_cast %63 : vector<1x1x16x4xbf16> to vector<16x4xbf16>
    %c7 = arith.constant 7 : index
    %c0_54 = arith.constant 0 : index
    %c0_55 = arith.constant 0 : index
    %65 = vector.load %arg3[%c7, %c0_54, %c0_55] : memref<9x4x128xbf16, #tpu.memory_space<vmem>>, vector<1x4x128xbf16>
    %66 = vector.shape_cast %65 : vector<1x4x128xbf16> to vector<4x128xbf16>
    %cst_56 = arith.constant dense<0.000000e+00> : vector<16x128xf32>
    %67 = tpu.matmul %64, %66, %cst_56 {dimension_numbers = #tpu.dot_dimension_numbers<[1], [0], [0], [1], [0, 0, 1, 1], [], []>} : vector<16x4xbf16>, vector<4x128xbf16>, vector<16x128xf32> -> vector<16x128xf32>
    %68 = arith.addf %60, %67 : vector<16x128xf32>
    %c2_i32_57 = arith.constant 2 : i32
    %69 = arith.addi %3, %c2_i32_57 : i32
    %c0_58 = arith.constant 0 : index
    %70 = arith.index_cast %69 : i32 to index
    %c2_59 = arith.constant 2 : index
    %c0_60 = arith.constant 0 : index
    %71 = vector.load %arg2[%c0_58, %70, %c2_59, %c0_60] : memref<1x18x18x4xbf16, #tpu.memory_space<vmem>>, vector<1x1x16x4xbf16>
    %72 = vector.shape_cast %71 : vector<1x1x16x4xbf16> to vector<16x4xbf16>
    %c8 = arith.constant 8 : index
    %c0_61 = arith.constant 0 : index
    %c0_62 = arith.constant 0 : index
    %73 = vector.load %arg3[%c8, %c0_61, %c0_62] : memref<9x4x128xbf16, #tpu.memory_space<vmem>>, vector<1x4x128xbf16>
    %74 = vector.shape_cast %73 : vector<1x4x128xbf16> to vector<4x128xbf16>
    %cst_63 = arith.constant dense<0.000000e+00> : vector<16x128xf32>
    %75 = tpu.matmul %72, %74, %cst_63 {dimension_numbers = #tpu.dot_dimension_numbers<[1], [0], [0], [1], [0, 0, 1, 1], [], []>} : vector<16x4xbf16>, vector<4x128xbf16>, vector<16x128xf32> -> vector<16x128xf32>
    %76 = arith.addf %68, %75 : vector<16x128xf32>
    %77 = vector.broadcast %0 : vector<1x128xf32> to vector<16x128xf32>
    %78 = arith.addf %76, %77 : vector<16x128xf32>
    %cst_64 = arith.constant 0.000000e+00 : f32
    %79 = vector.broadcast %cst_64 : f32 to vector<16x128xf32>
    %80 = arith.maximumf %78, %79 : vector<16x128xf32>
    %c0_65 = arith.constant 0 : index
    %c0_66 = arith.constant 0 : index
    %c0_67 = arith.constant 0 : index
    %c0_68 = arith.constant 0 : index
    %81 = vector.load %arg5[%c0_65, %c0_66, %c0_67, %c0_68] : memref<1x8x16x128xf32, #tpu.memory_space<vmem>>, vector<1x1x16x128xf32>
    %82 = vector.shape_cast %81 : vector<1x1x16x128xf32> to vector<16x128xf32>
    %83 = vector.shape_cast %80 : vector<16x128xf32> to vector<1x1x16x128xf32>
    tpu.vector_store %arg5[%c0_65, %c0_66, %c0_67, %c0_68], %83 {strides = array<i32>} : memref<1x8x16x128xf32, #tpu.memory_space<vmem>>, vector<1x1x16x128xf32>,
    %c8_i32_69 = arith.constant 8 : i32
    %84 = arith.muli %arg1, %c8_i32_69 : i32
    %c1_i32_70 = arith.constant 1 : i32
    %85 = arith.addi %84, %c1_i32_70 : i32
    %c1_i32_71 = arith.constant 1 : i32
    %86 = arith.muli %85, %c1_i32_71 : i32
    %cst_72 = arith.constant 0.000000e+00 : f32
    %87 = vector.broadcast %cst_72 : f32 to vector<16x128xf32>
    %c0_i32_73 = arith.constant 0 : i32
    %88 = arith.addi %86, %c0_i32_73 : i32
    %c0_74 = arith.constant 0 : index
    %89 = arith.index_cast %88 : i32 to index
    %c0_75 = arith.constant 0 : index
    %c0_76 = arith.constant 0 : index
    %90 = vector.load %arg2[%c0_74, %89, %c0_75, %c0_76] : memref<1x18x18x4xbf16, #tpu.memory_space<vmem>>, vector<1x1x16x4xbf16>
    %91 = vector.shape_cast %90 : vector<1x1x16x4xbf16> to vector<16x4xbf16>
    %c0_77 = arith.constant 0 : index
    %c0_78 = arith.constant 0 : index
    %c0_79 = arith.constant 0 : index
    %92 = vector.load %arg3[%c0_77, %c0_78, %c0_79] : memref<9x4x128xbf16, #tpu.memory_space<vmem>>, vector<1x4x128xbf16>
    %93 = vector.shape_cast %92 : vector<1x4x128xbf16> to vector<4x128xbf16>
    %cst_80 = arith.constant dense<0.000000e+00> : vector<16x128xf32>
    %94 = tpu.matmul %91, %93, %cst_80 {dimension_numbers = #tpu.dot_dimension_numbers<[1], [0], [0], [1], [0, 0, 1, 1], [], []>} : vector<16x4xbf16>, vector<4x128xbf16>, vector<16x128xf32> -> vector<16x128xf32>
    %95 = arith.addf %87, %94 : vector<16x128xf32>
    %c0_i32_81 = arith.constant 0 : i32
    %96 = arith.addi %86, %c0_i32_81 : i32
    %c0_82 = arith.constant 0 : index
    %97 = arith.index_cast %96 : i32 to index
    %c1_83 = arith.constant 1 : index
    %c0_84 = arith.constant 0 : index
    %98 = vector.load %arg2[%c0_82, %97, %c1_83, %c0_84] : memref<1x18x18x4xbf16, #tpu.memory_space<vmem>>, vector<1x1x16x4xbf16>
    %99 = vector.shape_cast %98 : vector<1x1x16x4xbf16> to vector<16x4xbf16>
    %c1_85 = arith.constant 1 : index
    %c0_86 = arith.constant 0 : index
    %c0_87 = arith.constant 0 : index
    %100 = vector.load %arg3[%c1_85, %c0_86, %c0_87] : memref<9x4x128xbf16, #tpu.memory_space<vmem>>, vector<1x4x128xbf16>
    %101 = vector.shape_cast %100 : vector<1x4x128xbf16> to vector<4x128xbf16>
    %cst_88 = arith.constant dense<0.000000e+00> : vector<16x128xf32>
    %102 = tpu.matmul %99, %101, %cst_88 {dimension_numbers = #tpu.dot_dimension_numbers<[1], [0], [0], [1], [0, 0, 1, 1], [], []>} : vector<16x4xbf16>, vector<4x128xbf16>, vector<16x128xf32> -> vector<16x128xf32>
    %103 = arith.addf %95, %102 : vector<16x128xf32>
    %c0_i32_89 = arith.constant 0 : i32
    %104 = arith.addi %86, %c0_i32_89 : i32
    %c0_90 = arith.constant 0 : index
    %105 = arith.index_cast %104 : i32 to index
    %c2_91 = arith.constant 2 : index
    %c0_92 = arith.constant 0 : index
    %106 = vector.load %arg2[%c0_90, %105, %c2_91, %c0_92] : memref<1x18x18x4xbf16, #tpu.memory_space<vmem>>, vector<1x1x16x4xbf16>
    %107 = vector.shape_cast %106 : vector<1x1x16x4xbf16> to vector<16x4xbf16>
    %c2_93 = arith.constant 2 : index
    %c0_94 = arith.constant 0 : index
    %c0_95 = arith.constant 0 : index
    %108 = vector.load %arg3[%c2_93, %c0_94, %c0_95] : memref<9x4x128xbf16, #tpu.memory_space<vmem>>, vector<1x4x128xbf16>
    %109 = vector.shape_cast %108 : vector<1x4x128xbf16> to vector<4x128xbf16>
    %cst_96 = arith.constant dense<0.000000e+00> : vector<16x128xf32>
    %110 = tpu.matmul %107, %109, %cst_96 {dimension_numbers = #tpu.dot_dimension_numbers<[1], [0], [0], [1], [0, 0, 1, 1], [], []>} : vector<16x4xbf16>, vector<4x128xbf16>, vector<16x128xf32> -> vector<16x128xf32>
    %111 = arith.addf %103, %110 : vector<16x128xf32>
    %c1_i32_97 = arith.constant 1 : i32
    %112 = arith.addi %86, %c1_i32_97 : i32
    %c0_98 = arith.constant 0 : index
    %113 = arith.index_cast %112 : i32 to index
    %c0_99 = arith.constant 0 : index
    %c0_100 = arith.constant 0 : index
    %114 = vector.load %arg2[%c0_98, %113, %c0_99, %c0_100] : memref<1x18x18x4xbf16, #tpu.memory_space<vmem>>, vector<1x1x16x4xbf16>
    %115 = vector.shape_cast %114 : vector<1x1x16x4xbf16> to vector<16x4xbf16>
    %c3_101 = arith.constant 3 : index
    %c0_102 = arith.constant 0 : index
    %c0_103 = arith.constant 0 : index
    %116 = vector.load %arg3[%c3_101, %c0_102, %c0_103] : memref<9x4x128xbf16, #tpu.memory_space<vmem>>, vector<1x4x128xbf16>
    %117 = vector.shape_cast %116 : vector<1x4x128xbf16> to vector<4x128xbf16>
    %cst_104 = arith.constant dense<0.000000e+00> : vector<16x128xf32>
    %118 = tpu.matmul %115, %117, %cst_104 {dimension_numbers = #tpu.dot_dimension_numbers<[1], [0], [0], [1], [0, 0, 1, 1], [], []>} : vector<16x4xbf16>, vector<4x128xbf16>, vector<16x128xf32> -> vector<16x128xf32>
    %119 = arith.addf %111, %118 : vector<16x128xf32>
    %c1_i32_105 = arith.constant 1 : i32
    %120 = arith.addi %86, %c1_i32_105 : i32
    %c0_106 = arith.constant 0 : index
    %121 = arith.index_cast %120 : i32 to index
    %c1_107 = arith.constant 1 : index
    %c0_108 = arith.constant 0 : index
    %122 = vector.load %arg2[%c0_106, %121, %c1_107, %c0_108] : memref<1x18x18x4xbf16, #tpu.memory_space<vmem>>, vector<1x1x16x4xbf16>
    %123 = vector.shape_cast %122 : vector<1x1x16x4xbf16> to vector<16x4xbf16>
    %c4_109 = arith.constant 4 : index
    %c0_110 = arith.constant 0 : index
    %c0_111 = arith.constant 0 : index
    %124 = vector.load %arg3[%c4_109, %c0_110, %c0_111] : memref<9x4x128xbf16, #tpu.memory_space<vmem>>, vector<1x4x128xbf16>
    %125 = vector.shape_cast %124 : vector<1x4x128xbf16> to vector<4x128xbf16>
    %cst_112 = arith.constant dense<0.000000e+00> : vector<16x128xf32>
    %126 = tpu.matmul %123, %125, %cst_112 {dimension_numbers = #tpu.dot_dimension_numbers<[1], [0], [0], [1], [0, 0, 1, 1], [], []>} : vector<16x4xbf16>, vector<4x128xbf16>, vector<16x128xf32> -> vector<16x128xf32>
    %127 = arith.addf %119, %126 : vector<16x128xf32>
    %c1_i32_113 = arith.constant 1 : i32
    %128 = arith.addi %86, %c1_i32_113 : i32
    %c0_114 = arith.constant 0 : index
    %129 = arith.index_cast %128 : i32 to index
    %c2_115 = arith.constant 2 : index
    %c0_116 = arith.constant 0 : index
    %130 = vector.load %arg2[%c0_114, %129, %c2_115, %c0_116] : memref<1x18x18x4xbf16, #tpu.memory_space<vmem>>, vector<1x1x16x4xbf16>
    %131 = vector.shape_cast %130 : vector<1x1x16x4xbf16> to vector<16x4xbf16>
    %c5_117 = arith.constant 5 : index
    %c0_118 = arith.constant 0 : index
    %c0_119 = arith.constant 0 : index
    %132 = vector.load %arg3[%c5_117, %c0_118, %c0_119] : memref<9x4x128xbf16, #tpu.memory_space<vmem>>, vector<1x4x128xbf16>
    %133 = vector.shape_cast %132 : vector<1x4x128xbf16> to vector<4x128xbf16>
    %cst_120 = arith.constant dense<0.000000e+00> : vector<16x128xf32>
    %134 = tpu.matmul %131, %133, %cst_120 {dimension_numbers = #tpu.dot_dimension_numbers<[1], [0], [0], [1], [0, 0, 1, 1], [], []>} : vector<16x4xbf16>, vector<4x128xbf16>, vector<16x128xf32> -> vector<16x128xf32>
    %135 = arith.addf %127, %134 : vector<16x128xf32>
    %c2_i32_121 = arith.constant 2 : i32
    %136 = arith.addi %86, %c2_i32_121 : i32
    %c0_122 = arith.constant 0 : index
    %137 = arith.index_cast %136 : i32 to index
    %c0_123 = arith.constant 0 : index
    %c0_124 = arith.constant 0 : index
    %138 = vector.load %arg2[%c0_122, %137, %c0_123, %c0_124] : memref<1x18x18x4xbf16, #tpu.memory_space<vmem>>, vector<1x1x16x4xbf16>
    %139 = vector.shape_cast %138 : vector<1x1x16x4xbf16> to vector<16x4xbf16>
    %c6_125 = arith.constant 6 : index
    %c0_126 = arith.constant 0 : index
    %c0_127 = arith.constant 0 : index
    %140 = vector.load %arg3[%c6_125, %c0_126, %c0_127] : memref<9x4x128xbf16, #tpu.memory_space<vmem>>, vector<1x4x128xbf16>
    %141 = vector.shape_cast %140 : vector<1x4x128xbf16> to vector<4x128xbf16>
    %cst_128 = arith.constant dense<0.000000e+00> : vector<16x128xf32>
    %142 = tpu.matmul %139, %141, %cst_128 {dimension_numbers = #tpu.dot_dimension_numbers<[1], [0], [0], [1], [0, 0, 1, 1], [], []>} : vector<16x4xbf16>, vector<4x128xbf16>, vector<16x128xf32> -> vector<16x128xf32>
    %143 = arith.addf %135, %142 : vector<16x128xf32>
    %c2_i32_129 = arith.constant 2 : i32
    %144 = arith.addi %86, %c2_i32_129 : i32
    %c0_130 = arith.constant 0 : index
    %145 = arith.index_cast %144 : i32 to index
    %c1_131 = arith.constant 1 : index
    %c0_132 = arith.constant 0 : index
    %146 = vector.load %arg2[%c0_130, %145, %c1_131, %c0_132] : memref<1x18x18x4xbf16, #tpu.memory_space<vmem>>, vector<1x1x16x4xbf16>
    %147 = vector.shape_cast %146 : vector<1x1x16x4xbf16> to vector<16x4xbf16>
    %c7_133 = arith.constant 7 : index
    %c0_134 = arith.constant 0 : index
    %c0_135 = arith.constant 0 : index
    %148 = vector.load %arg3[%c7_133, %c0_134, %c0_135] : memref<9x4x128xbf16, #tpu.memory_space<vmem>>, vector<1x4x128xbf16>
    %149 = vector.shape_cast %148 : vector<1x4x128xbf16> to vector<4x128xbf16>
    %cst_136 = arith.constant dense<0.000000e+00> : vector<16x128xf32>
    %150 = tpu.matmul %147, %149, %cst_136 {dimension_numbers = #tpu.dot_dimension_numbers<[1], [0], [0], [1], [0, 0, 1, 1], [], []>} : vector<16x4xbf16>, vector<4x128xbf16>, vector<16x128xf32> -> vector<16x128xf32>
    %151 = arith.addf %143, %150 : vector<16x128xf32>
    %c2_i32_137 = arith.constant 2 : i32
    %152 = arith.addi %86, %c2_i32_137 : i32
    %c0_138 = arith.constant 0 : index
    %153 = arith.index_cast %152 : i32 to index
    %c2_139 = arith.constant 2 : index
    %c0_140 = arith.constant 0 : index
    %154 = vector.load %arg2[%c0_138, %153, %c2_139, %c0_140] : memref<1x18x18x4xbf16, #tpu.memory_space<vmem>>, vector<1x1x16x4xbf16>
    %155 = vector.shape_cast %154 : vector<1x1x16x4xbf16> to vector<16x4xbf16>
    %c8_141 = arith.constant 8 : index
    %c0_142 = arith.constant 0 : index
    %c0_143 = arith.constant 0 : index
    %156 = vector.load %arg3[%c8_141, %c0_142, %c0_143] : memref<9x4x128xbf16, #tpu.memory_space<vmem>>, vector<1x4x128xbf16>
    %157 = vector.shape_cast %156 : vector<1x4x128xbf16> to vector<4x128xbf16>
    %cst_144 = arith.constant dense<0.000000e+00> : vector<16x128xf32>
    %158 = tpu.matmul %155, %157, %cst_144 {dimension_numbers = #tpu.dot_dimension_numbers<[1], [0], [0], [1], [0, 0, 1, 1], [], []>} : vector<16x4xbf16>, vector<4x128xbf16>, vector<16x128xf32> -> vector<16x128xf32>
    %159 = arith.addf %151, %158 : vector<16x128xf32>
    %160 = vector.broadcast %0 : vector<1x128xf32> to vector<16x128xf32>
    %161 = arith.addf %159, %160 : vector<16x128xf32>
    %cst_145 = arith.constant 0.000000e+00 : f32
    %162 = vector.broadcast %cst_145 : f32 to vector<16x128xf32>
    %163 = arith.maximumf %161, %162 : vector<16x128xf32>
    %c0_146 = arith.constant 0 : index
    %c1_147 = arith.constant 1 : index
    %c0_148 = arith.constant 0 : index
    %c0_149 = arith.constant 0 : index
    %164 = vector.load %arg5[%c0_146, %c1_147, %c0_148, %c0_149] : memref<1x8x16x128xf32, #tpu.memory_space<vmem>>, vector<1x1x16x128xf32>
    %165 = vector.shape_cast %164 : vector<1x1x16x128xf32> to vector<16x128xf32>
    %166 = vector.shape_cast %163 : vector<16x128xf32> to vector<1x1x16x128xf32>
    tpu.vector_store %arg5[%c0_146, %c1_147, %c0_148, %c0_149], %166 {strides = array<i32>} : memref<1x8x16x128xf32, #tpu.memory_space<vmem>>, vector<1x1x16x128xf32>,
    %c8_i32_150 = arith.constant 8 : i32
    %167 = arith.muli %arg1, %c8_i32_150 : i32
    %c2_i32_151 = arith.constant 2 : i32
    %168 = arith.addi %167, %c2_i32_151 : i32
    %c1_i32_152 = arith.constant 1 : i32
    %169 = arith.muli %168, %c1_i32_152 : i32
    %cst_153 = arith.constant 0.000000e+00 : f32
    %170 = vector.broadcast %cst_153 : f32 to vector<16x128xf32>
    %c0_i32_154 = arith.constant 0 : i32
    %171 = arith.addi %169, %c0_i32_154 : i32
    %c0_155 = arith.constant 0 : index
    %172 = arith.index_cast %171 : i32 to index
    %c0_156 = arith.constant 0 : index
    %c0_157 = arith.constant 0 : index
    %173 = vector.load %arg2[%c0_155, %172, %c0_156, %c0_157] : memref<1x18x18x4xbf16, #tpu.memory_space<vmem>>, vector<1x1x16x4xbf16>
    %174 = vector.shape_cast %173 : vector<1x1x16x4xbf16> to vector<16x4xbf16>
    %c0_158 = arith.constant 0 : index
    %c0_159 = arith.constant 0 : index
    %c0_160 = arith.constant 0 : index
    %175 = vector.load %arg3[%c0_158, %c0_159, %c0_160] : memref<9x4x128xbf16, #tpu.memory_space<vmem>>, vector<1x4x128xbf16>
    %176 = vector.shape_cast %175 : vector<1x4x128xbf16> to vector<4x128xbf16>
    %cst_161 = arith.constant dense<0.000000e+00> : vector<16x128xf32>
    %177 = tpu.matmul %174, %176, %cst_161 {dimension_numbers = #tpu.dot_dimension_numbers<[1], [0], [0], [1], [0, 0, 1, 1], [], []>} : vector<16x4xbf16>, vector<4x128xbf16>, vector<16x128xf32> -> vector<16x128xf32>
    %178 = arith.addf %170, %177 : vector<16x128xf32>
    %c0_i32_162 = arith.constant 0 : i32
    %179 = arith.addi %169, %c0_i32_162 : i32
    %c0_163 = arith.constant 0 : index
    %180 = arith.index_cast %179 : i32 to index
    %c1_164 = arith.constant 1 : index
    %c0_165 = arith.constant 0 : index
    %181 = vector.load %arg2[%c0_163, %180, %c1_164, %c0_165] : memref<1x18x18x4xbf16, #tpu.memory_space<vmem>>, vector<1x1x16x4xbf16>
    %182 = vector.shape_cast %181 : vector<1x1x16x4xbf16> to vector<16x4xbf16>
    %c1_166 = arith.constant 1 : index
    %c0_167 = arith.constant 0 : index
    %c0_168 = arith.constant 0 : index
    %183 = vector.load %arg3[%c1_166, %c0_167, %c0_168] : memref<9x4x128xbf16, #tpu.memory_space<vmem>>, vector<1x4x128xbf16>
    %184 = vector.shape_cast %183 : vector<1x4x128xbf16> to vector<4x128xbf16>
    %cst_169 = arith.constant dense<0.000000e+00> : vector<16x128xf32>
    %185 = tpu.matmul %182, %184, %cst_169 {dimension_numbers = #tpu.dot_dimension_numbers<[1], [0], [0], [1], [0, 0, 1, 1], [], []>} : vector<16x4xbf16>, vector<4x128xbf16>, vector<16x128xf32> -> vector<16x128xf32>
    %186 = arith.addf %178, %185 : vector<16x128xf32>
    %c0_i32_170 = arith.constant 0 : i32
    %187 = arith.addi %169, %c0_i32_170 : i32
    %c0_171 = arith.constant 0 : index
    %188 = arith.index_cast %187 : i32 to index
    %c2_172 = arith.constant 2 : index
    %c0_173 = arith.constant 0 : index
    %189 = vector.load %arg2[%c0_171, %188, %c2_172, %c0_173] : memref<1x18x18x4xbf16, #tpu.memory_space<vmem>>, vector<1x1x16x4xbf16>
    %190 = vector.shape_cast %189 : vector<1x1x16x4xbf16> to vector<16x4xbf16>
    %c2_174 = arith.constant 2 : index
    %c0_175 = arith.constant 0 : index
    %c0_176 = arith.constant 0 : index
    %191 = vector.load %arg3[%c2_174, %c0_175, %c0_176] : memref<9x4x128xbf16, #tpu.memory_space<vmem>>, vector<1x4x128xbf16>
    %192 = vector.shape_cast %191 : vector<1x4x128xbf16> to vector<4x128xbf16>
    %cst_177 = arith.constant dense<0.000000e+00> : vector<16x128xf32>
    %193 = tpu.matmul %190, %192, %cst_177 {dimension_numbers = #tpu.dot_dimension_numbers<[1], [0], [0], [1], [0, 0, 1, 1], [], []>} : vector<16x4xbf16>, vector<4x128xbf16>, vector<16x128xf32> -> vector<16x128xf32>
    %194 = arith.addf %186, %193 : vector<16x128xf32>
    %c1_i32_178 = arith.constant 1 : i32
    %195 = arith.addi %169, %c1_i32_178 : i32
    %c0_179 = arith.constant 0 : index
    %196 = arith.index_cast %195 : i32 to index
    %c0_180 = arith.constant 0 : index
    %c0_181 = arith.constant 0 : index
    %197 = vector.load %arg2[%c0_179, %196, %c0_180, %c0_181] : memref<1x18x18x4xbf16, #tpu.memory_space<vmem>>, vector<1x1x16x4xbf16>
    %198 = vector.shape_cast %197 : vector<1x1x16x4xbf16> to vector<16x4xbf16>
    %c3_182 = arith.constant 3 : index
    %c0_183 = arith.constant 0 : index
    %c0_184 = arith.constant 0 : index
    %199 = vector.load %arg3[%c3_182, %c0_183, %c0_184] : memref<9x4x128xbf16, #tpu.memory_space<vmem>>, vector<1x4x128xbf16>
    %200 = vector.shape_cast %199 : vector<1x4x128xbf16> to vector<4x128xbf16>
    %cst_185 = arith.constant dense<0.000000e+00> : vector<16x128xf32>
    %201 = tpu.matmul %198, %200, %cst_185 {dimension_numbers = #tpu.dot_dimension_numbers<[1], [0], [0], [1], [0, 0, 1, 1], [], []>} : vector<16x4xbf16>, vector<4x128xbf16>, vector<16x128xf32> -> vector<16x128xf32>
    %202 = arith.addf %194, %201 : vector<16x128xf32>
    %c1_i32_186 = arith.constant 1 : i32
    %203 = arith.addi %169, %c1_i32_186 : i32
    %c0_187 = arith.constant 0 : index
    %204 = arith.index_cast %203 : i32 to index
    %c1_188 = arith.constant 1 : index
    %c0_189 = arith.constant 0 : index
    %205 = vector.load %arg2[%c0_187, %204, %c1_188, %c0_189] : memref<1x18x18x4xbf16, #tpu.memory_space<vmem>>, vector<1x1x16x4xbf16>
    %206 = vector.shape_cast %205 : vector<1x1x16x4xbf16> to vector<16x4xbf16>
    %c4_190 = arith.constant 4 : index
    %c0_191 = arith.constant 0 : index
    %c0_192 = arith.constant 0 : index
    %207 = vector.load %arg3[%c4_190, %c0_191, %c0_192] : memref<9x4x128xbf16, #tpu.memory_space<vmem>>, vector<1x4x128xbf16>
    %208 = vector.shape_cast %207 : vector<1x4x128xbf16> to vector<4x128xbf16>
    %cst_193 = arith.constant dense<0.000000e+00> : vector<16x128xf32>
    %209 = tpu.matmul %206, %208, %cst_193 {dimension_numbers = #tpu.dot_dimension_numbers<[1], [0], [0], [1], [0, 0, 1, 1], [], []>} : vector<16x4xbf16>, vector<4x128xbf16>, vector<16x128xf32> -> vector<16x128xf32>
    %210 = arith.addf %202, %209 : vector<16x128xf32>
    %c1_i32_194 = arith.constant 1 : i32
    %211 = arith.addi %169, %c1_i32_194 : i32
    %c0_195 = arith.constant 0 : index
    %212 = arith.index_cast %211 : i32 to index
    %c2_196 = arith.constant 2 : index
    %c0_197 = arith.constant 0 : index
    %213 = vector.load %arg2[%c0_195, %212, %c2_196, %c0_197] : memref<1x18x18x4xbf16, #tpu.memory_space<vmem>>, vector<1x1x16x4xbf16>
    %214 = vector.shape_cast %213 : vector<1x1x16x4xbf16> to vector<16x4xbf16>
    %c5_198 = arith.constant 5 : index
    %c0_199 = arith.constant 0 : index
    %c0_200 = arith.constant 0 : index
    %215 = vector.load %arg3[%c5_198, %c0_199, %c0_200] : memref<9x4x128xbf16, #tpu.memory_space<vmem>>, vector<1x4x128xbf16>
    %216 = vector.shape_cast %215 : vector<1x4x128xbf16> to vector<4x128xbf16>
    %cst_201 = arith.constant dense<0.000000e+00> : vector<16x128xf32>
    %217 = tpu.matmul %214, %216, %cst_201 {dimension_numbers = #tpu.dot_dimension_numbers<[1], [0], [0], [1], [0, 0, 1, 1], [], []>} : vector<16x4xbf16>, vector<4x128xbf16>, vector<16x128xf32> -> vector<16x128xf32>
    %218 = arith.addf %210, %217 : vector<16x128xf32>
    %c2_i32_202 = arith.constant 2 : i32
    %219 = arith.addi %169, %c2_i32_202 : i32
    %c0_203 = arith.constant 0 : index
    %220 = arith.index_cast %219 : i32 to index
    %c0_204 = arith.constant 0 : index
    %c0_205 = arith.constant 0 : index
    %221 = vector.load %arg2[%c0_203, %220, %c0_204, %c0_205] : memref<1x18x18x4xbf16, #tpu.memory_space<vmem>>, vector<1x1x16x4xbf16>
    %222 = vector.shape_cast %221 : vector<1x1x16x4xbf16> to vector<16x4xbf16>
    %c6_206 = arith.constant 6 : index
    %c0_207 = arith.constant 0 : index
    %c0_208 = arith.constant 0 : index
    %223 = vector.load %arg3[%c6_206, %c0_207, %c0_208] : memref<9x4x128xbf16, #tpu.memory_space<vmem>>, vector<1x4x128xbf16>
    %224 = vector.shape_cast %223 : vector<1x4x128xbf16> to vector<4x128xbf16>
    %cst_209 = arith.constant dense<0.000000e+00> : vector<16x128xf32>
    %225 = tpu.matmul %222, %224, %cst_209 {dimension_numbers = #tpu.dot_dimension_numbers<[1], [0], [0], [1], [0, 0, 1, 1], [], []>} : vector<16x4xbf16>, vector<4x128xbf16>, vector<16x128xf32> -> vector<16x128xf32>
    %226 = arith.addf %218, %225 : vector<16x128xf32>
    %c2_i32_210 = arith.constant 2 : i32
    %227 = arith.addi %169, %c2_i32_210 : i32
    %c0_211 = arith.constant 0 : index
    %228 = arith.index_cast %227 : i32 to index
    %c1_212 = arith.constant 1 : index
    %c0_213 = arith.constant 0 : index
    %229 = vector.load %arg2[%c0_211, %228, %c1_212, %c0_213] : memref<1x18x18x4xbf16, #tpu.memory_space<vmem>>, vector<1x1x16x4xbf16>
    %230 = vector.shape_cast %229 : vector<1x1x16x4xbf16> to vector<16x4xbf16>
    %c7_214 = arith.constant 7 : index
    %c0_215 = arith.constant 0 : index
    %c0_216 = arith.constant 0 : index
    %231 = vector.load %arg3[%c7_214, %c0_215, %c0_216] : memref<9x4x128xbf16, #tpu.memory_space<vmem>>, vector<1x4x128xbf16>
    %232 = vector.shape_cast %231 : vector<1x4x128xbf16> to vector<4x128xbf16>
    %cst_217 = arith.constant dense<0.000000e+00> : vector<16x128xf32>
    %233 = tpu.matmul %230, %232, %cst_217 {dimension_numbers = #tpu.dot_dimension_numbers<[1], [0], [0], [1], [0, 0, 1, 1], [], []>} : vector<16x4xbf16>, vector<4x128xbf16>, vector<16x128xf32> -> vector<16x128xf32>
    %234 = arith.addf %226, %233 : vector<16x128xf32>
    %c2_i32_218 = arith.constant 2 : i32
    %235 = arith.addi %169, %c2_i32_218 : i32
    %c0_219 = arith.constant 0 : index
    %236 = arith.index_cast %235 : i32 to index
    %c2_220 = arith.constant 2 : index
    %c0_221 = arith.constant 0 : index
    %237 = vector.load %arg2[%c0_219, %236, %c2_220, %c0_221] : memref<1x18x18x4xbf16, #tpu.memory_space<vmem>>, vector<1x1x16x4xbf16>
    %238 = vector.shape_cast %237 : vector<1x1x16x4xbf16> to vector<16x4xbf16>
    %c8_222 = arith.constant 8 : index
    %c0_223 = arith.constant 0 : index
    %c0_224 = arith.constant 0 : index
    %239 = vector.load %arg3[%c8_222, %c0_223, %c0_224] : memref<9x4x128xbf16, #tpu.memory_space<vmem>>, vector<1x4x128xbf16>
    %240 = vector.shape_cast %239 : vector<1x4x128xbf16> to vector<4x128xbf16>
    %cst_225 = arith.constant dense<0.000000e+00> : vector<16x128xf32>
    %241 = tpu.matmul %238, %240, %cst_225 {dimension_numbers = #tpu.dot_dimension_numbers<[1], [0], [0], [1], [0, 0, 1, 1], [], []>} : vector<16x4xbf16>, vector<4x128xbf16>, vector<16x128xf32> -> vector<16x128xf32>
    %242 = arith.addf %234, %241 : vector<16x128xf32>
    %243 = vector.broadcast %0 : vector<1x128xf32> to vector<16x128xf32>
    %244 = arith.addf %242, %243 : vector<16x128xf32>
    %cst_226 = arith.constant 0.000000e+00 : f32
    %245 = vector.broadcast %cst_226 : f32 to vector<16x128xf32>
    %246 = arith.maximumf %244, %245 : vector<16x128xf32>
    %c0_227 = arith.constant 0 : index
    %c2_228 = arith.constant 2 : index
    %c0_229 = arith.constant 0 : index
    %c0_230 = arith.constant 0 : index
    %247 = vector.load %arg5[%c0_227, %c2_228, %c0_229, %c0_230] : memref<1x8x16x128xf32, #tpu.memory_space<vmem>>, vector<1x1x16x128xf32>
    %248 = vector.shape_cast %247 : vector<1x1x16x128xf32> to vector<16x128xf32>
    %249 = vector.shape_cast %246 : vector<16x128xf32> to vector<1x1x16x128xf32>
    tpu.vector_store %arg5[%c0_227, %c2_228, %c0_229, %c0_230], %249 {strides = array<i32>} : memref<1x8x16x128xf32, #tpu.memory_space<vmem>>, vector<1x1x16x128xf32>,
    %c8_i32_231 = arith.constant 8 : i32
    %250 = arith.muli %arg1, %c8_i32_231 : i32
    %c3_i32 = arith.constant 3 : i32
    %251 = arith.addi %250, %c3_i32 : i32
    %c1_i32_232 = arith.constant 1 : i32
    %252 = arith.muli %251, %c1_i32_232 : i32
    %cst_233 = arith.constant 0.000000e+00 : f32
    %253 = vector.broadcast %cst_233 : f32 to vector<16x128xf32>
    %c0_i32_234 = arith.constant 0 : i32
    %254 = arith.addi %252, %c0_i32_234 : i32
    %c0_235 = arith.constant 0 : index
    %255 = arith.index_cast %254 : i32 to index
    %c0_236 = arith.constant 0 : index
    %c0_237 = arith.constant 0 : index
    %256 = vector.load %arg2[%c0_235, %255, %c0_236, %c0_237] : memref<1x18x18x4xbf16, #tpu.memory_space<vmem>>, vector<1x1x16x4xbf16>
    %257 = vector.shape_cast %256 : vector<1x1x16x4xbf16> to vector<16x4xbf16>
    %c0_238 = arith.constant 0 : index
    %c0_239 = arith.constant 0 : index
    %c0_240 = arith.constant 0 : index
    %258 = vector.load %arg3[%c0_238, %c0_239, %c0_240] : memref<9x4x128xbf16, #tpu.memory_space<vmem>>, vector<1x4x128xbf16>
    %259 = vector.shape_cast %258 : vector<1x4x128xbf16> to vector<4x128xbf16>
    %cst_241 = arith.constant dense<0.000000e+00> : vector<16x128xf32>
    %260 = tpu.matmul %257, %259, %cst_241 {dimension_numbers = #tpu.dot_dimension_numbers<[1], [0], [0], [1], [0, 0, 1, 1], [], []>} : vector<16x4xbf16>, vector<4x128xbf16>, vector<16x128xf32> -> vector<16x128xf32>
    %261 = arith.addf %253, %260 : vector<16x128xf32>
    %c0_i32_242 = arith.constant 0 : i32
    %262 = arith.addi %252, %c0_i32_242 : i32
    %c0_243 = arith.constant 0 : index
    %263 = arith.index_cast %262 : i32 to index
    %c1_244 = arith.constant 1 : index
    %c0_245 = arith.constant 0 : index
    %264 = vector.load %arg2[%c0_243, %263, %c1_244, %c0_245] : memref<1x18x18x4xbf16, #tpu.memory_space<vmem>>, vector<1x1x16x4xbf16>
    %265 = vector.shape_cast %264 : vector<1x1x16x4xbf16> to vector<16x4xbf16>
    %c1_246 = arith.constant 1 : index
    %c0_247 = arith.constant 0 : index
    %c0_248 = arith.constant 0 : index
    %266 = vector.load %arg3[%c1_246, %c0_247, %c0_248] : memref<9x4x128xbf16, #tpu.memory_space<vmem>>, vector<1x4x128xbf16>
    %267 = vector.shape_cast %266 : vector<1x4x128xbf16> to vector<4x128xbf16>
    %cst_249 = arith.constant dense<0.000000e+00> : vector<16x128xf32>
    %268 = tpu.matmul %265, %267, %cst_249 {dimension_numbers = #tpu.dot_dimension_numbers<[1], [0], [0], [1], [0, 0, 1, 1], [], []>} : vector<16x4xbf16>, vector<4x128xbf16>, vector<16x128xf32> -> vector<16x128xf32>
    %269 = arith.addf %261, %268 : vector<16x128xf32>
    %c0_i32_250 = arith.constant 0 : i32
    %270 = arith.addi %252, %c0_i32_250 : i32
    %c0_251 = arith.constant 0 : index
    %271 = arith.index_cast %270 : i32 to index
    %c2_252 = arith.constant 2 : index
    %c0_253 = arith.constant 0 : index
    %272 = vector.load %arg2[%c0_251, %271, %c2_252, %c0_253] : memref<1x18x18x4xbf16, #tpu.memory_space<vmem>>, vector<1x1x16x4xbf16>
    %273 = vector.shape_cast %272 : vector<1x1x16x4xbf16> to vector<16x4xbf16>
    %c2_254 = arith.constant 2 : index
    %c0_255 = arith.constant 0 : index
    %c0_256 = arith.constant 0 : index
    %274 = vector.load %arg3[%c2_254, %c0_255, %c0_256] : memref<9x4x128xbf16, #tpu.memory_space<vmem>>, vector<1x4x128xbf16>
    %275 = vector.shape_cast %274 : vector<1x4x128xbf16> to vector<4x128xbf16>
    %cst_257 = arith.constant dense<0.000000e+00> : vector<16x128xf32>
    %276 = tpu.matmul %273, %275, %cst_257 {dimension_numbers = #tpu.dot_dimension_numbers<[1], [0], [0], [1], [0, 0, 1, 1], [], []>} : vector<16x4xbf16>, vector<4x128xbf16>, vector<16x128xf32> -> vector<16x128xf32>
    %277 = arith.addf %269, %276 : vector<16x128xf32>
    %c1_i32_258 = arith.constant 1 : i32
    %278 = arith.addi %252, %c1_i32_258 : i32
    %c0_259 = arith.constant 0 : index
    %279 = arith.index_cast %278 : i32 to index
    %c0_260 = arith.constant 0 : index
    %c0_261 = arith.constant 0 : index
    %280 = vector.load %arg2[%c0_259, %279, %c0_260, %c0_261] : memref<1x18x18x4xbf16, #tpu.memory_space<vmem>>, vector<1x1x16x4xbf16>
    %281 = vector.shape_cast %280 : vector<1x1x16x4xbf16> to vector<16x4xbf16>
    %c3_262 = arith.constant 3 : index
    %c0_263 = arith.constant 0 : index
    %c0_264 = arith.constant 0 : index
    %282 = vector.load %arg3[%c3_262, %c0_263, %c0_264] : memref<9x4x128xbf16, #tpu.memory_space<vmem>>, vector<1x4x128xbf16>
    %283 = vector.shape_cast %282 : vector<1x4x128xbf16> to vector<4x128xbf16>
    %cst_265 = arith.constant dense<0.000000e+00> : vector<16x128xf32>
    %284 = tpu.matmul %281, %283, %cst_265 {dimension_numbers = #tpu.dot_dimension_numbers<[1], [0], [0], [1], [0, 0, 1, 1], [], []>} : vector<16x4xbf16>, vector<4x128xbf16>, vector<16x128xf32> -> vector<16x128xf32>
    %285 = arith.addf %277, %284 : vector<16x128xf32>
    %c1_i32_266 = arith.constant 1 : i32
    %286 = arith.addi %252, %c1_i32_266 : i32
    %c0_267 = arith.constant 0 : index
    %287 = arith.index_cast %286 : i32 to index
    %c1_268 = arith.constant 1 : index
    %c0_269 = arith.constant 0 : index
    %288 = vector.load %arg2[%c0_267, %287, %c1_268, %c0_269] : memref<1x18x18x4xbf16, #tpu.memory_space<vmem>>, vector<1x1x16x4xbf16>
    %289 = vector.shape_cast %288 : vector<1x1x16x4xbf16> to vector<16x4xbf16>
    %c4_270 = arith.constant 4 : index
    %c0_271 = arith.constant 0 : index
    %c0_272 = arith.constant 0 : index
    %290 = vector.load %arg3[%c4_270, %c0_271, %c0_272] : memref<9x4x128xbf16, #tpu.memory_space<vmem>>, vector<1x4x128xbf16>
    %291 = vector.shape_cast %290 : vector<1x4x128xbf16> to vector<4x128xbf16>
    %cst_273 = arith.constant dense<0.000000e+00> : vector<16x128xf32>
    %292 = tpu.matmul %289, %291, %cst_273 {dimension_numbers = #tpu.dot_dimension_numbers<[1], [0], [0], [1], [0, 0, 1, 1], [], []>} : vector<16x4xbf16>, vector<4x128xbf16>, vector<16x128xf32> -> vector<16x128xf32>
    %293 = arith.addf %285, %292 : vector<16x128xf32>
    %c1_i32_274 = arith.constant 1 : i32
    %294 = arith.addi %252, %c1_i32_274 : i32
    %c0_275 = arith.constant 0 : index
    %295 = arith.index_cast %294 : i32 to index
    %c2_276 = arith.constant 2 : index
    %c0_277 = arith.constant 0 : index
    %296 = vector.load %arg2[%c0_275, %295, %c2_276, %c0_277] : memref<1x18x18x4xbf16, #tpu.memory_space<vmem>>, vector<1x1x16x4xbf16>
    %297 = vector.shape_cast %296 : vector<1x1x16x4xbf16> to vector<16x4xbf16>
    %c5_278 = arith.constant 5 : index
    %c0_279 = arith.constant 0 : index
    %c0_280 = arith.constant 0 : index
    %298 = vector.load %arg3[%c5_278, %c0_279, %c0_280] : memref<9x4x128xbf16, #tpu.memory_space<vmem>>, vector<1x4x128xbf16>
    %299 = vector.shape_cast %298 : vector<1x4x128xbf16> to vector<4x128xbf16>
    %cst_281 = arith.constant dense<0.000000e+00> : vector<16x128xf32>
    %300 = tpu.matmul %297, %299, %cst_281 {dimension_numbers = #tpu.dot_dimension_numbers<[1], [0], [0], [1], [0, 0, 1, 1], [], []>} : vector<16x4xbf16>, vector<4x128xbf16>, vector<16x128xf32> -> vector<16x128xf32>
    %301 = arith.addf %293, %300 : vector<16x128xf32>
    %c2_i32_282 = arith.constant 2 : i32
    %302 = arith.addi %252, %c2_i32_282 : i32
    %c0_283 = arith.constant 0 : index
    %303 = arith.index_cast %302 : i32 to index
    %c0_284 = arith.constant 0 : index
    %c0_285 = arith.constant 0 : index
    %304 = vector.load %arg2[%c0_283, %303, %c0_284, %c0_285] : memref<1x18x18x4xbf16, #tpu.memory_space<vmem>>, vector<1x1x16x4xbf16>
    %305 = vector.shape_cast %304 : vector<1x1x16x4xbf16> to vector<16x4xbf16>
    %c6_286 = arith.constant 6 : index
    %c0_287 = arith.constant 0 : index
    %c0_288 = arith.constant 0 : index
    %306 = vector.load %arg3[%c6_286, %c0_287, %c0_288] : memref<9x4x128xbf16, #tpu.memory_space<vmem>>, vector<1x4x128xbf16>
    %307 = vector.shape_cast %306 : vector<1x4x128xbf16> to vector<4x128xbf16>
    %cst_289 = arith.constant dense<0.000000e+00> : vector<16x128xf32>
    %308 = tpu.matmul %305, %307, %cst_289 {dimension_numbers = #tpu.dot_dimension_numbers<[1], [0], [0], [1], [0, 0, 1, 1], [], []>} : vector<16x4xbf16>, vector<4x128xbf16>, vector<16x128xf32> -> vector<16x128xf32>
    %309 = arith.addf %301, %308 : vector<16x128xf32>
    %c2_i32_290 = arith.constant 2 : i32
    %310 = arith.addi %252, %c2_i32_290 : i32
    %c0_291 = arith.constant 0 : index
    %311 = arith.index_cast %310 : i32 to index
    %c1_292 = arith.constant 1 : index
    %c0_293 = arith.constant 0 : index
    %312 = vector.load %arg2[%c0_291, %311, %c1_292, %c0_293] : memref<1x18x18x4xbf16, #tpu.memory_space<vmem>>, vector<1x1x16x4xbf16>
    %313 = vector.shape_cast %312 : vector<1x1x16x4xbf16> to vector<16x4xbf16>
    %c7_294 = arith.constant 7 : index
    %c0_295 = arith.constant 0 : index
    %c0_296 = arith.constant 0 : index
    %314 = vector.load %arg3[%c7_294, %c0_295, %c0_296] : memref<9x4x128xbf16, #tpu.memory_space<vmem>>, vector<1x4x128xbf16>
    %315 = vector.shape_cast %314 : vector<1x4x128xbf16> to vector<4x128xbf16>
    %cst_297 = arith.constant dense<0.000000e+00> : vector<16x128xf32>
    %316 = tpu.matmul %313, %315, %cst_297 {dimension_numbers = #tpu.dot_dimension_numbers<[1], [0], [0], [1], [0, 0, 1, 1], [], []>} : vector<16x4xbf16>, vector<4x128xbf16>, vector<16x128xf32> -> vector<16x128xf32>
    %317 = arith.addf %309, %316 : vector<16x128xf32>
    %c2_i32_298 = arith.constant 2 : i32
    %318 = arith.addi %252, %c2_i32_298 : i32
    %c0_299 = arith.constant 0 : index
    %319 = arith.index_cast %318 : i32 to index
    %c2_300 = arith.constant 2 : index
    %c0_301 = arith.constant 0 : index
    %320 = vector.load %arg2[%c0_299, %319, %c2_300, %c0_301] : memref<1x18x18x4xbf16, #tpu.memory_space<vmem>>, vector<1x1x16x4xbf16>
    %321 = vector.shape_cast %320 : vector<1x1x16x4xbf16> to vector<16x4xbf16>
    %c8_302 = arith.constant 8 : index
    %c0_303 = arith.constant 0 : index
    %c0_304 = arith.constant 0 : index
    %322 = vector.load %arg3[%c8_302, %c0_303, %c0_304] : memref<9x4x128xbf16, #tpu.memory_space<vmem>>, vector<1x4x128xbf16>
    %323 = vector.shape_cast %322 : vector<1x4x128xbf16> to vector<4x128xbf16>
    %cst_305 = arith.constant dense<0.000000e+00> : vector<16x128xf32>
    %324 = tpu.matmul %321, %323, %cst_305 {dimension_numbers = #tpu.dot_dimension_numbers<[1], [0], [0], [1], [0, 0, 1, 1], [], []>} : vector<16x4xbf16>, vector<4x128xbf16>, vector<16x128xf32> -> vector<16x128xf32>
    %325 = arith.addf %317, %324 : vector<16x128xf32>
    %326 = vector.broadcast %0 : vector<1x128xf32> to vector<16x128xf32>
    %327 = arith.addf %325, %326 : vector<16x128xf32>
    %cst_306 = arith.constant 0.000000e+00 : f32
    %328 = vector.broadcast %cst_306 : f32 to vector<16x128xf32>
    %329 = arith.maximumf %327, %328 : vector<16x128xf32>
    %c0_307 = arith.constant 0 : index
    %c3_308 = arith.constant 3 : index
    %c0_309 = arith.constant 0 : index
    %c0_310 = arith.constant 0 : index
    %330 = vector.load %arg5[%c0_307, %c3_308, %c0_309, %c0_310] : memref<1x8x16x128xf32, #tpu.memory_space<vmem>>, vector<1x1x16x128xf32>
    %331 = vector.shape_cast %330 : vector<1x1x16x128xf32> to vector<16x128xf32>
    %332 = vector.shape_cast %329 : vector<16x128xf32> to vector<1x1x16x128xf32>
    tpu.vector_store %arg5[%c0_307, %c3_308, %c0_309, %c0_310], %332 {strides = array<i32>} : memref<1x8x16x128xf32, #tpu.memory_space<vmem>>, vector<1x1x16x128xf32>,
    %c8_i32_311 = arith.constant 8 : i32
    %333 = arith.muli %arg1, %c8_i32_311 : i32
    %c4_i32 = arith.constant 4 : i32
    %334 = arith.addi %333, %c4_i32 : i32
    %c1_i32_312 = arith.constant 1 : i32
    %335 = arith.muli %334, %c1_i32_312 : i32
    %cst_313 = arith.constant 0.000000e+00 : f32
    %336 = vector.broadcast %cst_313 : f32 to vector<16x128xf32>
    %c0_i32_314 = arith.constant 0 : i32
    %337 = arith.addi %335, %c0_i32_314 : i32
    %c0_315 = arith.constant 0 : index
    %338 = arith.index_cast %337 : i32 to index
    %c0_316 = arith.constant 0 : index
    %c0_317 = arith.constant 0 : index
    %339 = vector.load %arg2[%c0_315, %338, %c0_316, %c0_317] : memref<1x18x18x4xbf16, #tpu.memory_space<vmem>>, vector<1x1x16x4xbf16>
    %340 = vector.shape_cast %339 : vector<1x1x16x4xbf16> to vector<16x4xbf16>
    %c0_318 = arith.constant 0 : index
    %c0_319 = arith.constant 0 : index
    %c0_320 = arith.constant 0 : index
    %341 = vector.load %arg3[%c0_318, %c0_319, %c0_320] : memref<9x4x128xbf16, #tpu.memory_space<vmem>>, vector<1x4x128xbf16>
    %342 = vector.shape_cast %341 : vector<1x4x128xbf16> to vector<4x128xbf16>
    %cst_321 = arith.constant dense<0.000000e+00> : vector<16x128xf32>
    %343 = tpu.matmul %340, %342, %cst_321 {dimension_numbers = #tpu.dot_dimension_numbers<[1], [0], [0], [1], [0, 0, 1, 1], [], []>} : vector<16x4xbf16>, vector<4x128xbf16>, vector<16x128xf32> -> vector<16x128xf32>
    %344 = arith.addf %336, %343 : vector<16x128xf32>
    %c0_i32_322 = arith.constant 0 : i32
    %345 = arith.addi %335, %c0_i32_322 : i32
    %c0_323 = arith.constant 0 : index
    %346 = arith.index_cast %345 : i32 to index
    %c1_324 = arith.constant 1 : index
    %c0_325 = arith.constant 0 : index
    %347 = vector.load %arg2[%c0_323, %346, %c1_324, %c0_325] : memref<1x18x18x4xbf16, #tpu.memory_space<vmem>>, vector<1x1x16x4xbf16>
    %348 = vector.shape_cast %347 : vector<1x1x16x4xbf16> to vector<16x4xbf16>
    %c1_326 = arith.constant 1 : index
    %c0_327 = arith.constant 0 : index
    %c0_328 = arith.constant 0 : index
    %349 = vector.load %arg3[%c1_326, %c0_327, %c0_328] : memref<9x4x128xbf16, #tpu.memory_space<vmem>>, vector<1x4x128xbf16>
    %350 = vector.shape_cast %349 : vector<1x4x128xbf16> to vector<4x128xbf16>
    %cst_329 = arith.constant dense<0.000000e+00> : vector<16x128xf32>
    %351 = tpu.matmul %348, %350, %cst_329 {dimension_numbers = #tpu.dot_dimension_numbers<[1], [0], [0], [1], [0, 0, 1, 1], [], []>} : vector<16x4xbf16>, vector<4x128xbf16>, vector<16x128xf32> -> vector<16x128xf32>
    %352 = arith.addf %344, %351 : vector<16x128xf32>
    %c0_i32_330 = arith.constant 0 : i32
    %353 = arith.addi %335, %c0_i32_330 : i32
    %c0_331 = arith.constant 0 : index
    %354 = arith.index_cast %353 : i32 to index
    %c2_332 = arith.constant 2 : index
    %c0_333 = arith.constant 0 : index
    %355 = vector.load %arg2[%c0_331, %354, %c2_332, %c0_333] : memref<1x18x18x4xbf16, #tpu.memory_space<vmem>>, vector<1x1x16x4xbf16>
    %356 = vector.shape_cast %355 : vector<1x1x16x4xbf16> to vector<16x4xbf16>
    %c2_334 = arith.constant 2 : index
    %c0_335 = arith.constant 0 : index
    %c0_336 = arith.constant 0 : index
    %357 = vector.load %arg3[%c2_334, %c0_335, %c0_336] : memref<9x4x128xbf16, #tpu.memory_space<vmem>>, vector<1x4x128xbf16>
    %358 = vector.shape_cast %357 : vector<1x4x128xbf16> to vector<4x128xbf16>
    %cst_337 = arith.constant dense<0.000000e+00> : vector<16x128xf32>
    %359 = tpu.matmul %356, %358, %cst_337 {dimension_numbers = #tpu.dot_dimension_numbers<[1], [0], [0], [1], [0, 0, 1, 1], [], []>} : vector<16x4xbf16>, vector<4x128xbf16>, vector<16x128xf32> -> vector<16x128xf32>
    %360 = arith.addf %352, %359 : vector<16x128xf32>
    %c1_i32_338 = arith.constant 1 : i32
    %361 = arith.addi %335, %c1_i32_338 : i32
    %c0_339 = arith.constant 0 : index
    %362 = arith.index_cast %361 : i32 to index
    %c0_340 = arith.constant 0 : index
    %c0_341 = arith.constant 0 : index
    %363 = vector.load %arg2[%c0_339, %362, %c0_340, %c0_341] : memref<1x18x18x4xbf16, #tpu.memory_space<vmem>>, vector<1x1x16x4xbf16>
    %364 = vector.shape_cast %363 : vector<1x1x16x4xbf16> to vector<16x4xbf16>
    %c3_342 = arith.constant 3 : index
    %c0_343 = arith.constant 0 : index
    %c0_344 = arith.constant 0 : index
    %365 = vector.load %arg3[%c3_342, %c0_343, %c0_344] : memref<9x4x128xbf16, #tpu.memory_space<vmem>>, vector<1x4x128xbf16>
    %366 = vector.shape_cast %365 : vector<1x4x128xbf16> to vector<4x128xbf16>
    %cst_345 = arith.constant dense<0.000000e+00> : vector<16x128xf32>
    %367 = tpu.matmul %364, %366, %cst_345 {dimension_numbers = #tpu.dot_dimension_numbers<[1], [0], [0], [1], [0, 0, 1, 1], [], []>} : vector<16x4xbf16>, vector<4x128xbf16>, vector<16x128xf32> -> vector<16x128xf32>
    %368 = arith.addf %360, %367 : vector<16x128xf32>
    %c1_i32_346 = arith.constant 1 : i32
    %369 = arith.addi %335, %c1_i32_346 : i32
    %c0_347 = arith.constant 0 : index
    %370 = arith.index_cast %369 : i32 to index
    %c1_348 = arith.constant 1 : index
    %c0_349 = arith.constant 0 : index
    %371 = vector.load %arg2[%c0_347, %370, %c1_348, %c0_349] : memref<1x18x18x4xbf16, #tpu.memory_space<vmem>>, vector<1x1x16x4xbf16>
    %372 = vector.shape_cast %371 : vector<1x1x16x4xbf16> to vector<16x4xbf16>
    %c4_350 = arith.constant 4 : index
    %c0_351 = arith.constant 0 : index
    %c0_352 = arith.constant 0 : index
    %373 = vector.load %arg3[%c4_350, %c0_351, %c0_352] : memref<9x4x128xbf16, #tpu.memory_space<vmem>>, vector<1x4x128xbf16>
    %374 = vector.shape_cast %373 : vector<1x4x128xbf16> to vector<4x128xbf16>
    %cst_353 = arith.constant dense<0.000000e+00> : vector<16x128xf32>
    %375 = tpu.matmul %372, %374, %cst_353 {dimension_numbers = #tpu.dot_dimension_numbers<[1], [0], [0], [1], [0, 0, 1, 1], [], []>} : vector<16x4xbf16>, vector<4x128xbf16>, vector<16x128xf32> -> vector<16x128xf32>
    %376 = arith.addf %368, %375 : vector<16x128xf32>
    %c1_i32_354 = arith.constant 1 : i32
    %377 = arith.addi %335, %c1_i32_354 : i32
    %c0_355 = arith.constant 0 : index
    %378 = arith.index_cast %377 : i32 to index
    %c2_356 = arith.constant 2 : index
    %c0_357 = arith.constant 0 : index
    %379 = vector.load %arg2[%c0_355, %378, %c2_356, %c0_357] : memref<1x18x18x4xbf16, #tpu.memory_space<vmem>>, vector<1x1x16x4xbf16>
    %380 = vector.shape_cast %379 : vector<1x1x16x4xbf16> to vector<16x4xbf16>
    %c5_358 = arith.constant 5 : index
    %c0_359 = arith.constant 0 : index
    %c0_360 = arith.constant 0 : index
    %381 = vector.load %arg3[%c5_358, %c0_359, %c0_360] : memref<9x4x128xbf16, #tpu.memory_space<vmem>>, vector<1x4x128xbf16>
    %382 = vector.shape_cast %381 : vector<1x4x128xbf16> to vector<4x128xbf16>
    %cst_361 = arith.constant dense<0.000000e+00> : vector<16x128xf32>
    %383 = tpu.matmul %380, %382, %cst_361 {dimension_numbers = #tpu.dot_dimension_numbers<[1], [0], [0], [1], [0, 0, 1, 1], [], []>} : vector<16x4xbf16>, vector<4x128xbf16>, vector<16x128xf32> -> vector<16x128xf32>
    %384 = arith.addf %376, %383 : vector<16x128xf32>
    %c2_i32_362 = arith.constant 2 : i32
    %385 = arith.addi %335, %c2_i32_362 : i32
    %c0_363 = arith.constant 0 : index
    %386 = arith.index_cast %385 : i32 to index
    %c0_364 = arith.constant 0 : index
    %c0_365 = arith.constant 0 : index
    %387 = vector.load %arg2[%c0_363, %386, %c0_364, %c0_365] : memref<1x18x18x4xbf16, #tpu.memory_space<vmem>>, vector<1x1x16x4xbf16>
    %388 = vector.shape_cast %387 : vector<1x1x16x4xbf16> to vector<16x4xbf16>
    %c6_366 = arith.constant 6 : index
    %c0_367 = arith.constant 0 : index
    %c0_368 = arith.constant 0 : index
    %389 = vector.load %arg3[%c6_366, %c0_367, %c0_368] : memref<9x4x128xbf16, #tpu.memory_space<vmem>>, vector<1x4x128xbf16>
    %390 = vector.shape_cast %389 : vector<1x4x128xbf16> to vector<4x128xbf16>
    %cst_369 = arith.constant dense<0.000000e+00> : vector<16x128xf32>
    %391 = tpu.matmul %388, %390, %cst_369 {dimension_numbers = #tpu.dot_dimension_numbers<[1], [0], [0], [1], [0, 0, 1, 1], [], []>} : vector<16x4xbf16>, vector<4x128xbf16>, vector<16x128xf32> -> vector<16x128xf32>
    %392 = arith.addf %384, %391 : vector<16x128xf32>
    %c2_i32_370 = arith.constant 2 : i32
    %393 = arith.addi %335, %c2_i32_370 : i32
    %c0_371 = arith.constant 0 : index
    %394 = arith.index_cast %393 : i32 to index
    %c1_372 = arith.constant 1 : index
    %c0_373 = arith.constant 0 : index
    %395 = vector.load %arg2[%c0_371, %394, %c1_372, %c0_373] : memref<1x18x18x4xbf16, #tpu.memory_space<vmem>>, vector<1x1x16x4xbf16>
    %396 = vector.shape_cast %395 : vector<1x1x16x4xbf16> to vector<16x4xbf16>
    %c7_374 = arith.constant 7 : index
    %c0_375 = arith.constant 0 : index
    %c0_376 = arith.constant 0 : index
    %397 = vector.load %arg3[%c7_374, %c0_375, %c0_376] : memref<9x4x128xbf16, #tpu.memory_space<vmem>>, vector<1x4x128xbf16>
    %398 = vector.shape_cast %397 : vector<1x4x128xbf16> to vector<4x128xbf16>
    %cst_377 = arith.constant dense<0.000000e+00> : vector<16x128xf32>
    %399 = tpu.matmul %396, %398, %cst_377 {dimension_numbers = #tpu.dot_dimension_numbers<[1], [0], [0], [1], [0, 0, 1, 1], [], []>} : vector<16x4xbf16>, vector<4x128xbf16>, vector<16x128xf32> -> vector<16x128xf32>
    %400 = arith.addf %392, %399 : vector<16x128xf32>
    %c2_i32_378 = arith.constant 2 : i32
    %401 = arith.addi %335, %c2_i32_378 : i32
    %c0_379 = arith.constant 0 : index
    %402 = arith.index_cast %401 : i32 to index
    %c2_380 = arith.constant 2 : index
    %c0_381 = arith.constant 0 : index
    %403 = vector.load %arg2[%c0_379, %402, %c2_380, %c0_381] : memref<1x18x18x4xbf16, #tpu.memory_space<vmem>>, vector<1x1x16x4xbf16>
    %404 = vector.shape_cast %403 : vector<1x1x16x4xbf16> to vector<16x4xbf16>
    %c8_382 = arith.constant 8 : index
    %c0_383 = arith.constant 0 : index
    %c0_384 = arith.constant 0 : index
    %405 = vector.load %arg3[%c8_382, %c0_383, %c0_384] : memref<9x4x128xbf16, #tpu.memory_space<vmem>>, vector<1x4x128xbf16>
    %406 = vector.shape_cast %405 : vector<1x4x128xbf16> to vector<4x128xbf16>
    %cst_385 = arith.constant dense<0.000000e+00> : vector<16x128xf32>
    %407 = tpu.matmul %404, %406, %cst_385 {dimension_numbers = #tpu.dot_dimension_numbers<[1], [0], [0], [1], [0, 0, 1, 1], [], []>} : vector<16x4xbf16>, vector<4x128xbf16>, vector<16x128xf32> -> vector<16x128xf32>
    %408 = arith.addf %400, %407 : vector<16x128xf32>
    %409 = vector.broadcast %0 : vector<1x128xf32> to vector<16x128xf32>
    %410 = arith.addf %408, %409 : vector<16x128xf32>
    %cst_386 = arith.constant 0.000000e+00 : f32
    %411 = vector.broadcast %cst_386 : f32 to vector<16x128xf32>
    %412 = arith.maximumf %410, %411 : vector<16x128xf32>
    %c0_387 = arith.constant 0 : index
    %c4_388 = arith.constant 4 : index
    %c0_389 = arith.constant 0 : index
    %c0_390 = arith.constant 0 : index
    %413 = vector.load %arg5[%c0_387, %c4_388, %c0_389, %c0_390] : memref<1x8x16x128xf32, #tpu.memory_space<vmem>>, vector<1x1x16x128xf32>
    %414 = vector.shape_cast %413 : vector<1x1x16x128xf32> to vector<16x128xf32>
    %415 = vector.shape_cast %412 : vector<16x128xf32> to vector<1x1x16x128xf32>
    tpu.vector_store %arg5[%c0_387, %c4_388, %c0_389, %c0_390], %415 {strides = array<i32>} : memref<1x8x16x128xf32, #tpu.memory_space<vmem>>, vector<1x1x16x128xf32>,
    %c8_i32_391 = arith.constant 8 : i32
    %416 = arith.muli %arg1, %c8_i32_391 : i32
    %c5_i32 = arith.constant 5 : i32
    %417 = arith.addi %416, %c5_i32 : i32
    %c1_i32_392 = arith.constant 1 : i32
    %418 = arith.muli %417, %c1_i32_392 : i32
    %cst_393 = arith.constant 0.000000e+00 : f32
    %419 = vector.broadcast %cst_393 : f32 to vector<16x128xf32>
    %c0_i32_394 = arith.constant 0 : i32
    %420 = arith.addi %418, %c0_i32_394 : i32
    %c0_395 = arith.constant 0 : index
    %421 = arith.index_cast %420 : i32 to index
    %c0_396 = arith.constant 0 : index
    %c0_397 = arith.constant 0 : index
    %422 = vector.load %arg2[%c0_395, %421, %c0_396, %c0_397] : memref<1x18x18x4xbf16, #tpu.memory_space<vmem>>, vector<1x1x16x4xbf16>
    %423 = vector.shape_cast %422 : vector<1x1x16x4xbf16> to vector<16x4xbf16>
    %c0_398 = arith.constant 0 : index
    %c0_399 = arith.constant 0 : index
    %c0_400 = arith.constant 0 : index
    %424 = vector.load %arg3[%c0_398, %c0_399, %c0_400] : memref<9x4x128xbf16, #tpu.memory_space<vmem>>, vector<1x4x128xbf16>
    %425 = vector.shape_cast %424 : vector<1x4x128xbf16> to vector<4x128xbf16>
    %cst_401 = arith.constant dense<0.000000e+00> : vector<16x128xf32>
    %426 = tpu.matmul %423, %425, %cst_401 {dimension_numbers = #tpu.dot_dimension_numbers<[1], [0], [0], [1], [0, 0, 1, 1], [], []>} : vector<16x4xbf16>, vector<4x128xbf16>, vector<16x128xf32> -> vector<16x128xf32>
    %427 = arith.addf %419, %426 : vector<16x128xf32>
    %c0_i32_402 = arith.constant 0 : i32
    %428 = arith.addi %418, %c0_i32_402 : i32
    %c0_403 = arith.constant 0 : index
    %429 = arith.index_cast %428 : i32 to index
    %c1_404 = arith.constant 1 : index
    %c0_405 = arith.constant 0 : index
    %430 = vector.load %arg2[%c0_403, %429, %c1_404, %c0_405] : memref<1x18x18x4xbf16, #tpu.memory_space<vmem>>, vector<1x1x16x4xbf16>
    %431 = vector.shape_cast %430 : vector<1x1x16x4xbf16> to vector<16x4xbf16>
    %c1_406 = arith.constant 1 : index
    %c0_407 = arith.constant 0 : index
    %c0_408 = arith.constant 0 : index
    %432 = vector.load %arg3[%c1_406, %c0_407, %c0_408] : memref<9x4x128xbf16, #tpu.memory_space<vmem>>, vector<1x4x128xbf16>
    %433 = vector.shape_cast %432 : vector<1x4x128xbf16> to vector<4x128xbf16>
    %cst_409 = arith.constant dense<0.000000e+00> : vector<16x128xf32>
    %434 = tpu.matmul %431, %433, %cst_409 {dimension_numbers = #tpu.dot_dimension_numbers<[1], [0], [0], [1], [0, 0, 1, 1], [], []>} : vector<16x4xbf16>, vector<4x128xbf16>, vector<16x128xf32> -> vector<16x128xf32>
    %435 = arith.addf %427, %434 : vector<16x128xf32>
    %c0_i32_410 = arith.constant 0 : i32
    %436 = arith.addi %418, %c0_i32_410 : i32
    %c0_411 = arith.constant 0 : index
    %437 = arith.index_cast %436 : i32 to index
    %c2_412 = arith.constant 2 : index
    %c0_413 = arith.constant 0 : index
    %438 = vector.load %arg2[%c0_411, %437, %c2_412, %c0_413] : memref<1x18x18x4xbf16, #tpu.memory_space<vmem>>, vector<1x1x16x4xbf16>
    %439 = vector.shape_cast %438 : vector<1x1x16x4xbf16> to vector<16x4xbf16>
    %c2_414 = arith.constant 2 : index
    %c0_415 = arith.constant 0 : index
    %c0_416 = arith.constant 0 : index
    %440 = vector.load %arg3[%c2_414, %c0_415, %c0_416] : memref<9x4x128xbf16, #tpu.memory_space<vmem>>, vector<1x4x128xbf16>
    %441 = vector.shape_cast %440 : vector<1x4x128xbf16> to vector<4x128xbf16>
    %cst_417 = arith.constant dense<0.000000e+00> : vector<16x128xf32>
    %442 = tpu.matmul %439, %441, %cst_417 {dimension_numbers = #tpu.dot_dimension_numbers<[1], [0], [0], [1], [0, 0, 1, 1], [], []>} : vector<16x4xbf16>, vector<4x128xbf16>, vector<16x128xf32> -> vector<16x128xf32>
    %443 = arith.addf %435, %442 : vector<16x128xf32>
    %c1_i32_418 = arith.constant 1 : i32
    %444 = arith.addi %418, %c1_i32_418 : i32
    %c0_419 = arith.constant 0 : index
    %445 = arith.index_cast %444 : i32 to index
    %c0_420 = arith.constant 0 : index
    %c0_421 = arith.constant 0 : index
    %446 = vector.load %arg2[%c0_419, %445, %c0_420, %c0_421] : memref<1x18x18x4xbf16, #tpu.memory_space<vmem>>, vector<1x1x16x4xbf16>
    %447 = vector.shape_cast %446 : vector<1x1x16x4xbf16> to vector<16x4xbf16>
    %c3_422 = arith.constant 3 : index
    %c0_423 = arith.constant 0 : index
    %c0_424 = arith.constant 0 : index
    %448 = vector.load %arg3[%c3_422, %c0_423, %c0_424] : memref<9x4x128xbf16, #tpu.memory_space<vmem>>, vector<1x4x128xbf16>
    %449 = vector.shape_cast %448 : vector<1x4x128xbf16> to vector<4x128xbf16>
    %cst_425 = arith.constant dense<0.000000e+00> : vector<16x128xf32>
    %450 = tpu.matmul %447, %449, %cst_425 {dimension_numbers = #tpu.dot_dimension_numbers<[1], [0], [0], [1], [0, 0, 1, 1], [], []>} : vector<16x4xbf16>, vector<4x128xbf16>, vector<16x128xf32> -> vector<16x128xf32>
    %451 = arith.addf %443, %450 : vector<16x128xf32>
    %c1_i32_426 = arith.constant 1 : i32
    %452 = arith.addi %418, %c1_i32_426 : i32
    %c0_427 = arith.constant 0 : index
    %453 = arith.index_cast %452 : i32 to index
    %c1_428 = arith.constant 1 : index
    %c0_429 = arith.constant 0 : index
    %454 = vector.load %arg2[%c0_427, %453, %c1_428, %c0_429] : memref<1x18x18x4xbf16, #tpu.memory_space<vmem>>, vector<1x1x16x4xbf16>
    %455 = vector.shape_cast %454 : vector<1x1x16x4xbf16> to vector<16x4xbf16>
    %c4_430 = arith.constant 4 : index
    %c0_431 = arith.constant 0 : index
    %c0_432 = arith.constant 0 : index
    %456 = vector.load %arg3[%c4_430, %c0_431, %c0_432] : memref<9x4x128xbf16, #tpu.memory_space<vmem>>, vector<1x4x128xbf16>
    %457 = vector.shape_cast %456 : vector<1x4x128xbf16> to vector<4x128xbf16>
    %cst_433 = arith.constant dense<0.000000e+00> : vector<16x128xf32>
    %458 = tpu.matmul %455, %457, %cst_433 {dimension_numbers = #tpu.dot_dimension_numbers<[1], [0], [0], [1], [0, 0, 1, 1], [], []>} : vector<16x4xbf16>, vector<4x128xbf16>, vector<16x128xf32> -> vector<16x128xf32>
    %459 = arith.addf %451, %458 : vector<16x128xf32>
    %c1_i32_434 = arith.constant 1 : i32
    %460 = arith.addi %418, %c1_i32_434 : i32
    %c0_435 = arith.constant 0 : index
    %461 = arith.index_cast %460 : i32 to index
    %c2_436 = arith.constant 2 : index
    %c0_437 = arith.constant 0 : index
    %462 = vector.load %arg2[%c0_435, %461, %c2_436, %c0_437] : memref<1x18x18x4xbf16, #tpu.memory_space<vmem>>, vector<1x1x16x4xbf16>
    %463 = vector.shape_cast %462 : vector<1x1x16x4xbf16> to vector<16x4xbf16>
    %c5_438 = arith.constant 5 : index
    %c0_439 = arith.constant 0 : index
    %c0_440 = arith.constant 0 : index
    %464 = vector.load %arg3[%c5_438, %c0_439, %c0_440] : memref<9x4x128xbf16, #tpu.memory_space<vmem>>, vector<1x4x128xbf16>
    %465 = vector.shape_cast %464 : vector<1x4x128xbf16> to vector<4x128xbf16>
    %cst_441 = arith.constant dense<0.000000e+00> : vector<16x128xf32>
    %466 = tpu.matmul %463, %465, %cst_441 {dimension_numbers = #tpu.dot_dimension_numbers<[1], [0], [0], [1], [0, 0, 1, 1], [], []>} : vector<16x4xbf16>, vector<4x128xbf16>, vector<16x128xf32> -> vector<16x128xf32>
    %467 = arith.addf %459, %466 : vector<16x128xf32>
    %c2_i32_442 = arith.constant 2 : i32
    %468 = arith.addi %418, %c2_i32_442 : i32
    %c0_443 = arith.constant 0 : index
    %469 = arith.index_cast %468 : i32 to index
    %c0_444 = arith.constant 0 : index
    %c0_445 = arith.constant 0 : index
    %470 = vector.load %arg2[%c0_443, %469, %c0_444, %c0_445] : memref<1x18x18x4xbf16, #tpu.memory_space<vmem>>, vector<1x1x16x4xbf16>
    %471 = vector.shape_cast %470 : vector<1x1x16x4xbf16> to vector<16x4xbf16>
    %c6_446 = arith.constant 6 : index
    %c0_447 = arith.constant 0 : index
    %c0_448 = arith.constant 0 : index
    %472 = vector.load %arg3[%c6_446, %c0_447, %c0_448] : memref<9x4x128xbf16, #tpu.memory_space<vmem>>, vector<1x4x128xbf16>
    %473 = vector.shape_cast %472 : vector<1x4x128xbf16> to vector<4x128xbf16>
    %cst_449 = arith.constant dense<0.000000e+00> : vector<16x128xf32>
    %474 = tpu.matmul %471, %473, %cst_449 {dimension_numbers = #tpu.dot_dimension_numbers<[1], [0], [0], [1], [0, 0, 1, 1], [], []>} : vector<16x4xbf16>, vector<4x128xbf16>, vector<16x128xf32> -> vector<16x128xf32>
    %475 = arith.addf %467, %474 : vector<16x128xf32>
    %c2_i32_450 = arith.constant 2 : i32
    %476 = arith.addi %418, %c2_i32_450 : i32
    %c0_451 = arith.constant 0 : index
    %477 = arith.index_cast %476 : i32 to index
    %c1_452 = arith.constant 1 : index
    %c0_453 = arith.constant 0 : index
    %478 = vector.load %arg2[%c0_451, %477, %c1_452, %c0_453] : memref<1x18x18x4xbf16, #tpu.memory_space<vmem>>, vector<1x1x16x4xbf16>
    %479 = vector.shape_cast %478 : vector<1x1x16x4xbf16> to vector<16x4xbf16>
    %c7_454 = arith.constant 7 : index
    %c0_455 = arith.constant 0 : index
    %c0_456 = arith.constant 0 : index
    %480 = vector.load %arg3[%c7_454, %c0_455, %c0_456] : memref<9x4x128xbf16, #tpu.memory_space<vmem>>, vector<1x4x128xbf16>
    %481 = vector.shape_cast %480 : vector<1x4x128xbf16> to vector<4x128xbf16>
    %cst_457 = arith.constant dense<0.000000e+00> : vector<16x128xf32>
    %482 = tpu.matmul %479, %481, %cst_457 {dimension_numbers = #tpu.dot_dimension_numbers<[1], [0], [0], [1], [0, 0, 1, 1], [], []>} : vector<16x4xbf16>, vector<4x128xbf16>, vector<16x128xf32> -> vector<16x128xf32>
    %483 = arith.addf %475, %482 : vector<16x128xf32>
    %c2_i32_458 = arith.constant 2 : i32
    %484 = arith.addi %418, %c2_i32_458 : i32
    %c0_459 = arith.constant 0 : index
    %485 = arith.index_cast %484 : i32 to index
    %c2_460 = arith.constant 2 : index
    %c0_461 = arith.constant 0 : index
    %486 = vector.load %arg2[%c0_459, %485, %c2_460, %c0_461] : memref<1x18x18x4xbf16, #tpu.memory_space<vmem>>, vector<1x1x16x4xbf16>
    %487 = vector.shape_cast %486 : vector<1x1x16x4xbf16> to vector<16x4xbf16>
    %c8_462 = arith.constant 8 : index
    %c0_463 = arith.constant 0 : index
    %c0_464 = arith.constant 0 : index
    %488 = vector.load %arg3[%c8_462, %c0_463, %c0_464] : memref<9x4x128xbf16, #tpu.memory_space<vmem>>, vector<1x4x128xbf16>
    %489 = vector.shape_cast %488 : vector<1x4x128xbf16> to vector<4x128xbf16>
    %cst_465 = arith.constant dense<0.000000e+00> : vector<16x128xf32>
    %490 = tpu.matmul %487, %489, %cst_465 {dimension_numbers = #tpu.dot_dimension_numbers<[1], [0], [0], [1], [0, 0, 1, 1], [], []>} : vector<16x4xbf16>, vector<4x128xbf16>, vector<16x128xf32> -> vector<16x128xf32>
    %491 = arith.addf %483, %490 : vector<16x128xf32>
    %492 = vector.broadcast %0 : vector<1x128xf32> to vector<16x128xf32>
    %493 = arith.addf %491, %492 : vector<16x128xf32>
    %cst_466 = arith.constant 0.000000e+00 : f32
    %494 = vector.broadcast %cst_466 : f32 to vector<16x128xf32>
    %495 = arith.maximumf %493, %494 : vector<16x128xf32>
    %c0_467 = arith.constant 0 : index
    %c5_468 = arith.constant 5 : index
    %c0_469 = arith.constant 0 : index
    %c0_470 = arith.constant 0 : index
    %496 = vector.load %arg5[%c0_467, %c5_468, %c0_469, %c0_470] : memref<1x8x16x128xf32, #tpu.memory_space<vmem>>, vector<1x1x16x128xf32>
    %497 = vector.shape_cast %496 : vector<1x1x16x128xf32> to vector<16x128xf32>
    %498 = vector.shape_cast %495 : vector<16x128xf32> to vector<1x1x16x128xf32>
    tpu.vector_store %arg5[%c0_467, %c5_468, %c0_469, %c0_470], %498 {strides = array<i32>} : memref<1x8x16x128xf32, #tpu.memory_space<vmem>>, vector<1x1x16x128xf32>,
    %c8_i32_471 = arith.constant 8 : i32
    %499 = arith.muli %arg1, %c8_i32_471 : i32
    %c6_i32 = arith.constant 6 : i32
    %500 = arith.addi %499, %c6_i32 : i32
    %c1_i32_472 = arith.constant 1 : i32
    %501 = arith.muli %500, %c1_i32_472 : i32
    %cst_473 = arith.constant 0.000000e+00 : f32
    %502 = vector.broadcast %cst_473 : f32 to vector<16x128xf32>
    %c0_i32_474 = arith.constant 0 : i32
    %503 = arith.addi %501, %c0_i32_474 : i32
    %c0_475 = arith.constant 0 : index
    %504 = arith.index_cast %503 : i32 to index
    %c0_476 = arith.constant 0 : index
    %c0_477 = arith.constant 0 : index
    %505 = vector.load %arg2[%c0_475, %504, %c0_476, %c0_477] : memref<1x18x18x4xbf16, #tpu.memory_space<vmem>>, vector<1x1x16x4xbf16>
    %506 = vector.shape_cast %505 : vector<1x1x16x4xbf16> to vector<16x4xbf16>
    %c0_478 = arith.constant 0 : index
    %c0_479 = arith.constant 0 : index
    %c0_480 = arith.constant 0 : index
    %507 = vector.load %arg3[%c0_478, %c0_479, %c0_480] : memref<9x4x128xbf16, #tpu.memory_space<vmem>>, vector<1x4x128xbf16>
    %508 = vector.shape_cast %507 : vector<1x4x128xbf16> to vector<4x128xbf16>
    %cst_481 = arith.constant dense<0.000000e+00> : vector<16x128xf32>
    %509 = tpu.matmul %506, %508, %cst_481 {dimension_numbers = #tpu.dot_dimension_numbers<[1], [0], [0], [1], [0, 0, 1, 1], [], []>} : vector<16x4xbf16>, vector<4x128xbf16>, vector<16x128xf32> -> vector<16x128xf32>
    %510 = arith.addf %502, %509 : vector<16x128xf32>
    %c0_i32_482 = arith.constant 0 : i32
    %511 = arith.addi %501, %c0_i32_482 : i32
    %c0_483 = arith.constant 0 : index
    %512 = arith.index_cast %511 : i32 to index
    %c1_484 = arith.constant 1 : index
    %c0_485 = arith.constant 0 : index
    %513 = vector.load %arg2[%c0_483, %512, %c1_484, %c0_485] : memref<1x18x18x4xbf16, #tpu.memory_space<vmem>>, vector<1x1x16x4xbf16>
    %514 = vector.shape_cast %513 : vector<1x1x16x4xbf16> to vector<16x4xbf16>
    %c1_486 = arith.constant 1 : index
    %c0_487 = arith.constant 0 : index
    %c0_488 = arith.constant 0 : index
    %515 = vector.load %arg3[%c1_486, %c0_487, %c0_488] : memref<9x4x128xbf16, #tpu.memory_space<vmem>>, vector<1x4x128xbf16>
    %516 = vector.shape_cast %515 : vector<1x4x128xbf16> to vector<4x128xbf16>
    %cst_489 = arith.constant dense<0.000000e+00> : vector<16x128xf32>
    %517 = tpu.matmul %514, %516, %cst_489 {dimension_numbers = #tpu.dot_dimension_numbers<[1], [0], [0], [1], [0, 0, 1, 1], [], []>} : vector<16x4xbf16>, vector<4x128xbf16>, vector<16x128xf32> -> vector<16x128xf32>
    %518 = arith.addf %510, %517 : vector<16x128xf32>
    %c0_i32_490 = arith.constant 0 : i32
    %519 = arith.addi %501, %c0_i32_490 : i32
    %c0_491 = arith.constant 0 : index
    %520 = arith.index_cast %519 : i32 to index
    %c2_492 = arith.constant 2 : index
    %c0_493 = arith.constant 0 : index
    %521 = vector.load %arg2[%c0_491, %520, %c2_492, %c0_493] : memref<1x18x18x4xbf16, #tpu.memory_space<vmem>>, vector<1x1x16x4xbf16>
    %522 = vector.shape_cast %521 : vector<1x1x16x4xbf16> to vector<16x4xbf16>
    %c2_494 = arith.constant 2 : index
    %c0_495 = arith.constant 0 : index
    %c0_496 = arith.constant 0 : index
    %523 = vector.load %arg3[%c2_494, %c0_495, %c0_496] : memref<9x4x128xbf16, #tpu.memory_space<vmem>>, vector<1x4x128xbf16>
    %524 = vector.shape_cast %523 : vector<1x4x128xbf16> to vector<4x128xbf16>
    %cst_497 = arith.constant dense<0.000000e+00> : vector<16x128xf32>
    %525 = tpu.matmul %522, %524, %cst_497 {dimension_numbers = #tpu.dot_dimension_numbers<[1], [0], [0], [1], [0, 0, 1, 1], [], []>} : vector<16x4xbf16>, vector<4x128xbf16>, vector<16x128xf32> -> vector<16x128xf32>
    %526 = arith.addf %518, %525 : vector<16x128xf32>
    %c1_i32_498 = arith.constant 1 : i32
    %527 = arith.addi %501, %c1_i32_498 : i32
    %c0_499 = arith.constant 0 : index
    %528 = arith.index_cast %527 : i32 to index
    %c0_500 = arith.constant 0 : index
    %c0_501 = arith.constant 0 : index
    %529 = vector.load %arg2[%c0_499, %528, %c0_500, %c0_501] : memref<1x18x18x4xbf16, #tpu.memory_space<vmem>>, vector<1x1x16x4xbf16>
    %530 = vector.shape_cast %529 : vector<1x1x16x4xbf16> to vector<16x4xbf16>
    %c3_502 = arith.constant 3 : index
    %c0_503 = arith.constant 0 : index
    %c0_504 = arith.constant 0 : index
    %531 = vector.load %arg3[%c3_502, %c0_503, %c0_504] : memref<9x4x128xbf16, #tpu.memory_space<vmem>>, vector<1x4x128xbf16>
    %532 = vector.shape_cast %531 : vector<1x4x128xbf16> to vector<4x128xbf16>
    %cst_505 = arith.constant dense<0.000000e+00> : vector<16x128xf32>
    %533 = tpu.matmul %530, %532, %cst_505 {dimension_numbers = #tpu.dot_dimension_numbers<[1], [0], [0], [1], [0, 0, 1, 1], [], []>} : vector<16x4xbf16>, vector<4x128xbf16>, vector<16x128xf32> -> vector<16x128xf32>
    %534 = arith.addf %526, %533 : vector<16x128xf32>
    %c1_i32_506 = arith.constant 1 : i32
    %535 = arith.addi %501, %c1_i32_506 : i32
    %c0_507 = arith.constant 0 : index
    %536 = arith.index_cast %535 : i32 to index
    %c1_508 = arith.constant 1 : index
    %c0_509 = arith.constant 0 : index
    %537 = vector.load %arg2[%c0_507, %536, %c1_508, %c0_509] : memref<1x18x18x4xbf16, #tpu.memory_space<vmem>>, vector<1x1x16x4xbf16>
    %538 = vector.shape_cast %537 : vector<1x1x16x4xbf16> to vector<16x4xbf16>
    %c4_510 = arith.constant 4 : index
    %c0_511 = arith.constant 0 : index
    %c0_512 = arith.constant 0 : index
    %539 = vector.load %arg3[%c4_510, %c0_511, %c0_512] : memref<9x4x128xbf16, #tpu.memory_space<vmem>>, vector<1x4x128xbf16>
    %540 = vector.shape_cast %539 : vector<1x4x128xbf16> to vector<4x128xbf16>
    %cst_513 = arith.constant dense<0.000000e+00> : vector<16x128xf32>
    %541 = tpu.matmul %538, %540, %cst_513 {dimension_numbers = #tpu.dot_dimension_numbers<[1], [0], [0], [1], [0, 0, 1, 1], [], []>} : vector<16x4xbf16>, vector<4x128xbf16>, vector<16x128xf32> -> vector<16x128xf32>
    %542 = arith.addf %534, %541 : vector<16x128xf32>
    %c1_i32_514 = arith.constant 1 : i32
    %543 = arith.addi %501, %c1_i32_514 : i32
    %c0_515 = arith.constant 0 : index
    %544 = arith.index_cast %543 : i32 to index
    %c2_516 = arith.constant 2 : index
    %c0_517 = arith.constant 0 : index
    %545 = vector.load %arg2[%c0_515, %544, %c2_516, %c0_517] : memref<1x18x18x4xbf16, #tpu.memory_space<vmem>>, vector<1x1x16x4xbf16>
    %546 = vector.shape_cast %545 : vector<1x1x16x4xbf16> to vector<16x4xbf16>
    %c5_518 = arith.constant 5 : index
    %c0_519 = arith.constant 0 : index
    %c0_520 = arith.constant 0 : index
    %547 = vector.load %arg3[%c5_518, %c0_519, %c0_520] : memref<9x4x128xbf16, #tpu.memory_space<vmem>>, vector<1x4x128xbf16>
    %548 = vector.shape_cast %547 : vector<1x4x128xbf16> to vector<4x128xbf16>
    %cst_521 = arith.constant dense<0.000000e+00> : vector<16x128xf32>
    %549 = tpu.matmul %546, %548, %cst_521 {dimension_numbers = #tpu.dot_dimension_numbers<[1], [0], [0], [1], [0, 0, 1, 1], [], []>} : vector<16x4xbf16>, vector<4x128xbf16>, vector<16x128xf32> -> vector<16x128xf32>
    %550 = arith.addf %542, %549 : vector<16x128xf32>
    %c2_i32_522 = arith.constant 2 : i32
    %551 = arith.addi %501, %c2_i32_522 : i32
    %c0_523 = arith.constant 0 : index
    %552 = arith.index_cast %551 : i32 to index
    %c0_524 = arith.constant 0 : index
    %c0_525 = arith.constant 0 : index
    %553 = vector.load %arg2[%c0_523, %552, %c0_524, %c0_525] : memref<1x18x18x4xbf16, #tpu.memory_space<vmem>>, vector<1x1x16x4xbf16>
    %554 = vector.shape_cast %553 : vector<1x1x16x4xbf16> to vector<16x4xbf16>
    %c6_526 = arith.constant 6 : index
    %c0_527 = arith.constant 0 : index
    %c0_528 = arith.constant 0 : index
    %555 = vector.load %arg3[%c6_526, %c0_527, %c0_528] : memref<9x4x128xbf16, #tpu.memory_space<vmem>>, vector<1x4x128xbf16>
    %556 = vector.shape_cast %555 : vector<1x4x128xbf16> to vector<4x128xbf16>
    %cst_529 = arith.constant dense<0.000000e+00> : vector<16x128xf32>
    %557 = tpu.matmul %554, %556, %cst_529 {dimension_numbers = #tpu.dot_dimension_numbers<[1], [0], [0], [1], [0, 0, 1, 1], [], []>} : vector<16x4xbf16>, vector<4x128xbf16>, vector<16x128xf32> -> vector<16x128xf32>
    %558 = arith.addf %550, %557 : vector<16x128xf32>
    %c2_i32_530 = arith.constant 2 : i32
    %559 = arith.addi %501, %c2_i32_530 : i32
    %c0_531 = arith.constant 0 : index
    %560 = arith.index_cast %559 : i32 to index
    %c1_532 = arith.constant 1 : index
    %c0_533 = arith.constant 0 : index
    %561 = vector.load %arg2[%c0_531, %560, %c1_532, %c0_533] : memref<1x18x18x4xbf16, #tpu.memory_space<vmem>>, vector<1x1x16x4xbf16>
    %562 = vector.shape_cast %561 : vector<1x1x16x4xbf16> to vector<16x4xbf16>
    %c7_534 = arith.constant 7 : index
    %c0_535 = arith.constant 0 : index
    %c0_536 = arith.constant 0 : index
    %563 = vector.load %arg3[%c7_534, %c0_535, %c0_536] : memref<9x4x128xbf16, #tpu.memory_space<vmem>>, vector<1x4x128xbf16>
    %564 = vector.shape_cast %563 : vector<1x4x128xbf16> to vector<4x128xbf16>
    %cst_537 = arith.constant dense<0.000000e+00> : vector<16x128xf32>
    %565 = tpu.matmul %562, %564, %cst_537 {dimension_numbers = #tpu.dot_dimension_numbers<[1], [0], [0], [1], [0, 0, 1, 1], [], []>} : vector<16x4xbf16>, vector<4x128xbf16>, vector<16x128xf32> -> vector<16x128xf32>
    %566 = arith.addf %558, %565 : vector<16x128xf32>
    %c2_i32_538 = arith.constant 2 : i32
    %567 = arith.addi %501, %c2_i32_538 : i32
    %c0_539 = arith.constant 0 : index
    %568 = arith.index_cast %567 : i32 to index
    %c2_540 = arith.constant 2 : index
    %c0_541 = arith.constant 0 : index
    %569 = vector.load %arg2[%c0_539, %568, %c2_540, %c0_541] : memref<1x18x18x4xbf16, #tpu.memory_space<vmem>>, vector<1x1x16x4xbf16>
    %570 = vector.shape_cast %569 : vector<1x1x16x4xbf16> to vector<16x4xbf16>
    %c8_542 = arith.constant 8 : index
    %c0_543 = arith.constant 0 : index
    %c0_544 = arith.constant 0 : index
    %571 = vector.load %arg3[%c8_542, %c0_543, %c0_544] : memref<9x4x128xbf16, #tpu.memory_space<vmem>>, vector<1x4x128xbf16>
    %572 = vector.shape_cast %571 : vector<1x4x128xbf16> to vector<4x128xbf16>
    %cst_545 = arith.constant dense<0.000000e+00> : vector<16x128xf32>
    %573 = tpu.matmul %570, %572, %cst_545 {dimension_numbers = #tpu.dot_dimension_numbers<[1], [0], [0], [1], [0, 0, 1, 1], [], []>} : vector<16x4xbf16>, vector<4x128xbf16>, vector<16x128xf32> -> vector<16x128xf32>
    %574 = arith.addf %566, %573 : vector<16x128xf32>
    %575 = vector.broadcast %0 : vector<1x128xf32> to vector<16x128xf32>
    %576 = arith.addf %574, %575 : vector<16x128xf32>
    %cst_546 = arith.constant 0.000000e+00 : f32
    %577 = vector.broadcast %cst_546 : f32 to vector<16x128xf32>
    %578 = arith.maximumf %576, %577 : vector<16x128xf32>
    %c0_547 = arith.constant 0 : index
    %c6_548 = arith.constant 6 : index
    %c0_549 = arith.constant 0 : index
    %c0_550 = arith.constant 0 : index
    %579 = vector.load %arg5[%c0_547, %c6_548, %c0_549, %c0_550] : memref<1x8x16x128xf32, #tpu.memory_space<vmem>>, vector<1x1x16x128xf32>
    %580 = vector.shape_cast %579 : vector<1x1x16x128xf32> to vector<16x128xf32>
    %581 = vector.shape_cast %578 : vector<16x128xf32> to vector<1x1x16x128xf32>
    tpu.vector_store %arg5[%c0_547, %c6_548, %c0_549, %c0_550], %581 {strides = array<i32>} : memref<1x8x16x128xf32, #tpu.memory_space<vmem>>, vector<1x1x16x128xf32>,
    %c8_i32_551 = arith.constant 8 : i32
    %582 = arith.muli %arg1, %c8_i32_551 : i32
    %c7_i32 = arith.constant 7 : i32
    %583 = arith.addi %582, %c7_i32 : i32
    %c1_i32_552 = arith.constant 1 : i32
    %584 = arith.muli %583, %c1_i32_552 : i32
    %cst_553 = arith.constant 0.000000e+00 : f32
    %585 = vector.broadcast %cst_553 : f32 to vector<16x128xf32>
    %c0_i32_554 = arith.constant 0 : i32
    %586 = arith.addi %584, %c0_i32_554 : i32
    %c0_555 = arith.constant 0 : index
    %587 = arith.index_cast %586 : i32 to index
    %c0_556 = arith.constant 0 : index
    %c0_557 = arith.constant 0 : index
    %588 = vector.load %arg2[%c0_555, %587, %c0_556, %c0_557] : memref<1x18x18x4xbf16, #tpu.memory_space<vmem>>, vector<1x1x16x4xbf16>
    %589 = vector.shape_cast %588 : vector<1x1x16x4xbf16> to vector<16x4xbf16>
    %c0_558 = arith.constant 0 : index
    %c0_559 = arith.constant 0 : index
    %c0_560 = arith.constant 0 : index
    %590 = vector.load %arg3[%c0_558, %c0_559, %c0_560] : memref<9x4x128xbf16, #tpu.memory_space<vmem>>, vector<1x4x128xbf16>
    %591 = vector.shape_cast %590 : vector<1x4x128xbf16> to vector<4x128xbf16>
    %cst_561 = arith.constant dense<0.000000e+00> : vector<16x128xf32>
    %592 = tpu.matmul %589, %591, %cst_561 {dimension_numbers = #tpu.dot_dimension_numbers<[1], [0], [0], [1], [0, 0, 1, 1], [], []>} : vector<16x4xbf16>, vector<4x128xbf16>, vector<16x128xf32> -> vector<16x128xf32>
    %593 = arith.addf %585, %592 : vector<16x128xf32>
    %c0_i32_562 = arith.constant 0 : i32
    %594 = arith.addi %584, %c0_i32_562 : i32
    %c0_563 = arith.constant 0 : index
    %595 = arith.index_cast %594 : i32 to index
    %c1_564 = arith.constant 1 : index
    %c0_565 = arith.constant 0 : index
    %596 = vector.load %arg2[%c0_563, %595, %c1_564, %c0_565] : memref<1x18x18x4xbf16, #tpu.memory_space<vmem>>, vector<1x1x16x4xbf16>
    %597 = vector.shape_cast %596 : vector<1x1x16x4xbf16> to vector<16x4xbf16>
    %c1_566 = arith.constant 1 : index
    %c0_567 = arith.constant 0 : index
    %c0_568 = arith.constant 0 : index
    %598 = vector.load %arg3[%c1_566, %c0_567, %c0_568] : memref<9x4x128xbf16, #tpu.memory_space<vmem>>, vector<1x4x128xbf16>
    %599 = vector.shape_cast %598 : vector<1x4x128xbf16> to vector<4x128xbf16>
    %cst_569 = arith.constant dense<0.000000e+00> : vector<16x128xf32>
    %600 = tpu.matmul %597, %599, %cst_569 {dimension_numbers = #tpu.dot_dimension_numbers<[1], [0], [0], [1], [0, 0, 1, 1], [], []>} : vector<16x4xbf16>, vector<4x128xbf16>, vector<16x128xf32> -> vector<16x128xf32>
    %601 = arith.addf %593, %600 : vector<16x128xf32>
    %c0_i32_570 = arith.constant 0 : i32
    %602 = arith.addi %584, %c0_i32_570 : i32
    %c0_571 = arith.constant 0 : index
    %603 = arith.index_cast %602 : i32 to index
    %c2_572 = arith.constant 2 : index
    %c0_573 = arith.constant 0 : index
    %604 = vector.load %arg2[%c0_571, %603, %c2_572, %c0_573] : memref<1x18x18x4xbf16, #tpu.memory_space<vmem>>, vector<1x1x16x4xbf16>
    %605 = vector.shape_cast %604 : vector<1x1x16x4xbf16> to vector<16x4xbf16>
    %c2_574 = arith.constant 2 : index
    %c0_575 = arith.constant 0 : index
    %c0_576 = arith.constant 0 : index
    %606 = vector.load %arg3[%c2_574, %c0_575, %c0_576] : memref<9x4x128xbf16, #tpu.memory_space<vmem>>, vector<1x4x128xbf16>
    %607 = vector.shape_cast %606 : vector<1x4x128xbf16> to vector<4x128xbf16>
    %cst_577 = arith.constant dense<0.000000e+00> : vector<16x128xf32>
    %608 = tpu.matmul %605, %607, %cst_577 {dimension_numbers = #tpu.dot_dimension_numbers<[1], [0], [0], [1], [0, 0, 1, 1], [], []>} : vector<16x4xbf16>, vector<4x128xbf16>, vector<16x128xf32> -> vector<16x128xf32>
    %609 = arith.addf %601, %608 : vector<16x128xf32>
    %c1_i32_578 = arith.constant 1 : i32
    %610 = arith.addi %584, %c1_i32_578 : i32
    %c0_579 = arith.constant 0 : index
    %611 = arith.index_cast %610 : i32 to index
    %c0_580 = arith.constant 0 : index
    %c0_581 = arith.constant 0 : index
    %612 = vector.load %arg2[%c0_579, %611, %c0_580, %c0_581] : memref<1x18x18x4xbf16, #tpu.memory_space<vmem>>, vector<1x1x16x4xbf16>
    %613 = vector.shape_cast %612 : vector<1x1x16x4xbf16> to vector<16x4xbf16>
    %c3_582 = arith.constant 3 : index
    %c0_583 = arith.constant 0 : index
    %c0_584 = arith.constant 0 : index
    %614 = vector.load %arg3[%c3_582, %c0_583, %c0_584] : memref<9x4x128xbf16, #tpu.memory_space<vmem>>, vector<1x4x128xbf16>
    %615 = vector.shape_cast %614 : vector<1x4x128xbf16> to vector<4x128xbf16>
    %cst_585 = arith.constant dense<0.000000e+00> : vector<16x128xf32>
    %616 = tpu.matmul %613, %615, %cst_585 {dimension_numbers = #tpu.dot_dimension_numbers<[1], [0], [0], [1], [0, 0, 1, 1], [], []>} : vector<16x4xbf16>, vector<4x128xbf16>, vector<16x128xf32> -> vector<16x128xf32>
    %617 = arith.addf %609, %616 : vector<16x128xf32>
    %c1_i32_586 = arith.constant 1 : i32
    %618 = arith.addi %584, %c1_i32_586 : i32
    %c0_587 = arith.constant 0 : index
    %619 = arith.index_cast %618 : i32 to index
    %c1_588 = arith.constant 1 : index
    %c0_589 = arith.constant 0 : index
    %620 = vector.load %arg2[%c0_587, %619, %c1_588, %c0_589] : memref<1x18x18x4xbf16, #tpu.memory_space<vmem>>, vector<1x1x16x4xbf16>
    %621 = vector.shape_cast %620 : vector<1x1x16x4xbf16> to vector<16x4xbf16>
    %c4_590 = arith.constant 4 : index
    %c0_591 = arith.constant 0 : index
    %c0_592 = arith.constant 0 : index
    %622 = vector.load %arg3[%c4_590, %c0_591, %c0_592] : memref<9x4x128xbf16, #tpu.memory_space<vmem>>, vector<1x4x128xbf16>
    %623 = vector.shape_cast %622 : vector<1x4x128xbf16> to vector<4x128xbf16>
    %cst_593 = arith.constant dense<0.000000e+00> : vector<16x128xf32>
    %624 = tpu.matmul %621, %623, %cst_593 {dimension_numbers = #tpu.dot_dimension_numbers<[1], [0], [0], [1], [0, 0, 1, 1], [], []>} : vector<16x4xbf16>, vector<4x128xbf16>, vector<16x128xf32> -> vector<16x128xf32>
    %625 = arith.addf %617, %624 : vector<16x128xf32>
    %c1_i32_594 = arith.constant 1 : i32
    %626 = arith.addi %584, %c1_i32_594 : i32
    %c0_595 = arith.constant 0 : index
    %627 = arith.index_cast %626 : i32 to index
    %c2_596 = arith.constant 2 : index
    %c0_597 = arith.constant 0 : index
    %628 = vector.load %arg2[%c0_595, %627, %c2_596, %c0_597] : memref<1x18x18x4xbf16, #tpu.memory_space<vmem>>, vector<1x1x16x4xbf16>
    %629 = vector.shape_cast %628 : vector<1x1x16x4xbf16> to vector<16x4xbf16>
    %c5_598 = arith.constant 5 : index
    %c0_599 = arith.constant 0 : index
    %c0_600 = arith.constant 0 : index
    %630 = vector.load %arg3[%c5_598, %c0_599, %c0_600] : memref<9x4x128xbf16, #tpu.memory_space<vmem>>, vector<1x4x128xbf16>
    %631 = vector.shape_cast %630 : vector<1x4x128xbf16> to vector<4x128xbf16>
    %cst_601 = arith.constant dense<0.000000e+00> : vector<16x128xf32>
    %632 = tpu.matmul %629, %631, %cst_601 {dimension_numbers = #tpu.dot_dimension_numbers<[1], [0], [0], [1], [0, 0, 1, 1], [], []>} : vector<16x4xbf16>, vector<4x128xbf16>, vector<16x128xf32> -> vector<16x128xf32>
    %633 = arith.addf %625, %632 : vector<16x128xf32>
    %c2_i32_602 = arith.constant 2 : i32
    %634 = arith.addi %584, %c2_i32_602 : i32
    %c0_603 = arith.constant 0 : index
    %635 = arith.index_cast %634 : i32 to index
    %c0_604 = arith.constant 0 : index
    %c0_605 = arith.constant 0 : index
    %636 = vector.load %arg2[%c0_603, %635, %c0_604, %c0_605] : memref<1x18x18x4xbf16, #tpu.memory_space<vmem>>, vector<1x1x16x4xbf16>
    %637 = vector.shape_cast %636 : vector<1x1x16x4xbf16> to vector<16x4xbf16>
    %c6_606 = arith.constant 6 : index
    %c0_607 = arith.constant 0 : index
    %c0_608 = arith.constant 0 : index
    %638 = vector.load %arg3[%c6_606, %c0_607, %c0_608] : memref<9x4x128xbf16, #tpu.memory_space<vmem>>, vector<1x4x128xbf16>
    %639 = vector.shape_cast %638 : vector<1x4x128xbf16> to vector<4x128xbf16>
    %cst_609 = arith.constant dense<0.000000e+00> : vector<16x128xf32>
    %640 = tpu.matmul %637, %639, %cst_609 {dimension_numbers = #tpu.dot_dimension_numbers<[1], [0], [0], [1], [0, 0, 1, 1], [], []>} : vector<16x4xbf16>, vector<4x128xbf16>, vector<16x128xf32> -> vector<16x128xf32>
    %641 = arith.addf %633, %640 : vector<16x128xf32>
    %c2_i32_610 = arith.constant 2 : i32
    %642 = arith.addi %584, %c2_i32_610 : i32
    %c0_611 = arith.constant 0 : index
    %643 = arith.index_cast %642 : i32 to index
    %c1_612 = arith.constant 1 : index
    %c0_613 = arith.constant 0 : index
    %644 = vector.load %arg2[%c0_611, %643, %c1_612, %c0_613] : memref<1x18x18x4xbf16, #tpu.memory_space<vmem>>, vector<1x1x16x4xbf16>
    %645 = vector.shape_cast %644 : vector<1x1x16x4xbf16> to vector<16x4xbf16>
    %c7_614 = arith.constant 7 : index
    %c0_615 = arith.constant 0 : index
    %c0_616 = arith.constant 0 : index
    %646 = vector.load %arg3[%c7_614, %c0_615, %c0_616] : memref<9x4x128xbf16, #tpu.memory_space<vmem>>, vector<1x4x128xbf16>
    %647 = vector.shape_cast %646 : vector<1x4x128xbf16> to vector<4x128xbf16>
    %cst_617 = arith.constant dense<0.000000e+00> : vector<16x128xf32>
    %648 = tpu.matmul %645, %647, %cst_617 {dimension_numbers = #tpu.dot_dimension_numbers<[1], [0], [0], [1], [0, 0, 1, 1], [], []>} : vector<16x4xbf16>, vector<4x128xbf16>, vector<16x128xf32> -> vector<16x128xf32>
    %649 = arith.addf %641, %648 : vector<16x128xf32>
    %c2_i32_618 = arith.constant 2 : i32
    %650 = arith.addi %584, %c2_i32_618 : i32
    %c0_619 = arith.constant 0 : index
    %651 = arith.index_cast %650 : i32 to index
    %c2_620 = arith.constant 2 : index
    %c0_621 = arith.constant 0 : index
    %652 = vector.load %arg2[%c0_619, %651, %c2_620, %c0_621] : memref<1x18x18x4xbf16, #tpu.memory_space<vmem>>, vector<1x1x16x4xbf16>
    %653 = vector.shape_cast %652 : vector<1x1x16x4xbf16> to vector<16x4xbf16>
    %c8_622 = arith.constant 8 : index
    %c0_623 = arith.constant 0 : index
    %c0_624 = arith.constant 0 : index
    %654 = vector.load %arg3[%c8_622, %c0_623, %c0_624] : memref<9x4x128xbf16, #tpu.memory_space<vmem>>, vector<1x4x128xbf16>
    %655 = vector.shape_cast %654 : vector<1x4x128xbf16> to vector<4x128xbf16>
    %cst_625 = arith.constant dense<0.000000e+00> : vector<16x128xf32>
    %656 = tpu.matmul %653, %655, %cst_625 {dimension_numbers = #tpu.dot_dimension_numbers<[1], [0], [0], [1], [0, 0, 1, 1], [], []>} : vector<16x4xbf16>, vector<4x128xbf16>, vector<16x128xf32> -> vector<16x128xf32>
    %657 = arith.addf %649, %656 : vector<16x128xf32>
    %658 = vector.broadcast %0 : vector<1x128xf32> to vector<16x128xf32>
    %659 = arith.addf %657, %658 : vector<16x128xf32>
    %cst_626 = arith.constant 0.000000e+00 : f32
    %660 = vector.broadcast %cst_626 : f32 to vector<16x128xf32>
    %661 = arith.maximumf %659, %660 : vector<16x128xf32>
    %c0_627 = arith.constant 0 : index
    %c7_628 = arith.constant 7 : index
    %c0_629 = arith.constant 0 : index
    %c0_630 = arith.constant 0 : index
    %662 = vector.load %arg5[%c0_627, %c7_628, %c0_629, %c0_630] : memref<1x8x16x128xf32, #tpu.memory_space<vmem>>, vector<1x1x16x128xf32>
    %663 = vector.shape_cast %662 : vector<1x1x16x128xf32> to vector<16x128xf32>
    %664 = vector.shape_cast %661 : vector<16x128xf32> to vector<1x1x16x128xf32>
    tpu.vector_store %arg5[%c0_627, %c7_628, %c0_629, %c0_630], %664 {strides = array<i32>} : memref<1x8x16x128xf32, #tpu.memory_space<vmem>>, vector<1x1x16x128xf32>,
    return
  }
  func.func @transform_0(%arg0: i32, %arg1: i32) -> (i32, i32, i32, i32) {
    %c0_i32 = arith.constant 0 : i32
    %c0_i32_0 = arith.constant 0 : i32
    %c0_i32_1 = arith.constant 0 : i32
    %c0_i32_2 = arith.constant 0 : i32
    return %arg0, %c0_i32, %c0_i32_0, %c0_i32_1 : i32, i32, i32, i32
  }
  func.func @transform_1(%arg0: i32, %arg1: i32) -> (i32, i32, i32) {
    %c0_i32 = arith.constant 0 : i32
    %c0_i32_0 = arith.constant 0 : i32
    %c0_i32_1 = arith.constant 0 : i32
    %c0_i32_2 = arith.constant 0 : i32
    return %c0_i32, %c0_i32_0, %c0_i32_1 : i32, i32, i32
  }
  func.func @transform_2(%arg0: i32, %arg1: i32) -> (i32, i32) {
    %c0_i32 = arith.constant 0 : i32
    %c0_i32_0 = arith.constant 0 : i32
    %c0_i32_1 = arith.constant 0 : i32
    return %c0_i32, %c0_i32_0 : i32, i32
  }
  func.func @transform_3(%arg0: i32, %arg1: i32) -> (i32, i32, i32, i32) {
    %c0_i32 = arith.constant 0 : i32
    %c0_i32_0 = arith.constant 0 : i32
    %c0_i32_1 = arith.constant 0 : i32
    return %arg0, %arg1, %c0_i32, %c0_i32_0 : i32, i32, i32, i32
  }
}

</mosaic_0001>

<bundles_post_ra>
// kernel: tpu_custom_call.1
= control target key start
LH: loop header
LB: loop body
LE: loop exit
PB: predicated region body
PF: predicated region fallthrough
CT: control target
= control target key end

     0   :  { %8 = vsyncpa [#allocation3], 0  ;;  %s4442_s0 = inlined_call_operand.vmem [shape: bf16[2,18,18,4], index: 0, kind: input, shape index: {}]   ;;  %s4443_s1 = inlined_call_operand.vmem [shape: bf16[9,4,128], index: 1, kind: input, shape index: {}]   ;;  %s4444_s2 = inlined_call_operand.vmem [shape: f32[1,128], index: 2, kind: input, shape index: {}]   ;;  %s4445_s3 = inlined_call_operand.hbm [shape: f32[2,16,16,128], index: 3, kind: output, shape index: {}]  }
   0x1   :  { %10 = vsyncpa [#allocation3 + $0x1], 0  ;;  %s3593_s12 = smov 0   ;;  %s3595_s13 = smov 0  }
   0x2   :  { %s3597_s14 = smov 0   ;;  %s3599_s15 = smov 0  }
   0x3   :  { %s3601_s16 = smov 0   ;;  %s3603_s17 = smov 0  }
   0x4   :  { %s3605_s18 = smov 0   ;;  %s3607_s19 = smov 0  }
   0x5 LB: > { %s2877_s20 = sadd.s32 4294967295, %s3569_s19   ;;  %s2878_s21 = sadd.s32 4294967294, %s3569_s19   ;;  %s3569_s19 = sphi %s3607_s19, %s16_s19   ;;  %s3565_s18 = sphi %s3605_s18, %s4454_s18   ;;  %s3561_s17 = sphi %s3603_s17, %s4453_s17   ;;  %s3557_s16 = sphi %s3601_s16, %s4452_s16   ;;  %s3553_s15 = sphi %s3599_s15, %s4451_s15   ;;  %s3549_s14 = sphi %s3597_s14, %s4450_s14   ;;  %s3545_s13 = sphi %s3595_s13, %s4449_s13   ;;  %s3541_s12 = sphi %s3593_s12, %s4448_s12  }
   0x6   : > { %s25_s22 = sadd.s32 1, %s3561_s17  ;;  %s28_s23 = sadd.s32 1, %s3565_s18 }
   0x7   : > { %p26_p0 = scmp.ge.s32.totalorder %s25_s22, 2  ;;  %p115_p1 = scmp.ne.s32.totalorder %s3549_s14, %s3545_s13 }
   0x8   : > { %p116_p2 = scmp.eq.s32.totalorder %s2877_s20, 3  ;;  %p121_p5 = scmp.ne.s32.totalorder %s3545_s13, %s3541_s12 }
   0x9   : > { %s4456_s22 = smov (%p26_p0, %s25_s22), 0  ;;  %s4458_s23 = smov (!%p26_p0, %s28_s23), %s3565_s18 }
   0xa   : > { %s101_s24 = ssub.s32 %s3561_s17, %s4456_s22  ;;  %p3644_p3 = por %p116_p2, %p115_p1 }
   0xb   : > { %p30_p4 = scmp.ge.s32.totalorder %s4458_s23, 2  ;;  %p122_p6 = scmp.eq.s32.totalorder %s2878_s21, 3 }
   0xc   : > { %p2881_p7 = scmp.ge.s32.totalorder %s3569_s19, 1  ;;  %p154_p9 = scmp.lt.s32.totalorder %s3569_s19, 5 }
   0xd   : > { %s4460_s23 = smov (%p30_p4, %s4458_s23), 0  ;;  %p3653_p8 = por %p122_p6, %p121_p5 }
   0xe   : > { %s100_s27 = ssub.s32 %s3565_s18, %s4460_s23  ;;  %s105_s28 = sadd.s32 1, %s3549_s14 }
   0xf   : > { %s102_s29 = sor.u32 %s101_s24, %s100_s27  ;;  %p155_p10 = pnand %p2881_p7, %p154_p9 }
  0x10   : > { %p103_p11 = scmp.eq.s32.totalorder %s102_s29, 0  ;;  %p178_p12 = scmp.lt.s32.totalorder (!%p155_p10), %s3557_s16, 1 }
  0x11   : > { %158 = sbr.rel (%p155_p10) target bundleno = 460 (0x1cc), region = 32  ;;  %s175_s7 = sand.u32 (!%p155_p10), 1, %s3545_s13  }
  0x12   : > { %s3662_s30 = scalar_select %p103_p11, %s3549_s14, %s105_s28  }
  0x13   : > { %s3250_s21 = smul.u32 (!%p155_p10), 96, %s3553_s15  ;;  %s2882_s20 = sshll.u32 (!%p155_p10), %s175_s7, 7 }
  0x14   : > { %s4135_s4 = scalar_lea.vmem (!%p155_p10), [#allocation2], %s2882_s20  ;;  %s3246_s9 = sshll.u32 (!%p155_p10), %s3557_s16, 5 }
  0x15   : > { %s2745_s5 = scalar_lea.sflag (!%p155_p10), [#allocation3], %s175_s7 }
  0x16   : > { %vm221_vm0 = vcmask 1041408   ;;  %v2896_v0 = vld [vmem:[%s4443_s1 + $0x6] sm:$0x3]  ;;  %v192_v1 = vld [vmem:[%s4443_s1] sm:$0x3]  ;;  %s179_s10 = scalar_select %p178_p12, %s3557_s16, 1 }
  0x17   : > { %v307_v2 = vsel %vm221_vm0, %v2896_v0, 0  ;;  %v242_v3 = vsel %vm221_vm0, %v192_v1, 0  ;;  %v2890_v4 = vld [vmem:[%s4443_s1 + $0x4] sm:$0x3]  ;;  %v2887_v6 = vld [vmem:[%s4443_s1 + $0x2] sm:$0x3] }
  0x18   : > { %316 = vmatpush.bf16.msra.mxu3 %v307_v2  ;;  %251 = vmatpush.bf16.msra.mxu1 %v242_v3  ;;  %v272_v5 = vsel %vm221_vm0, %v2890_v4, 0  ;;  %v223_v7 = vsel %vm221_vm0, %v2887_v6, 0  ;;  %v2914_v8 = vld [vmem:[%s4443_s1 + $0xc] sm:$0x3]  ;;  %s3363_s28 = smul.u32 216, %s179_s10  ;;  %vm217_vm1 = vcmask 31744  }
  0x19   : > { %281 = vmatpush.bf16.msra.mxu2 %v272_v5  ;;  %232 = vmatpush.bf16.msra.mxu0 %v223_v7  ;;  %v420_v9 = vsel %vm221_vm0, %v2914_v8, 0  ;;  %v2905_v10 = vld [vmem:[%s4443_s1 + $0x8] sm:$0x3]  ;;  %v2923_v11 = vld [vmem:[%s4443_s1 + $0xe] sm:$0x3]  ;;  %vm264_vm2 = vcmask 1046528  }
  0x1a   : > { %v354_v12 = vsel %vm221_vm0, %v2905_v10, 0  ;;  %v467_v13 = vsel %vm221_vm0, %v2923_v11, 0  ;;  %v2908_v14 = vld [vmem:[%s4443_s1 + $0xa] sm:$0x3]  ;;  %s182_s11 = scalar_lea.vmem %s4442_s0, %s3363_s28  ;;  %v2935_v16 = vld [vmem:[%s4443_s1 + $0x4] sm:$0x3] }
  0x1b   : > { %v385_v15 = vsel %vm221_vm0, %v2908_v14, 0  ;;  %s3705_s27 = scalar_lea.vmem %s182_s11, %s3250_s21  ;;  %v2931_v17 = vld [vmem:[%s4443_s1 + $0x2] sm:$0x3]  ;;  %v527_v21 = vld [vmem:[%s4443_s1] sm:$0x3]  ;;  %v601_v22 = vsel %vm221_vm0, %v2935_v16, 0 }
  0x1c   : > { %476 = vmatpush.bf16.msrb.mxu3 %v467_v13  ;;  %394 = vmatpush.bf16.msrb.mxu1 %v385_v15  ;;  %v3251_v18 = vld [vmem:[%s3705_s27 + $0xc] sm:$0xff]  ;;  %v3269_v19 = vld [vmem:[%s3705_s27] sm:$0xff]   ;;  %v554_v23 = vsel %vm221_vm0, %v2931_v17, 0  ;;  %v193_v26 = vld [vmem:[%s3705_s27 + $0x8] sm:$0x1]  ;;  %v573_v44 = vsel %vm221_vm0, %v527_v21, 0 }
  0x1d   : > { %429 = vmatpush.bf16.msrb.mxu2 %v420_v9  ;;  %363 = vmatpush.bf16.msrb.mxu0 %v354_v12  ;;  %v3316_v20 = vld [vmem:[%s3705_s27] sm:$0xf0]  ;;  %v206_v24 = vshrl.u32 %v3269_v19, 16  ;;  %v208_v25 = vshll.u32 %v3269_v19, 16  ;;  %v3317_v27 = vld [vmem:[%s3705_s27] sm:$0xe]  ;;  %v201_v28 = vunpack.c.l.b16 %v193_v26 }
  0x1e   : > { %2889 = vmatmul.msk.bf16.vlgmr.msra.gmra.mxu1 %vm217_vm1, %v3269_v19  ;;  %2901 = vmatmul.msk.bf16.vlgmr.msra.gmra.mxu3 %vm217_vm1, %v3251_v18  ;;  %v3318_v29 = vor.u32 %v3317_v27, %v3316_v20  ;;  %v3723_v30 = vld [vmem:[%s3705_s27 + $0x18] sm:$0xff]   ;;  %v2922_v31 = vld [vmem:[%s3705_s27 + $0x20] sm:$0x1]  ;;  %v2903_v32 = vld [vmem:[%s3705_s27 + $0xc] sm:$0xff]   ;;  %vm204_vm3 = vsmask.f32 7424 }
  0x1f   : > { %v3527_v33 = vld [vmem:[%s3705_s27 + $0xc] sm:$0xf0]  ;;  %v210_v34 = vrot.slane %v208_v25, 1  ;;  %v448_v35 = vunpack.c.l.b16 %v2922_v31  ;;  %v454_v36 = vshll.u32 %v3723_v30, 16  ;;  %v2904_v37 = vld [vmem:[%s3705_s27 + $0x14] sm:$0x1]  ;;  %v203_v38 = vpack.c.b16 %v201_v28, %v201_v28 }
  0x20   : > { %563 = vmatpush.bf16.msra.mxu1 %v554_v23  ;;  %610 = vmatpush.bf16.msra.mxu3 %v601_v22  ;;  %v265_v39 = vrot.slane %v3318_v29, 1  ;;  %v335_v40 = vunpack.c.l.b16 %v2904_v37  ;;  %v3528_v41 = vld [vmem:[%s3705_s27 + $0xc] sm:$0xe]  ;;  %v2926_v48 = vld [vmem:[%s4443_s1 + $0x10] sm:$0x3]  ;;  %v452_v51 = vshrl.u32 %v3723_v30, 16 }
  0x21   : > { %v211_v42 = vor.u32 %v210_v34, %v206_v24  ;;  %v3731_v43 = vpack.c.b16 %v448_v35, %v448_v35  ;;  %v266_v45 = vrot.slane %v203_v38, 1  ;;  %v213_v46 = vshll.u32 %v203_v38, 16  ;;  %v3738_v49 = vld [vmem:[%s3705_s27 + $0xc] sm:$0xff]   ;;  %v2930_v63 = vld [vmem:[%s3705_s27 + $0x14] sm:$0x1]  ;;  %v3252_v17 = vld [vmem:[%s3705_s27 + $0x18] sm:$0xff] }
  0x22   : > { %v337_v47 = vpack.c.b16 %v335_v40, %v335_v40  ;;  %v3439_v50 = vld [vmem:[%s3705_s27 + $0xc] sm:$0xf0]  ;;  %v456_v52 = vrot.slane %v454_v36, 1  ;;  %v3529_v54 = vor.u32 %v3528_v41, %v3527_v33  ;;  %v498_v57 = vsel %vm221_vm0, %v2926_v48, 0  ;;  %v2957_v1 = vld [vmem:[%s4443_s1 + $0xc] sm:$0x3] }
  0x23   : > { %v459_v53 = vshll.u32 %v3731_v43, 16  ;;  %v267_v55 = vsel %vm264_vm2, %v265_v39, %v266_v45  ;;  %v215_v56 = vrot.slane %v213_v46, 1  ;;  %v341_v0 = vshll.u32 %v2903_v32, 16  ;;  %v2948_v2 = vld [vmem:[%s4443_s1 + $0x8] sm:$0x3]  ;;  %s2760_s28 = sshll.u32 %s4135_s4, 4  ;;  %s2761_s28 = int_to_ptr.vmem [resolvable:$true] %s2760_s28 }
  0x24   : > { %2891 = vmatmul.msk.bf16.vlgmr.msra.gmra.mxu2 %vm217_vm1, %v267_v55  ;;  %v378_v59 = vrot.slane %v3529_v54, 1  ;;  %v379_v60 = vrot.slane %v337_v47, 1  ;;  %v3748_v61 = vor.u32 %v456_v52, %v452_v51  ;;  %v535_v4 = vunpack.c.l.b16 %v2930_v63  ;;  %v3440_v9 = vld [vmem:[%s3705_s27 + $0xc] sm:$0xe]  ;;  %v2951_v16 = vld [vmem:[%s4443_s1 + $0xa] sm:$0x3] }
  0x25   : > { %v216_v58 = vsel %vm204_vm3, %v211_v42, %v215_v56  ;;  %582 = vmatpush.bf16.msra.mxu2 %v573_v44  ;;  %v461_v62 = vrot.slane %v459_v53, 1  ;;  %v346_v6 = vshll.u32 %v337_v47, 16  ;;  %v339_v7 = vshrl.u32 %v2903_v32, 16  ;;  %v2939_v21 = vld [vmem:[%s4443_s1 + $0x6] sm:$0x3] }
  0x26   : > { %2888 = vmatmul.msk.bf16.vlgmr.msra.gmra.mxu0 %vm217_vm1, %v216_v58  ;;  %v380_v3 = vsel %vm264_vm2, %v378_v59, %v379_v60  ;;  %v343_v8 = vrot.slane %v341_v0, 1  ;;  %v741_v10 = vsel %vm221_vm0, %v2957_v1, 0  ;;  %v677_v11 = vsel %vm221_vm0, %v2948_v2, 0  ;;  %v2947_v31 = vld [vmem:[%s3705_s27 + $0x20] sm:$0x1]  ;;  %v2964_v59 = vld [vmem:[%s3705_s27 + $0x24] sm:$0xff]  }
  0x27   : > { %507 = vmatpush.bf16.msra.mxu0 %v498_v57  ;;  %v462_v5 = vsel %vm204_vm3, %v3748_v61, %v461_v62  ;;  %v537_v12 = vpack.c.b16 %v535_v4, %v535_v4  ;;  %v541_v13 = vshll.u32 %v3738_v49, 16  ;;  %v348_v15 = vrot.slane %v346_v6, 1  ;;  %v2969_v32 = vld [vmem:[%s4443_s1 + $0x10] sm:$0x3]  ;;  %v3320_v33 = vld [vmem:[%s3705_s27 + $0x18] sm:$0xf0] }
  0x28   : > { %v344_v14 = vor.u32 %v343_v8, %v339_v7  ;;  %v539_v18 = vshrl.u32 %v3738_v49, 16  ;;  %v3441_v22 = vor.u32 %v3440_v9, %v3439_v50  ;;  %v707_v23 = vsel %vm221_vm0, %v2951_v16, 0  ;;  %v3321_v34 = vld [vmem:[%s3705_s27 + $0x18] sm:$0xe]  ;;  %v844_v35 = vld [vmem:[%s4443_s1] sm:$0x3] }
  0x29   : > { %v543_v19 = vrot.slane %v541_v13, 1  ;;  %v546_v20 = vshll.u32 %v537_v12, 16  ;;  %v631_v25 = vsel %vm221_vm0, %v2939_v21, 0  ;;  %v595_v29 = vrot.slane %v537_v12, 1  ;;  %v2976_v46 = vld [vmem:[%s4443_s1 + $0x2] sm:$0x3] }
  0x2a   : > { %v349_v24 = vsel %vm204_vm3, %v344_v14, %v348_v15  ;;  %v594_v28 = vrot.slane %v3441_v22, 1  ;;  %v658_v37 = vunpack.c.l.b16 %v2947_v31  ;;  %v817_v39 = vsel %vm221_vm0, %v2969_v32, 0  ;;  %v2966_v48 = vld [vmem:[%s4443_s1 + $0xe] sm:$0x3]  ;;  %v3324_v53 = vld [vmem:[%s3705_s27 + $0x18] sm:$0xf0] }
  0x2b   : > { %v544_v26 = vor.u32 %v543_v19, %v539_v18  ;;  %v548_v27 = vrot.slane %v546_v20, 1  ;;  %v3322_v40 = vor.u32 %v3321_v34, %v3320_v33  ;;  %v890_v41 = vsel %vm221_vm0, %v844_v35, 0  ;;  %v3325_v54 = vld [vmem:[%s3705_s27 + $0x18] sm:$0xe]  ;;  %v2984_v55 = vld [vmem:[%s4443_s1 + $0x6] sm:$0x3] }
  0x2c   : > { %v596_v38 = vsel %vm264_vm2, %v594_v28, %v595_v29  ;;  %v660_v42 = vpack.c.b16 %v658_v37, %v658_v37  ;;  %v492_v45 = vrot.slane %v3731_v43, 1  ;;  %v871_v50 = vsel %vm221_vm0, %v2976_v46, 0  ;;  %v3254_v57 = vld [vmem:[%s3705_s27 + $0x24] sm:$0xff]  ;;  %v2965_v62 = vld [vmem:[%s3705_s27 + $0x2c] sm:$0x1]  ;;  %v3253_v12 = vld [vmem:[%s3705_s27 + $0x18] sm:$0xff] }
  0x2d   : > { %v549_v36 = vsel %vm204_vm3, %v544_v26, %v548_v27  ;;  %v491_v44 = vrot.slane %v3322_v40, 1  ;;  %v787_v43 = vsel %vm221_vm0, %v2966_v48, 0  ;;  %v3326_v56 = vor.u32 %v3325_v54, %v3324_v53  ;;  %v3530_v60 = vld [vmem:[%s3705_s27 + $0x24] sm:$0xf0]  ;;  %v3531_v63 = vld [vmem:[%s3705_s27 + $0x24] sm:$0xe] }
  0x2e   : > { %2909 = vmatmul.msk.bf16.vlgmr.msrb.gmra.mxu1 %vm217_vm1, %v380_v3  ;;  %2924 = vmatmul.msk.bf16.vlgmr.msrb.gmra.mxu3 %vm217_vm1, %v462_v5  ;;  %v669_v47 = vshll.u32 %v660_v42, 16  ;;  %v948_v0 = vsel %vm221_vm0, %v2984_v55, 0  ;;  %v701_v3 = vrot.slane %v660_v42, 1  ;;  %v768_v4 = vunpack.c.l.b16 %v2965_v62  ;;  %v2975_v5 = vld [vmem:[%s3705_s27 + $0x20] sm:$0x1]  ;;  %v2991_v27 = vld [vmem:[%s3705_s27 + $0x24] sm:$0xff]  }
  0x2f   : > { %686 = vmatpush.bf16.msrb.mxu1 %v677_v11  ;;  %750 = vmatpush.bf16.msrb.mxu3 %v741_v10  ;;  %v493_v51 = vsel %vm264_vm2, %v491_v44, %v492_v45  ;;  %v700_v2 = vrot.slane %v3326_v56, 1  ;;  %v2993_v6 = vld [vmem:[%s4443_s1 + $0x8] sm:$0x3]  ;;  %v3532_v9 = vor.u32 %v3531_v63, %v3530_v60  ;;  %v852_v10 = vunpack.c.l.b16 %v2975_v5  ;;  %v2980_v11 = vld [vmem:[%s4443_s1 + $0x4] sm:$0x3]  ;;  %v3890_v62 = vld [vmem:[%s3705_s27 + $0x30] sm:$0xff]  }
  0x30   : > { %v671_v52 = vrot.slane %v669_v47, 1  ;;  %v770_v8 = vpack.c.b16 %v768_v4, %v768_v4  ;;  %v994_v13 = vsel %vm221_vm0, %v2993_v6, 0  ;;  %v918_v14 = vsel %vm221_vm0, %v2980_v11, 0  ;;  %v3011_v19 = vld [vmem:[%s4443_s1 + $0xe] sm:$0x3]  ;;  %v3869_v44 = vld [vmem:[%s3705_s27 + $0x24] sm:$0xff]  }
  0x31   : > { %v702_v7 = vsel %vm264_vm2, %v700_v2, %v701_v3  ;;  %v810_v15 = vrot.slane %v3532_v9, 1  ;;  %v774_v18 = vshll.u32 %v2964_v59, 16  ;;  %v3021_v20 = vld [vmem:[%s4443_s1 + $0x2] sm:$0x3]  ;;  %v1104_v26 = vsel %vm221_vm0, %v3011_v19, 0 }
  0x32   : > { %v672_v58 = vsel %vm204_vm3, %v3748_v61, %v671_v52  ;;  %v811_v16 = vrot.slane %v770_v8, 1  ;;  %v3442_v28 = vld [vmem:[%s3705_s27 + $0x24] sm:$0xf0]  ;;  %v2992_v29 = vld [vmem:[%s3705_s27 + $0x2c] sm:$0x1]  ;;  %v1188_v32 = vsel %vm221_vm0, %v3021_v20, 0 }
  0x33   : > { %v3443_v31 = vld [vmem:[%s3705_s27 + $0x24] sm:$0xe]  ;;  %v975_v34 = vunpack.c.l.b16 %v2992_v29  ;;  %v3014_v37 = vld [vmem:[%s4443_s1 + $0x10] sm:$0x3]  ;;  %v3872_v45 = vld [vmem:[%s3705_s27 + $0x24] sm:$0xf0] }
  0x34   : > { %2919 = vmatmul.msk.bf16.vlgmr.msrb.gmra.mxu2 %vm217_vm1, %v3252_v17  ;;  %v3838_v17 = vpack.c.b16 %v852_v10, %v852_v10  ;;  %v812_v21 = vsel %vm264_vm2, %v810_v15, %v811_v16  ;;  %v3444_v40 = vor.u32 %v3443_v31, %v3442_v28  ;;  %v981_v46 = vshll.u32 %v2991_v27, 16  ;;  %v3025_v52 = vld [vmem:[%s4443_s1 + $0x4] sm:$0x3]  ;;  %v3328_v53 = vld [vmem:[%s3705_s27 + $0x18] sm:$0xf0] }
  0x35   : > { %716 = vmatpush.bf16.msrb.mxu2 %v707_v23  ;;  %v772_v23 = vshrl.u32 %v2964_v59, 16  ;;  %v3329_v54 = vld [vmem:[%s3705_s27 + $0x18] sm:$0xe]  ;;  %v3038_v55 = vld [vmem:[%s4443_s1 + $0x8] sm:$0x3]  ;;  %v979_v56 = vshrl.u32 %v2991_v27, 16 }
  0x36   : > { %2906 = vmatmul.msk.bf16.vlgmr.msrb.gmra.mxu0 %vm217_vm1, %v349_v24  ;;  %v863_v22 = vshll.u32 %v3838_v17, 16  ;;  %v776_v24 = vrot.slane %v774_v18, 1  ;;  %v1017_v47 = vrot.slane %v3444_v40, 1  ;;  %v1235_v63 = vsel %vm221_vm0, %v3025_v52, 0  ;;  %v3029_v10 = vld [vmem:[%s4443_s1 + $0x6] sm:$0x3] }
  0x37   : > { %640 = vmatpush.bf16.msrb.mxu0 %v631_v25  ;;  %v779_v25 = vshll.u32 %v770_v8, 16  ;;  %v1091_v5 = vshll.u32 %v3890_v62, 16  ;;  %v912_v9 = vrot.slane %v3838_v17, 1  ;;  %v1161_v15 = vld [vmem:[%s4443_s1] sm:$0x3]  ;;  %v1173_v16 = vshrl.u32 %v3869_v44, 16 }
  0x38   : > { %v865_v33 = vrot.slane %v863_v22, 1  ;;  %v777_v35 = vor.u32 %v776_v24, %v772_v23  ;;  %v1265_v19 = vsel %vm221_vm0, %v3029_v10, 0  ;;  %v3333_v27 = vld [vmem:[%s3705_s27 + $0x30] sm:$0xe]  ;;  %v3037_v28 = vld [vmem:[%s3705_s27 + $0x38] sm:$0x1] }
  0x39   : > { %v3047_v29 = vld [vmem:[%s4443_s1 + $0xc] sm:$0x3]  ;;  %v3059_v31 = vld [vmem:[%s4443_s1 + $0x10] sm:$0x3] }
  0x3e   : > { %2932 = vmatmul.msk.bf16.vlgmr.msra.gmra.mxu1 %vm217_vm1, %v549_v36  ;;  %2936 = vmatmul.msk.bf16.vlgmr.msra.gmra.mxu3 %vm217_vm1, %v596_v38  ;;  %v781_v36 = vrot.slane %v779_v25, 1  ;;  %v866_v38 = vsel %vm204_vm3, %v3748_v61, %v865_v33 }
  0x3f   : > { %826 = vmatpush.bf16.msra.mxu1 %v817_v39  ;;  %899 = vmatpush.bf16.msra.mxu3 %v890_v41  ;;  %v3002_v39 = vld [vmem:[%s4443_s1 + $0xc] sm:$0x3]  ;;  %v1134_v41 = vsel %vm221_vm0, %v3014_v37, 0  ;;  %v1375_v37 = vsel %vm221_vm0, %v3047_v29, 0 }
  0x40   : > { %v782_v42 = vsel %vm204_vm3, %v777_v35, %v781_v36  ;;  %v1058_v61 = vsel %vm221_vm0, %v3002_v39, 0  ;;  %v1292_v35 = vunpack.c.l.b16 %v3037_v28  ;;  %v3446_v36 = vld [vmem:[%s3705_s27 + $0x24] sm:$0xe]  ;;  %v3092_v28 = vld [vmem:[%s4443_s1 + $0xc] sm:$0x3] }
  0x42   : > { %v3935_v40 = vpack.c.b16 %v1292_v35, %v1292_v35  ;;  %v1692_v35 = vsel %vm221_vm0, %v3092_v28, 0 }
  0x44   : > { %2933 = vmatmul.msk.bf16.vlgmr.msra.gmra.mxu2 %vm217_vm1, %v3738_v49  ;;  %v2996_v49 = vld [vmem:[%s4443_s1 + $0xa] sm:$0x3] }
  0x45   : > { %880 = vmatpush.bf16.msra.mxu2 %v871_v50  ;;  %v1024_v1 = vsel %vm221_vm0, %v2996_v49, 0  ;;  %v3010_v50 = vld [vmem:[%s3705_s27 + $0x38] sm:$0x1]  ;;  %v983_v49 = vrot.slane %v981_v46, 1  ;;  %v3041_v46 = vld [vmem:[%s4443_s1 + $0xa] sm:$0x3] }
  0x46   : > { %2927 = vmatmul.msk.bf16.vlgmr.msra.gmra.mxu0 %vm217_vm1, %v493_v51  ;;  %v3255_v51 = vld [vmem:[%s3705_s27 + $0x24] sm:$0xff] }
  0x47   : > { %796 = vmatpush.bf16.msra.mxu0 %v787_v43  ;;  %v3020_v43 = vld [vmem:[%s3705_s27 + $0x2c] sm:$0x1]  ;;  %v984_v2 = vor.u32 %v983_v49, %v979_v56 }
  0x48   : > { %v1169_v60 = vunpack.c.l.b16 %v3020_v43 }
  0x4a   : > { %v3897_v6 = vpack.c.b16 %v1169_v60, %v1169_v60  ;;  %v3449_v60 = vld [vmem:[%s3705_s27 + $0x3c] sm:$0xe] }
  0x4c   : > { %v1180_v18 = vshll.u32 %v3897_v6, 16 }
  0x4e   : > { %2949 = vmatmul.msk.bf16.vlgmr.msrb.gmra.mxu1 %vm217_vm1, %v672_v58  ;;  %2962 = vmatmul.msk.bf16.vlgmr.msrb.gmra.mxu3 %vm217_vm1, %v3254_v57  ;;  %v1085_v58 = vunpack.c.l.b16 %v3010_v50  ;;  %v1182_v25 = vrot.slane %v1180_v18, 1 }
  0x4f   : > { %957 = vmatpush.bf16.msrb.mxu1 %v948_v0  ;;  %1033 = vmatpush.bf16.msrb.mxu3 %v1024_v1  ;;  %v3330_v0 = vor.u32 %v3329_v54, %v3328_v53  ;;  %v1311_v1 = vsel %vm221_vm0, %v3038_v55, 0  ;;  %v3074_v53 = vld [vmem:[%s4443_s1 + $0x6] sm:$0x3]  ;;  %v1478_v54 = vld [vmem:[%s4443_s1] sm:$0x3] }
  0x50   : > { %v1087_v4 = vpack.c.b16 %v1085_v58, %v1085_v58  ;;  %v1524_v49 = vsel %vm221_vm0, %v1478_v54, 0  ;;  %v3448_v58 = vld [vmem:[%s3705_s27 + $0x3c] sm:$0xf0]  ;;  %v3534_v54 = vld [vmem:[%s3705_s27 + $0x3c] sm:$0xe] }
  0x51   : > { %v911_v8 = vrot.slane %v3330_v0, 1 }
  0x53   : > { %v913_v20 = vsel %vm264_vm2, %v911_v8, %v912_v9 }
  0x54   : > { %2952 = vmatmul.msk.bf16.vlgmr.msrb.gmra.mxu2 %vm217_vm1, %v702_v7  ;;  %v1175_v7 = vshll.u32 %v3869_v44, 16 }
  0x55   : > { %1003 = vmatpush.bf16.msrb.mxu2 %v994_v13  ;;  %v1093_v13 = vrot.slane %v1091_v5, 1  ;;  %v3450_v5 = vor.u32 %v3449_v60, %v3448_v58  ;;  %v3111_v58 = vld [vmem:[%s4443_s1 + $0x2] sm:$0x3] }
  0x56   : > { %2944 = vmatmul.msk.bf16.vlgmr.msrb.gmra.mxu0 %vm217_vm1, %v3253_v12  ;;  %v1089_v12 = vshrl.u32 %v3890_v62, 16  ;;  %v1177_v17 = vrot.slane %v1175_v7, 1  ;;  %v1822_v60 = vsel %vm221_vm0, %v3111_v58, 0  ;;  %v3260_v58 = vld [vmem:[%s3705_s27 + $0x48] sm:$0xff] }
  0x57   : > { %927 = vmatpush.bf16.msrb.mxu0 %v918_v14  ;;  %v1096_v14 = vshll.u32 %v1087_v4, 16  ;;  %v1444_v9 = vrot.slane %v3450_v5, 1 }
  0x58   : > { %v3915_v22 = vor.u32 %v1093_v13, %v1089_v12  ;;  %v1178_v24 = vor.u32 %v1177_v17, %v1173_v16  ;;  %v3336_v12 = vld [vmem:[%s3705_s27 + $0x30] sm:$0xf0]  ;;  %v3337_v13 = vld [vmem:[%s3705_s27 + $0x30] sm:$0xe] }
  0x59   : > { %v1098_v23 = vrot.slane %v1096_v14, 1  ;;  %v3101_v14 = vld [vmem:[%s4443_s1 + $0xe] sm:$0x3] }
  0x5e   : > { %2970 = vmatmul.msk.bf16.vlgmr.msra.gmra.mxu1 %vm217_vm1, %v812_v21  ;;  %2978 = vmatmul.msk.bf16.vlgmr.msra.gmra.mxu3 %vm217_vm1, %v3723_v30  ;;  %v977_v30 = vpack.c.b16 %v975_v34, %v975_v34  ;;  %v1207_v21 = vsel %vm221_vm0, %v1161_v15, 0  ;;  %v1183_v34 = vsel %vm204_vm3, %v1178_v24, %v1182_v25  ;;  %v3086_v15 = vld [vmem:[%s4443_s1 + $0xa] sm:$0x3] }
  0x5f   : > { %1113 = vmatpush.bf16.msra.mxu1 %v1104_v26  ;;  %1197 = vmatpush.bf16.msra.mxu3 %v1188_v32  ;;  %v3332_v26 = vld [vmem:[%s3705_s27 + $0x30] sm:$0xf0]  ;;  %v1099_v32 = vsel %vm204_vm3, %v3915_v22, %v1098_v23  ;;  %v1738_v23 = vsel %vm221_vm0, %v3101_v14, 0 }
  0x60   : > { %v1018_v48 = vrot.slane %v977_v30, 1  ;;  %v986_v57 = vshll.u32 %v977_v30, 16  ;;  %v3334_v33 = vor.u32 %v3333_v27, %v3332_v26  ;;  %v1128_v30 = vrot.slane %v1087_v4, 1 }
  0x61   : > { %v1335_v27 = vrot.slane %v3935_v40, 1 }
  0x62   : > { %v1019_v59 = vsel %vm264_vm2, %v1017_v47, %v1018_v48  ;;  %v988_v3 = vrot.slane %v986_v57, 1  ;;  %v1127_v39 = vrot.slane %v3334_v33, 1  ;;  %v3256_v47 = vld [vmem:[%s3705_s27 + $0x30] sm:$0xff]  ;;  %v1303_v48 = vshll.u32 %v3935_v40, 16  ;;  %v3054_v57 = vld [vmem:[%s3705_s27 + $0x3c] sm:$0xff]  }
  0x63   : > { %v1408_v8 = vshll.u32 %v3054_v57, 16  ;;  %v1406_v17 = vshrl.u32 %v3054_v57, 16  ;;  %v3341_v40 = vld [vmem:[%s3705_s27 + $0x30] sm:$0xe] }
  0x64   : > { %2977 = vmatmul.msk.bf16.vlgmr.msra.gmra.mxu2 %vm217_vm1, %v866_v38  ;;  %v989_v11 = vsel %vm204_vm3, %v984_v2, %v988_v3  ;;  %v1451_v38 = vsel %vm221_vm0, %v3059_v31, 0  ;;  %v1305_v52 = vrot.slane %v1303_v48, 1  ;;  %v3257_v2 = vld [vmem:[%s3705_s27 + $0x30] sm:$0xff]  ;;  %v3066_v3 = vld [vmem:[%s4443_s1 + $0x2] sm:$0x3] }
  0x65   : > { %1143 = vmatpush.bf16.msra.mxu2 %v1134_v41  ;;  %v3056_v41 = vld [vmem:[%s4443_s1 + $0xe] sm:$0x3]  ;;  %v1505_v7 = vsel %vm221_vm0, %v3066_v3, 0  ;;  %v1410_v18 = vrot.slane %v1408_v8, 1  ;;  %v3065_v31 = vld [vmem:[%s3705_s27 + $0x38] sm:$0x1] }
  0x66   : > { %2967 = vmatmul.msk.bf16.vlgmr.msra.gmra.mxu0 %vm217_vm1, %v782_v42  ;;  %v1129_v42 = vsel %vm264_vm2, %v1127_v39, %v1128_v30  ;;  %v1421_v50 = vsel %vm221_vm0, %v3056_v41, 0  ;;  %v1306_v56 = vsel %vm204_vm3, %v3915_v22, %v1305_v52  ;;  %v3340_v30 = vld [vmem:[%s3705_s27 + $0x30] sm:$0xf0]  ;;  %v3533_v52 = vld [vmem:[%s3705_s27 + $0x3c] sm:$0xf0] }
  0x67   : > { %1067 = vmatpush.bf16.msra.mxu0 %v1058_v61  ;;  %v3447_v61 = vor.u32 %v3446_v36, %v3872_v45  ;;  %v1229_v45 = vrot.slane %v3897_v6, 1  ;;  %v1411_v24 = vor.u32 %v1410_v18, %v1406_v17  ;;  %v4059_v17 = vld [vmem:[%s3705_s27 + $0x3c] sm:$0xff]  }
  0x68   : > { %v4062_v18 = vld [vmem:[%s3705_s27 + $0x3c] sm:$0xf0] }
  0x69   : > { %v1228_v43 = vrot.slane %v3447_v61, 1  ;;  %v3100_v61 = vld [vmem:[%s3705_s27 + $0x50] sm:$0x1] }
  0x6b   : > { %v1230_v55 = vsel %vm264_vm2, %v1228_v43, %v1229_v45  ;;  %v1719_v43 = vunpack.c.l.b16 %v3100_v61  ;;  %v4025_v45 = vld [vmem:[%s3705_s27 + $0x3c] sm:$0xff]  }
  0x6e   : > { %2989 = vmatmul.msk.bf16.vlgmr.msrb.gmra.mxu1 %vm217_vm1, %v3255_v51  ;;  %2997 = vmatmul.msk.bf16.vlgmr.msrb.gmra.mxu3 %vm217_vm1, %v1019_v59  ;;  %v1341_v51 = vsel %vm221_vm0, %v3041_v46, 0  ;;  %v3055_v59 = vld [vmem:[%s3705_s27 + $0x44] sm:$0x1] }
  0x6f   : > { %1244 = vmatpush.bf16.msrb.mxu1 %v1235_v63  ;;  %1320 = vmatpush.bf16.msrb.mxu3 %v1311_v1  ;;  %v1582_v63 = vsel %vm221_vm0, %v3074_v53, 0  ;;  %v1402_v0 = vunpack.c.l.b16 %v3055_v59  ;;  %v3070_v1 = vld [vmem:[%s4443_s1 + $0x4] sm:$0x3] }
  0x70   : > { %v1552_v6 = vsel %vm221_vm0, %v3070_v1, 0  ;;  %v3082_v53 = vld [vmem:[%s3705_s27 + $0x44] sm:$0x1] }
  0x71   : > { %v1404_v4 = vpack.c.b16 %v1402_v0, %v1402_v0  ;;  %v1609_v0 = vunpack.c.l.b16 %v3082_v53 }
  0x73   : > { %v1445_v10 = vrot.slane %v1404_v4, 1 }
  0x74   : > { %2994 = vmatmul.msk.bf16.vlgmr.msrb.gmra.mxu2 %vm217_vm1, %v989_v11  ;;  %v3258_v11 = vld [vmem:[%s3705_s27 + $0x3c] sm:$0xff] }
  0x75   : > { %1274 = vmatpush.bf16.msrb.mxu2 %v1265_v19  ;;  %v1413_v19 = vshll.u32 %v1404_v4, 16 }
  0x76   : > { %2981 = vmatmul.msk.bf16.vlgmr.msrb.gmra.mxu0 %vm217_vm1, %v913_v20  ;;  %v1658_v20 = vsel %vm221_vm0, %v3086_v15, 0 }
  0x77   : > { %1216 = vmatpush.bf16.msrb.mxu0 %v1207_v21  ;;  %v3338_v21 = vor.u32 %v3337_v13, %v3336_v12  ;;  %v1415_v25 = vrot.slane %v1413_v19, 1  ;;  %v3104_v12 = vld [vmem:[%s4443_s1 + $0x10] sm:$0x3] }
  0x79   : > { %v1334_v26 = vrot.slane %v3338_v21, 1  ;;  %v1768_v21 = vsel %vm221_vm0, %v3104_v12, 0 }
  0x7e   : > { %3012 = vmatmul.msk.bf16.vlgmr.msra.gmra.mxu1 %vm217_vm1, %v1099_v32  ;;  %3022 = vmatmul.msk.bf16.vlgmr.msra.gmra.mxu3 %vm217_vm1, %v1183_v34  ;;  %v1416_v32 = vsel %vm204_vm3, %v1411_v24, %v1415_v25  ;;  %v3083_v34 = vld [vmem:[%s4443_s1 + $0x8] sm:$0x3] }
  0x7f   : > { %1384 = vmatpush.bf16.msra.mxu1 %v1375_v37  ;;  %1460 = vmatpush.bf16.msra.mxu3 %v1451_v38  ;;  %v1336_v37 = vsel %vm264_vm2, %v1334_v26, %v1335_v27  ;;  %v1486_v38 = vunpack.c.l.b16 %v3065_v31  ;;  %v1628_v39 = vsel %vm221_vm0, %v3083_v34, 0  ;;  %v3110_v31 = vld [vmem:[%s3705_s27 + $0x44] sm:$0x1] }
  0x84   : > { %3015 = vmatmul.msk.bf16.vlgmr.msra.gmra.mxu2 %vm217_vm1, %v1129_v42  ;;  %v1488_v42 = vpack.c.b16 %v1486_v38, %v1486_v38  ;;  %v1803_v38 = vunpack.c.l.b16 %v3110_v31 }
  0x85   : > { %1430 = vmatpush.bf16.msra.mxu2 %v1421_v50  ;;  %v3259_v50 = vld [vmem:[%s3705_s27 + $0x3c] sm:$0xff] }
  0x86   : > { %3007 = vmatmul.msk.bf16.vlgmr.msra.gmra.mxu0 %vm217_vm1, %v3256_v47  ;;  %v3342_v47 = vor.u32 %v3341_v40, %v3340_v30 }
  0x87   : > { %1350 = vmatpush.bf16.msra.mxu0 %v1341_v51  ;;  %v3115_v51 = vld [vmem:[%s4443_s1 + $0x4] sm:$0x3] }
  0x88   : > { %v1869_v57 = vsel %vm221_vm0, %v3115_v51, 0  ;;  %v1545_v59 = vrot.slane %v3342_v47, 1 }
  0x8e   : > { %3026 = vmatmul.msk.bf16.vlgmr.msrb.gmra.mxu1 %vm217_vm1, %v1230_v55  ;;  %3039 = vmatmul.msk.bf16.vlgmr.msrb.gmra.mxu3 %vm217_vm1, %v1306_v56  ;;  %v1497_v56 = vshll.u32 %v1488_v42, 16 }
  0x8f   : > { %1533 = vmatpush.bf16.msrb.mxu1 %v1524_v49  ;;  %1591 = vmatpush.bf16.msrb.mxu3 %v1582_v63  ;;  %v4031_v49 = vld [vmem:[%s3705_s27 + $0x48] sm:$0xff]   ;;  %v1546_v63 = vrot.slane %v1488_v42, 1  ;;  %v1613_v42 = vshrl.u32 %v4025_v45, 16 }
  0x90   : > { %v1725_v3 = vshll.u32 %v4031_v49, 16  ;;  %v1499_v5 = vrot.slane %v1497_v56, 1  ;;  %v1723_v13 = vshrl.u32 %v4031_v49, 16 }
  0x91   : > { %v1547_v8 = vsel %vm264_vm2, %v1545_v59, %v1546_v63 }
  0x92   : > { %v1727_v14 = vrot.slane %v1725_v3, 1 }
  0x94   : > { %3034 = vmatmul.msk.bf16.vlgmr.msrb.gmra.mxu2 %vm217_vm1, %v3257_v2  ;;  %v4041_v2 = vpack.c.b16 %v1719_v43, %v1719_v43  ;;  %v4071_v27 = vor.u32 %v1727_v14, %v1723_v13 }
  0x95   : > { %1561 = vmatpush.bf16.msrb.mxu2 %v1552_v6 }
  0x96   : > { %3023 = vmatmul.msk.bf16.vlgmr.msrb.gmra.mxu0 %vm217_vm1, %v3869_v44  ;;  %v1446_v44 = vsel %vm264_vm2, %v1444_v9, %v1445_v10  ;;  %v1611_v10 = vpack.c.b16 %v1609_v0, %v1609_v0  ;;  %v1730_v15 = vshll.u32 %v4041_v2, 16 }
  0x97   : > { %1514 = vmatpush.bf16.msrb.mxu0 %v1505_v7 }
  0x98   : > { %v1652_v24 = vrot.slane %v1611_v10, 1  ;;  %v1732_v28 = vrot.slane %v1730_v15, 1  ;;  %v1620_v47 = vshll.u32 %v1611_v10, 16 }
  0x9a   : > { %v1733_v30 = vsel %vm204_vm3, %v4071_v27, %v1732_v28  ;;  %v1622_v56 = vrot.slane %v1620_v47, 1  ;;  %v2112_v28 = vld [vmem:[%s4443_s1] sm:$0x3] }
  0x9b   : > { %v253_v16 = vpop.f32.mrf.mxu1 }
  0x9e   : > { %3052 = vmatmul.msk.bf16.vlgmr.msra.gmra.mxu1 %vm217_vm1, %v3258_v11  ;;  %3060 = vmatmul.msk.bf16.vlgmr.msra.gmra.mxu3 %vm217_vm1, %v1446_v44  ;;  %v3535_v11 = vor.u32 %v3534_v54, %v3533_v52  ;;  %v1500_v44 = vsel %vm204_vm3, %v3915_v22, %v1499_v5  ;;  %v1615_v22 = vshll.u32 %v4025_v45, 16  ;;  %v1809_v52 = vshll.u32 %v4059_v17, 16  ;;  %v4115_v5 = vld [vmem:[%s4444_s2] ss:$0 sm:$0xff] }
  0x9f   : > { %1667 = vmatpush.bf16.msra.mxu1 %v1658_v20  ;;  %1747 = vmatpush.bf16.msra.mxu3 %v1738_v23 }
  0xa0   : > { %v1651_v23 = vrot.slane %v3535_v11, 1  ;;  %v1617_v61 = vrot.slane %v1615_v22, 1  ;;  %v1811_v63 = vrot.slane %v1809_v52, 1 }
  0xa1   : > { %v3999_v29 = vpop.f32.mrf.mxu3 }
  0xa3   : > { %v4003_v33 = vpop.f32.mrf.mxu1  ;;  %v234_v36 = vpop.f32.mrf.mxu0 }
  0xa4   : > { %3057 = vmatmul.msk.bf16.vlgmr.msra.gmra.mxu2 %vm217_vm1, %v1416_v32  ;;  %v254_v1 = vadd.f32 %v253_v16, %v234_v36 }
  0xa5   : > { %1701 = vmatpush.bf16.msra.mxu2 %v1692_v35  ;;  %v3137_v35 = vld [vmem:[%s4443_s1 + $0xc] sm:$0x3] }
  0xa6   : > { %3042 = vmatmul.msk.bf16.vlgmr.msra.gmra.mxu0 %vm217_vm1, %v1336_v37  ;;  %v1653_v37 = vsel %vm264_vm2, %v1651_v23, %v1652_v24  ;;  %v2009_v51 = vsel %vm221_vm0, %v3137_v35, 0  ;;  %v3345_v23 = vld [vmem:[%s3705_s27 + $0x48] sm:$0xe]  ;;  %v2158_v35 = vsel %vm221_vm0, %v2112_v28, 0 }
  0xa7   : > { %v283_v41 = vpop.f32.mrf.mxu2  ;;  %1637 = vmatpush.bf16.msra.mxu0 %v1628_v39 }
  0xa8   : > { %v288_v6 = vadd.f32 %v283_v41, %v254_v1  ;;  %v3119_v1 = vld [vmem:[%s4443_s1 + $0x6] sm:$0x3] }
  0xa9   : > { %v4016_v46 = vpop.f32.mrf.mxu3 }
  0xaa   : > { %v323_v20 = vadd.f32 %v3999_v29, %v288_v6 }
  0xab   : > { %v4018_v48 = vpop.f32.mrf.mxu1  ;;  %v236_v55 = vpop.f32.mrf.mxu0 }
  0xac   : > { %v256_v25 = vadd.f32 %v4003_v33, %v236_v55  ;;  %v3128_v33 = vld [vmem:[%s4443_s1 + $0x8] sm:$0x3]  ;;  %v1618_v55 = vor.u32 %v1617_v61, %v1613_v42  ;;  %v3156_v42 = vld [vmem:[%s4443_s1 + $0x2] sm:$0x3] }
  0xad   : > { %v1945_v40 = vsel %vm221_vm0, %v3128_v33, 0  ;;  %v3149_v33 = vld [vmem:[%s4443_s1 + $0x10] sm:$0x3]  ;;  %v2139_v52 = vsel %vm221_vm0, %v3156_v42, 0 }
  0xae   : > { %3068 = vmatmul.msk.bf16.vlgmr.msrb.gmra.mxu1 %vm217_vm1, %v3890_v62  ;;  %3079 = vmatmul.msk.bf16.vlgmr.msrb.gmra.mxu3 %vm217_vm1, %v3259_v50  ;;  %v1795_v62 = vld [vmem:[%s4443_s1] sm:$0x3]  ;;  %v3452_v50 = vld [vmem:[%s3705_s27 + $0x3c] sm:$0xe]  ;;  %v1623_v10 = vsel %vm204_vm3, %v1618_v55, %v1622_v56  ;;  %v3348_v55 = vld [vmem:[%s3705_s27 + $0x48] sm:$0xf0] }
  0xaf   : > { %1831 = vmatpush.bf16.msrb.mxu1 %v1822_v60  ;;  %1878 = vmatpush.bf16.msrb.mxu3 %v1869_v57  ;;  %v285_v4 = vpop.f32.mrf.mxu2  ;;  %v1841_v16 = vsel %vm221_vm0, %v1795_v62, 0  ;;  %v3131_v57 = vld [vmem:[%s4443_s1 + $0xa] sm:$0x3]  ;;  %v1807_v60 = vshrl.u32 %v4059_v17, 16  ;;  %v3453_v62 = vor.u32 %v3452_v50, %v4062_v18  ;;  %v3127_v18 = vld [vmem:[%s3705_s27 + $0x50] sm:$0x1] }
  0xb0   : > { %v289_v29 = vadd.f32 %v285_v4, %v256_v25  ;;  %v1975_v6 = vsel %vm221_vm0, %v3131_v57, 0  ;;  %v3349_v56 = vld [vmem:[%s3705_s27 + $0x48] sm:$0xe] }
  0xb1   : > { %v4047_v7 = vpop.f32.mrf.mxu3  ;;  %v1862_v15 = vrot.slane %v3453_v62, 1 }
  0xb2   : > { %v324_v43 = vadd.f32 %v4016_v46, %v289_v29 }
  0xb3   : > { %v4050_v9 = vpop.f32.mrf.mxu1  ;;  %v365_v19 = vpop.f32.mrf.mxu0 }
  0xb4   : > { %3071 = vmatmul.msk.bf16.vlgmr.msrb.gmra.mxu2 %vm217_vm1, %v1547_v8  ;;  %v370_v26 = vadd.f32 %v365_v19, %v323_v20 }
  0xb5   : > { %1850 = vmatpush.bf16.msrb.mxu2 %v1841_v16 }
  0xb6   : > { %3067 = vmatmul.msk.bf16.vlgmr.msrb.gmra.mxu0 %vm217_vm1, %v1500_v44  ;;  %v401_v39 = vadd.f32 %v4018_v48, %v370_v26  ;;  %v1805_v48 = vpack.c.b16 %v1803_v38, %v1803_v38  ;;  %v1926_v26 = vunpack.c.l.b16 %v3127_v18  ;;  %v2085_v38 = vsel %vm221_vm0, %v3149_v33, 0 }
  0xb7   : > { %v431_v32 = vpop.f32.mrf.mxu2  ;;  %1777 = vmatpush.bf16.msrb.mxu0 %v1768_v21  ;;  %v3344_v21 = vld [vmem:[%s3705_s27 + $0x48] sm:$0xf0] }
  0xb8   : > { %v436_v53 = vadd.f32 %v431_v32, %v401_v39  ;;  %v1814_v0 = vshll.u32 %v1805_v48, 16  ;;  %v1863_v16 = vrot.slane %v1805_v48, 1  ;;  %v3346_v29 = vor.u32 %v3345_v23, %v3344_v21  ;;  %v3146_v48 = vld [vmem:[%s4443_s1 + $0xe] sm:$0x3]  ;;  %v3173_v21 = vld [vmem:[%s4443_s1 + $0x8] sm:$0x3] }
  0xb9   : > { %v4075_v34 = vpop.f32.mrf.mxu3  ;;  %v1928_v39 = vpack.c.b16 %v1926_v26, %v1926_v26 }
  0xba   : > { %v483_v4 = vadd.f32 %v4047_v7, %v436_v53  ;;  %v1899_v7 = vsel %vm221_vm0, %v3119_v1, 0  ;;  %v1816_v12 = vrot.slane %v1814_v0, 1  ;;  %v1864_v32 = vsel %vm264_vm2, %v1862_v15, %v1863_v16  ;;  %v3164_v0 = vld [vmem:[%s4443_s1 + $0x6] sm:$0x3] }
  0xbb   : > { %v4083_v36 = vpop.f32.mrf.mxu1  ;;  %v367_v41 = vpop.f32.mrf.mxu0 }
  0xbc   : > { %v371_v54 = vadd.f32 %v367_v41, %v324_v43  ;;  %v1762_v41 = vrot.slane %v4041_v2, 1  ;;  %v1937_v43 = vshll.u32 %v1928_v39, 16 }
  0xbe   : > { %3087 = vmatmul.msk.bf16.vlgmr.msra.gmra.mxu1 %vm217_vm1, %v1653_v37  ;;  %3102 = vmatmul.msk.bf16.vlgmr.msra.gmra.mxu3 %vm217_vm1, %v1733_v30  ;;  %v402_v3 = vadd.f32 %v4050_v9, %v371_v54  ;;  %v1812_v9 = vor.u32 %v1811_v63, %v1807_v60  ;;  %v3176_v63 = vld [vmem:[%s4443_s1 + $0xa] sm:$0x3] }
  0xbf   : > { %1954 = vmatpush.bf16.msra.mxu1 %v1945_v40  ;;  %2018 = vmatpush.bf16.msra.mxu3 %v2009_v51  ;;  %v433_v45 = vpop.f32.mrf.mxu2  ;;  %v1761_v40 = vrot.slane %v3346_v29, 1  ;;  %v3261_v29 = vld [vmem:[%s3705_s27 + $0x48] sm:$0xff] }
  0xc0   : > { %v437_v13 = vadd.f32 %v433_v45, %v402_v3  ;;  %v1817_v25 = vsel %vm204_vm3, %v1812_v9, %v1816_v12  ;;  %v1939_v45 = vrot.slane %v1937_v43, 1  ;;  %v3262_v3 = vld [vmem:[%s3705_s27 + $0x54] sm:$0xff]  ;;  %v2292_v9 = vsel %vm221_vm0, %v3176_v63, 0  ;;  %v3191_v63 = vld [vmem:[%s4443_s1 + $0xe] sm:$0x3] }
  0xc1   : > { %v4100_v46 = vpop.f32.mrf.mxu3  ;;  %v1763_v53 = vsel %vm264_vm2, %v1761_v40, %v1762_v41 }
  0xc2   : > { %v484_v31 = vadd.f32 %v4075_v34, %v437_v13 }
  0xc3   : > { %v4104_v59 = vpop.f32.mrf.mxu1  ;;  %v509_v8 = vpop.f32.mrf.mxu0 }
  0xc4   : > { %v514_v11 = vadd.f32 %v509_v8, %v483_v4  ;;  %3097 = vmatmul.msk.bf16.vlgmr.msra.gmra.mxu2 %vm217_vm1, %v3260_v58  ;;  %v1940_v4 = vsel %vm204_vm3, %v4071_v27, %v1939_v45  ;;  %v3145_v8 = vld [vmem:[%s3705_s27 + $0x5c] sm:$0x1]  ;;  %v4217_v45 = vld [vmem:[%s3705_s27 + $0x54] sm:$0xff]  }
  0xc5   : > { %1984 = vmatpush.bf16.msra.mxu2 %v1975_v6  ;;  %v4177_v6 = vld [vmem:[%s3705_s27 + $0x54] sm:$0xff]   ;;  %v2036_v15 = vunpack.c.l.b16 %v3145_v8  ;;  %v3194_v8 = vld [vmem:[%s4443_s1 + $0x10] sm:$0x3] }
  0xc6   : > { %v519_v14 = vadd.f32 %v4115_v5, %v514_v11  ;;  %3084 = vmatmul.msk.bf16.vlgmr.msra.gmra.mxu0 %vm217_vm1, %v1623_v10  ;;  %v3537_v10 = vld [vmem:[%s3705_s27 + $0x54] sm:$0xe]  ;;  %v2216_v11 = vsel %vm221_vm0, %v3164_v0, 0 }
  0xc7   : > { %v584_v19 = vpop.f32.mrf.mxu2  ;;  %1908 = vmatpush.bf16.msra.mxu0 %v1899_v7 }
  0xc8   : > { %v521_v44 = vmax.f32 %v519_v14, 0.0  ;;  %v585_v61 = vadd.f32 %v584_v19, %v4083_v36  ;;  %v2055_v36 = vsel %vm221_vm0, %v3146_v48, 0  ;;  %v1969_v14 = vrot.slane %v1928_v39, 1  ;;  %v3155_v19 = vld [vmem:[%s3705_s27 + $0x50] sm:$0x1] }
  0xc9   : > { %v4127_v20 = vpop.f32.mrf.mxu3  ;;  %v2120_v28 = vunpack.c.l.b16 %v3155_v19  ;;  %v2249_v19 = vshll.u32 %v4217_v45, 16 }
  0xca   : > { %523 = vst [vmem:[%s4135_s4] sm:$0xff] %v521_v44  ;;  %v617_v54 = vadd.f32 %v4100_v46, %v585_v61  ;;  %v2042_v61 = vshll.u32 %v4177_v6, 16 }
  0xcb   : > { %v688_v24 = vpop.f32.mrf.mxu1  ;;  %v511_v22 = vpop.f32.mrf.mxu0 }
  0xcc   : > { %v515_v37 = vadd.f32 %v511_v22, %v484_v31  ;;  %v3160_v31 = vld [vmem:[%s4443_s1 + $0x4] sm:$0x3] }
  0xce   : > { %3112 = vmatmul.msk.bf16.vlgmr.msrb.gmra.mxu1 %vm217_vm1, %v1817_v25  ;;  %3116 = vmatmul.msk.bf16.vlgmr.msrb.gmra.mxu3 %vm217_vm1, %v1864_v32  ;;  %v520_v34 = vadd.f32 %v4115_v5, %v515_v37  ;;  %v2038_v25 = vpack.c.b16 %v2036_v15, %v2036_v15  ;;  %v2402_v15 = vsel %vm221_vm0, %v3194_v8, 0 }
  0xcf   : > { %2094 = vmatpush.bf16.msrb.mxu1 %v2085_v38  ;;  %2167 = vmatpush.bf16.msrb.mxu3 %v2158_v35  ;;  %v586_v30 = vpop.f32.mrf.mxu2  ;;  %v2262_v35 = vsel %vm221_vm0, %v3173_v21, 0  ;;  %v2186_v38 = vsel %vm221_vm0, %v3160_v31, 0  ;;  %v3190_v31 = vld [vmem:[%s3705_s27 + $0x68] sm:$0x1] }
  0xd0   : > { %v522_v47 = vmax.f32 %v520_v34, 0.0  ;;  %v587_v46 = vadd.f32 %v586_v30, %v4104_v59  ;;  %v3536_v59 = vld [vmem:[%s3705_s27 + $0x54] sm:$0xf0]  ;;  %v2079_v34 = vrot.slane %v2038_v25, 1  ;;  %v4201_v30 = vpack.c.b16 %v2120_v28, %v2120_v28  ;;  %v3200_v28 = vld [vmem:[%s3705_s27 + $0x5c] sm:$0x1] }
  0xd1   : > { %v752_v50 = vpop.f32.mrf.mxu3  ;;  %v3538_v26 = vor.u32 %v3537_v10, %v3536_v59 }
  0xd2   : > { %524 = vst [vmem:[%s4135_s4 + $0x8] sm:$0xff] %v522_v47  ;;  %v618_v12 = vadd.f32 %v4127_v20, %v587_v46  ;;  %v3172_v46 = vld [vmem:[%s3705_s27 + $0x5c] sm:$0x1] }
  0xd3   : > { %v690_v51 = vpop.f32.mrf.mxu1  ;;  %v642_v2 = vpop.f32.mrf.mxu0  ;;  %v2078_v39 = vrot.slane %v3538_v26, 1 }
  0xd4   : > { %3113 = vmatmul.msk.bf16.vlgmr.msrb.gmra.mxu2 %vm217_vm1, %v4059_v17  ;;  %v647_v57 = vadd.f32 %v642_v2, %v617_v54  ;;  %v3350_v17 = vor.u32 %v3349_v56, %v3348_v55  ;;  %v2040_v54 = vshrl.u32 %v4177_v6, 16  ;;  %v3454_v55 = vld [vmem:[%s3705_s27 + $0x54] sm:$0xf0]  ;;  %v3455_v56 = vld [vmem:[%s3705_s27 + $0x54] sm:$0xe] }
  0xd5   : > { %2148 = vmatpush.bf16.msrb.mxu2 %v2139_v52  ;;  %v2080_v48 = vsel %vm264_vm2, %v2078_v39, %v2079_v34  ;;  %v2131_v52 = vshll.u32 %v4201_v30, 16  ;;  %v3218_v39 = vld [vmem:[%s4443_s1 + $0x8] sm:$0x3]  ;;  %v3205_v34 = vld [vmem:[%s4443_s1 + $0x4] sm:$0x3] }
  0xd6   : > { %3105 = vmatmul.msk.bf16.vlgmr.msrb.gmra.mxu0 %vm217_vm1, %v1763_v53  ;;  %v693_v62 = vadd.f32 %v688_v24, %v647_v57  ;;  %v1968_v13 = vrot.slane %v3350_v17, 1 }
  0xd7   : > { %v718_v58 = vpop.f32.mrf.mxu2  ;;  %2064 = vmatpush.bf16.msrb.mxu0 %v2055_v36  ;;  %v2047_v36 = vshll.u32 %v2038_v25, 16 }
  0xd8   : > { %v723_v16 = vadd.f32 %v718_v58, %v693_v62  ;;  %v1970_v20 = vsel %vm264_vm2, %v1968_v13, %v1969_v14  ;;  %v2044_v58 = vrot.slane %v2042_v61, 1 }
  0xd9   : > { %v754_v60 = vpop.f32.mrf.mxu3  ;;  %v2049_v59 = vrot.slane %v2047_v36, 1 }
  0xda   : > { %v757_v22 = vadd.f32 %v752_v50, %v723_v16  ;;  %v2045_v6 = vor.u32 %v2044_v58, %v2040_v54 }
  0xdb   : > { %v828_v1 = vpop.f32.mrf.mxu1  ;;  %v644_v7 = vpop.f32.mrf.mxu0 }
  0xdc   : > { %v648_v18 = vadd.f32 %v644_v7, %v618_v12  ;;  %v3182_v12 = vld [vmem:[%s4443_s1 + $0xc] sm:$0x3] }
  0xde   : > { %3129 = vmatmul.msk.bf16.vlgmr.msra.gmra.mxu1 %vm217_vm1, %v1940_v4  ;;  %3142 = vmatmul.msk.bf16.vlgmr.msra.gmra.mxu3 %vm217_vm1, %v3262_v3  ;;  %v694_v32 = vadd.f32 %v690_v51, %v648_v18  ;;  %v3201_v51 = vld [vmem:[%s4443_s1 + $0x2] sm:$0x3]  ;;  %v2243_v4 = vunpack.c.l.b16 %v3172_v46  ;;  %v2050_v18 = vsel %vm204_vm3, %v2045_v6, %v2049_v59 }
  0xdf   : > { %2225 = vmatpush.bf16.msra.mxu1 %v2216_v11  ;;  %2301 = vmatpush.bf16.msra.mxu3 %v2292_v9  ;;  %v720_v44 = vpop.f32.mrf.mxu2  ;;  %v2456_v17 = vsel %vm221_vm0, %v3201_v51, 0  ;;  %v3456_v9 = vor.u32 %v3455_v56, %v3454_v55  ;;  %v3355_v51 = vld [vmem:[%s3705_s27 + $0x60] sm:$0xff]  }
  0xe0   : > { %v724_v40 = vadd.f32 %v720_v44, %v694_v32  ;;  %v2245_v14 = vpack.c.b16 %v2243_v4, %v2243_v4  ;;  %v4251_v44 = vld [vmem:[%s3705_s27 + $0x54] sm:$0xf0]  ;;  %v2359_v56 = vshll.u32 %v3355_v51, 16  ;;  %v2357_v6 = vshrl.u32 %v3355_v51, 16 }
  0xe1   : > { %v4191_v23 = vpop.f32.mrf.mxu3 }
  0xe2   : > { %v758_v53 = vadd.f32 %v754_v60, %v724_v40  ;;  %v2372_v60 = vsel %vm221_vm0, %v3191_v63, 0  ;;  %v2286_v26 = vrot.slane %v2245_v14, 1  ;;  %v2361_v59 = vrot.slane %v2359_v56, 1 }
  0xe3   : > { %v830_v24 = vpop.f32.mrf.mxu1  ;;  %v798_v33 = vpop.f32.mrf.mxu0 }
  0xe4   : > { %v803_v37 = vadd.f32 %v798_v33, %v757_v22  ;;  %3132 = vmatmul.msk.bf16.vlgmr.msra.gmra.mxu2 %vm217_vm1, %v1970_v20  ;;  %v2326_v20 = vsel %vm221_vm0, %v3182_v12, 0  ;;  %v3263_v22 = vld [vmem:[%s3705_s27 + $0x54] sm:$0xff]  ;;  %v3352_v33 = vld [vmem:[%s3705_s27 + $0x48] sm:$0xf0] }
  0xe5   : > { %2271 = vmatpush.bf16.msra.mxu2 %v2262_v35  ;;  %v2254_v35 = vshll.u32 %v2245_v14, 16 }
  0xe6   : > { %v833_v41 = vadd.f32 %v828_v1, %v803_v37  ;;  %3124 = vmatmul.msk.bf16.vlgmr.msra.gmra.mxu0 %vm217_vm1, %v3261_v29  ;;  %v2133_v1 = vrot.slane %v2131_v52, 1  ;;  %v2251_v29 = vrot.slane %v2249_v19, 1 }
  0xe7   : > { %v882_v42 = vpop.f32.mrf.mxu2  ;;  %2195 = vmatpush.bf16.msra.mxu0 %v2186_v38  ;;  %v3353_v38 = vld [vmem:[%s3705_s27 + $0x48] sm:$0xe] }
  0xe8   : > { %v835_v47 = vadd.f32 %v4115_v5, %v833_v41  ;;  %v902_v21 = vadd.f32 %v4191_v23, %v882_v42  ;;  %v2247_v23 = vshrl.u32 %v4217_v45, 16  ;;  %v2437_v41 = vunpack.c.l.b16 %v3200_v28  ;;  %v3217_v28 = vld [vmem:[%s3705_s27 + $0x68] sm:$0x1] }
  0xe9   : > { %v4206_v50 = vpop.f32.mrf.mxu3  ;;  %v2353_v42 = vunpack.c.l.b16 %v3190_v31  ;;  %v2256_v45 = vrot.slane %v2254_v35, 1 }
  0xea   : > { %v837_v2 = vmax.f32 %v835_v47, 0.0  ;;  %v2252_v36 = vor.u32 %v2251_v29, %v2247_v23  ;;  %v4280_v55 = vpack.c.b16 %v2437_v41, %v2437_v41 }
  0xeb   : > { %v4211_v43 = vpop.f32.mrf.mxu1  ;;  %v800_v57 = vpop.f32.mrf.mxu0 }
  0xec   : > { %2971 = vst [vmem:[%s4135_s4 + $0x10] sm:$0xff] %v837_v2  ;;  %v804_v0 = vadd.f32 %v800_v57, %v758_v53  ;;  %v3354_v2 = vor.u32 %v3353_v38, %v3352_v33  ;;  %v2579_v53 = vsel %vm221_vm0, %v3218_v39, 0 }
  0xee   : > { %3150 = vmatmul.msk.bf16.vlgmr.msrb.gmra.mxu1 %vm217_vm1, %v2080_v48  ;;  %3158 = vmatmul.msk.bf16.vlgmr.msrb.gmra.mxu3 %vm217_vm1, %v4031_v49  ;;  %v834_v3 = vadd.f32 %v830_v24, %v804_v0  ;;  %v2134_v49 = vsel %vm204_vm3, %v4071_v27, %v2133_v1  ;;  %v4248_v27 = vld [vmem:[%s3705_s27 + $0x54] sm:$0xff]   ;;  %v2285_v24 = vrot.slane %v3456_v9, 1  ;;  %v2503_v48 = vsel %vm221_vm0, %v3205_v34, 0  ;;  %v3209_v0 = vld [vmem:[%s4443_s1 + $0x6] sm:$0x3] }
  0xef   : > { %2381 = vmatpush.bf16.msrb.mxu1 %v2372_v60  ;;  %2465 = vmatpush.bf16.msrb.mxu3 %v2456_v17  ;;  %v884_v62 = vpop.f32.mrf.mxu2  ;;  %v2443_v46 = vshll.u32 %v4248_v27, 16  ;;  %v2179_v63 = vrot.slane %v3354_v2, 1  ;;  %v2257_v1 = vsel %vm204_vm3, %v2252_v36, %v2256_v45  ;;  %v2533_v12 = vsel %vm221_vm0, %v3209_v0, 0  ;;  %v3236_v36 = vld [vmem:[%s4443_s1 + $0xe] sm:$0x3] }
  0xf0   : > { %v836_v10 = vadd.f32 %v4115_v5, %v834_v3  ;;  %v2287_v47 = vsel %vm264_vm2, %v2285_v24, %v2286_v26  ;;  %v904_v54 = vadd.f32 %v4206_v50, %v884_v62  ;;  %v2180_v50 = vrot.slane %v4201_v30, 1  ;;  %v2429_v30 = vld [vmem:[%s4443_s1] sm:$0x3]  ;;  %v3356_v24 = vld [vmem:[%s3705_s27 + $0x60] sm:$0xf0] }
  0xf1   : > { %v4235_v11 = vpop.f32.mrf.mxu3  ;;  %v2441_v3 = vshrl.u32 %v4248_v27, 16  ;;  %v2448_v62 = vshll.u32 %v4280_v55, 16  ;;  %v2445_v9 = vrot.slane %v2443_v46, 1  ;;  %v2560_v34 = vunpack.c.l.b16 %v3217_v28 }
  0xf2   : > { %v838_v13 = vmax.f32 %v836_v10, 0.0  ;;  %v2181_v14 = vsel %vm264_vm2, %v2179_v63, %v2180_v50  ;;  %v3264_v63 = vld [vmem:[%s3705_s27 + $0x60] sm:$0xff]  ;;  %v2689_v0 = vsel %vm221_vm0, %v3236_v36, 0 }
  0xf3   : > { %v4239_v7 = vpop.f32.mrf.mxu1  ;;  %v929_v16 = vpop.f32.mrf.mxu0 }
  0xf4   : > { %2972 = vst [vmem:[%s4135_s4 + $0x18] sm:$0xff] %v838_v13  ;;  %3157 = vmatmul.msk.bf16.vlgmr.msrb.gmra.mxu2 %vm217_vm1, %v2134_v49  ;;  %v934_v25 = vadd.f32 %v929_v16, %v902_v21  ;;  %v2475_v16 = vsel %vm221_vm0, %v2429_v30, 0  ;;  %v2446_v21 = vor.u32 %v2445_v9, %v2441_v3 }
  0xf5   : > { %2411 = vmatpush.bf16.msrb.mxu2 %v2402_v15 }
  0xf6   : > { %3147 = vmatmul.msk.bf16.vlgmr.msrb.gmra.mxu0 %vm217_vm1, %v2050_v18  ;;  %v964_v61 = vadd.f32 %v4211_v43, %v934_v25  ;;  %v4282_v43 = vpack.c.b16 %v2353_v42, %v2353_v42  ;;  %v4304_v18 = vor.u32 %v2361_v59, %v2357_v6  ;;  %v3357_v25 = vld [vmem:[%s3705_s27 + $0x60] sm:$0xe] }
  0xf7   : > { %v1005_v32 = vpop.f32.mrf.mxu2  ;;  %2335 = vmatpush.bf16.msrb.mxu0 %v2326_v20  ;;  %v2450_v20 = vrot.slane %v2448_v62, 1  ;;  %v3358_v35 = vor.u32 %v3357_v25, %v3356_v24  ;;  %v2497_v62 = vrot.slane %v4280_v55, 1 }
  0xf8   : > { %v1010_v57 = vadd.f32 %v1005_v32, %v964_v61  ;;  %v2364_v8 = vshll.u32 %v4282_v43, 16  ;;  %v3227_v61 = vld [vmem:[%s4443_s1 + $0xc] sm:$0x3] }
  0xf9   : > { %v4263_v37 = vpop.f32.mrf.mxu3  ;;  %v2451_v39 = vsel %vm204_vm3, %v2446_v21, %v2450_v20  ;;  %v3265_v20 = vld [vmem:[%s3705_s27 + $0x60] sm:$0xff] }
  0xfa   : > { %v1040_v49 = vadd.f32 %v4235_v11, %v1010_v57  ;;  %v2366_v19 = vrot.slane %v2364_v8, 1 }
  0xfb   : > { %v1115_v40 = vpop.f32.mrf.mxu1  ;;  %v931_v52 = vpop.f32.mrf.mxu0 }
  0xfc   : > { %v935_v58 = vadd.f32 %v931_v52, %v904_v54  ;;  %v2367_v29 = vsel %vm204_vm3, %v4304_v18, %v2366_v19  ;;  %v2396_v52 = vrot.slane %v4282_v43, 1  ;;  %v3221_v43 = vld [vmem:[%s4443_s1 + $0xa] sm:$0x3] }
  0xfe   : > { %3169 = vmatmul.msk.bf16.vlgmr.msra.gmra.mxu1 %vm217_vm1, %v3263_v22  ;;  %3177 = vmatmul.msk.bf16.vlgmr.msra.gmra.mxu3 %vm217_vm1, %v2287_v47  ;;  %v965_v10 = vadd.f32 %v4239_v7, %v935_v58  ;;  %v3239_v22 = vld [vmem:[%s4443_s1 + $0x10] sm:$0x3] }
  0xff   : > { %2512 = vmatpush.bf16.msra.mxu1 %v2503_v48  ;;  %2588 = vmatpush.bf16.msra.mxu3 %v2579_v53  ;;  %v1007_v17 = vpop.f32.mrf.mxu2  ;;  %v2719_v42 = vsel %vm221_vm0, %v3239_v22, 0  ;;  %v2643_v48 = vsel %vm221_vm0, %v3227_v61, 0  ;;  %v4330_v53 = vpack.c.b16 %v2560_v34, %v2560_v34 }
 0x100   : > { %v1011_v7 = vadd.f32 %v1007_v17, %v965_v10 }
 0x101   : > { %v4289_v60 = vpop.f32.mrf.mxu3  ;;  %v2571_v50 = vshll.u32 %v4330_v53, 16 }
 0x102   : > { %v1041_v38 = vadd.f32 %v4263_v37, %v1011_v7  ;;  %v2395_v37 = vrot.slane %v3358_v35, 1 }
 0x103   : > { %v1117_v4 = vpop.f32.mrf.mxu1  ;;  %v1069_v13 = vpop.f32.mrf.mxu0  ;;  %v2573_v59 = vrot.slane %v2571_v50, 1 }
 0x104   : > { %v1074_v15 = vadd.f32 %v1069_v13, %v1040_v49  ;;  %3174 = vmatmul.msk.bf16.vlgmr.msra.gmra.mxu2 %vm217_vm1, %v2257_v1  ;;  %v2397_v57 = vsel %vm264_vm2, %v2395_v37, %v2396_v52  ;;  %v3460_v13 = vld [vmem:[%s3705_s27 + $0x6c] sm:$0xf0] }
 0x105   : > { %2542 = vmatpush.bf16.msra.mxu2 %v2533_v12  ;;  %v2574_v55 = vsel %vm204_vm3, %v4304_v18, %v2573_v59  ;;  %v3234_v12 = vld [vmem:[%s3705_s27 + $0x6c] sm:$0xff]  }
 0x106   : > { %3161 = vmatmul.msk.bf16.vlgmr.msra.gmra.mxu0 %vm217_vm1, %v2181_v14  ;;  %v1120_v11 = vadd.f32 %v1115_v40, %v1074_v15  ;;  %v3458_v40 = vld [vmem:[%s3705_s27 + $0x54] sm:$0xe]  ;;  %v3235_v15 = vld [vmem:[%s3705_s27 + $0x74] sm:$0x1] }
 0x107   : > { %v1145_v26 = vpop.f32.mrf.mxu2  ;;  %2484 = vmatpush.bf16.msra.mxu0 %v2475_v16  ;;  %v3459_v46 = vor.u32 %v3458_v40, %v4251_v44  ;;  %v3461_v16 = vld [vmem:[%s3705_s27 + $0x6c] sm:$0xe]  ;;  %v2670_v7 = vunpack.c.l.b16 %v3235_v15 }
 0x108   : > { %v1150_v31 = vadd.f32 %v1145_v26, %v1120_v11  ;;  %v3462_v28 = vor.u32 %v3461_v16, %v3460_v13  ;;  %v3266_v40 = vld [vmem:[%s3705_s27 + $0x6c] sm:$0xff] }
 0x109   : > { %v4310_v32 = vpop.f32.mrf.mxu3  ;;  %v2496_v44 = vrot.slane %v3459_v46, 1  ;;  %v2672_v26 = vpack.c.b16 %v2670_v7, %v2670_v7 }
 0x10a   : > { %v1152_v33 = vadd.f32 %v4115_v5, %v1150_v31  ;;  %v2712_v35 = vrot.slane %v3462_v28, 1 }
 0x10b   : > { %v1246_v23 = vpop.f32.mrf.mxu1  ;;  %v1071_v41 = vpop.f32.mrf.mxu0  ;;  %v2498_v49 = vsel %vm264_vm2, %v2496_v44, %v2497_v62 }
 0x10c   : > { %v1154_v47 = vmax.f32 %v1152_v33, 0.0  ;;  %v1075_v51 = vadd.f32 %v1071_v41, %v1041_v38  ;;  %v2713_v33 = vrot.slane %v2672_v26, 1  ;;  %v3360_v41 = vld [vmem:[%s3705_s27 + $0x60] sm:$0xf0] }
 0x10e   : > { %3192 = vmatmul.msk.bf16.vlgmr.msrb.gmra.mxu1 %vm217_vm1, %v2367_v29  ;;  %3202 = vmatmul.msk.bf16.vlgmr.msrb.gmra.mxu3 %vm217_vm1, %v2451_v39  ;;  %3016 = vst [vmem:[%s4135_s4 + $0x20] sm:$0xff] %v1154_v47  ;;  %v1121_v2 = vadd.f32 %v1117_v4, %v1075_v51  ;;  %v2609_v4 = vsel %vm221_vm0, %v3221_v43, 0  ;;  %v2674_v47 = vshrl.u32 %v3234_v12, 16 }
 0x10f   : > { %2652 = vmatpush.bf16.msrb.mxu1 %v2643_v48  ;;  %2728 = vmatpush.bf16.msrb.mxu3 %v2719_v42  ;;  %v1147_v54 = vpop.f32.mrf.mxu2  ;;  %v3361_v42 = vld [vmem:[%s3705_s27 + $0x60] sm:$0xe]  ;;  %v2681_v48 = vshll.u32 %v2672_v26, 16  ;;  %s3267_s27 = sshll.u32 %s3553_s15, 4 }
 0x110   : > { %v1151_v45 = vadd.f32 %v1147_v54, %v1121_v2  ;;  %v2714_v2 = vsel %vm264_vm2, %v2712_v35, %v2713_v33  ;;  %s2757_s10 = sadd.s32 %s3267_s27, %s3246_s9 }
 0x111   : > { %v1322_v56 = vpop.f32.mrf.mxu3  ;;  %s3247_s24 = sshll.u32 %s2757_s10, 3  ;;  %s3483_s10 = scalar_lea.hbm %s4445_s3, 512 }
 0x112   : > { %v1153_v17 = vadd.f32 %v4115_v5, %v1151_v45  ;;  %s2759_s29 = scalar_lea.hbm %s4445_s3, %s3247_s24 }
 0x113   : > { %v1248_v58 = vpop.f32.mrf.mxu1  ;;  %v1218_v1 = vpop.f32.mrf.mxu0  ;;  %s2762_s21 = sshll.u32 %s2759_s29, 4  ;;  %s2763_s21 = int_to_ptr.hbm [resolvable:$true] %s2762_s21 }
 0x114   : > { %v1155_v3 = vmax.f32 %v1153_v17, 0.0  ;;  %3195 = vmatmul.msk.bf16.vlgmr.msrb.gmra.mxu2 %vm217_vm1, %v2397_v57  ;;  %v1219_v6 = vadd.f32 %v1218_v1, %v4289_v60  ;;  %v2683_v57 = vrot.slane %v2681_v48, 1  ;;  %s3477_s6 = sshra.s32 %s2763_s21, 4  ;;  %s3478_s6 = int_to_ptr.hbm [resolvable:$true] %s3477_s6 }
 0x115   : > { %2698 = vmatpush.bf16.msrb.mxu2 %v2689_v0  ;;  %s3479_s8 = scalar_lea.hbm %s3478_s6, 128  ;;  %p3484_p2 = scmp.lt.s32.totalorder %s3478_s6, %s4445_s3 }
 0x116   : > { %3017 = vst [vmem:[%s4135_s4 + $0x28] sm:$0xff] %v1155_v3  ;;  %3187 = vmatmul.msk.bf16.vlgmr.msrb.gmra.mxu0 %vm217_vm1, %v3264_v63  ;;  %v1251_v9 = vadd.f32 %v1246_v23, %v1219_v6  ;;  %v2676_v23 = vshll.u32 %v3234_v12, 16  ;;  %v2603_v63 = vrot.slane %v4330_v53, 1  ;;  %p3480_p13 = scmp.ne.s32.totalorder %s3478_s6, %s3479_s8  ;;  %p3485_p4 = scmp.lt.s32.totalorder %s3483_s10, %s3479_s8 }
 0x117   : > { %v1276_v8 = vpop.f32.mrf.mxu2  ;;  %2618 = vmatpush.bf16.msrb.mxu0 %v2609_v4 }
 0x118   : > { %v1281_v60 = vadd.f32 %v1276_v8, %v1251_v9  ;;  %v2678_v51 = vrot.slane %v2676_v23, 1  ;;  %p3481_p0 = pnand %p3480_p13, %p3644_p3  ;;  %p3486_p5 = por %p3485_p4, %p3484_p2 }
 0x119   : > { %v1324_v30 = vpop.f32.mrf.mxu3 }
 0x11a   : > { %v1327_v18 = vadd.f32 %v1322_v56, %v1281_v60  ;;  %v2679_v56 = vor.u32 %v2678_v51, %v2674_v47  ;;  %p3482_p1 = pneg %p3481_p0 }
 0x11b   : > { %v1386_v10 = vpop.f32.mrf.mxu1  ;;  %v1220_v14 = vpop.f32.mrf.mxu0 }
 0x11c   : > { %v1221_v19 = vadd.f32 %v1220_v14, %v4310_v32  ;;  %v2684_v1 = vsel %vm204_vm3, %v2679_v56, %v2683_v57  ;;  %p3487_p6 = pnand %p3486_p5, %p3482_p1 }
 0x11e   : > { %3206 = vmatmul.msk.bf16.vlgmr.msra.gmra.mxu1 %vm217_vm1, %v2498_v49  ;;  %3219 = vmatmul.msk.bf16.vlgmr.msra.gmra.mxu3 %vm217_vm1, %v2574_v55  ;;  %v1252_v25 = vadd.f32 %v1248_v58, %v1221_v19 }
 0x11f   : > { %v1278_v11 = vpop.f32.mrf.mxu2 }
 0x120   : > { %v1282_v29 = vadd.f32 %v1278_v11, %v1252_v25 }
 0x121   : > { %v1462_v21 = vpop.f32.mrf.mxu3 }
 0x122   : > { %v1328_v52 = vadd.f32 %v1324_v30, %v1282_v29 }
 0x123   : > { %v1388_v24 = vpop.f32.mrf.mxu1  ;;  %v1352_v31 = vpop.f32.mrf.mxu0 }
 0x124   : > { %v1357_v22 = vadd.f32 %v1352_v31, %v1327_v18  ;;  %3214 = vmatmul.msk.bf16.vlgmr.msra.gmra.mxu2 %vm217_vm1, %v3265_v20 }
 0x126   : > { %3203 = vmatmul.msk.bf16.vlgmr.msra.gmra.mxu0 %vm217_vm1, %v4248_v27  ;;  %v1391_v32 = vadd.f32 %v1386_v10, %v1357_v22  ;;  %v3362_v27 = vor.u32 %v3361_v42, %v3360_v41 }
 0x127   : > { %v1432_v38 = vpop.f32.mrf.mxu2 }
 0x128   : > { %v1437_v39 = vadd.f32 %v1432_v38, %v1391_v32  ;;  %v2602_v17 = vrot.slane %v3362_v27, 1 }
 0x129   : > { %v1464_v34 = vpop.f32.mrf.mxu3 }
 0x12a   : > { %v1467_v37 = vadd.f32 %v1462_v21, %v1437_v39  ;;  %v2604_v62 = vsel %vm264_vm2, %v2602_v17, %v2603_v63 }
 0x12b   : > { %v1535_v61 = vpop.f32.mrf.mxu1  ;;  %v1354_v54 = vpop.f32.mrf.mxu0 }
 0x12c   : > { %v1469_v36 = vadd.f32 %v4115_v5, %v1467_v37  ;;  %v1358_v45 = vadd.f32 %v1354_v54, %v1328_v52 }
 0x12e   : > { %3232 = vmatmul.msk.bf16.vlgmr.msrb.gmra.mxu1 %vm217_vm1, %v3266_v40  ;;  %3240 = vmatmul.msk.bf16.vlgmr.msrb.gmra.mxu3 %vm217_vm1, %v2714_v2  ;;  %v1471_v58 = vmax.f32 %v1469_v36, 0.0  ;;  %v1392_v46 = vadd.f32 %v1388_v24, %v1358_v45 }
 0x12f   : > { %v1434_v43 = vpop.f32.mrf.mxu2 }
 0x130   : > { %3061 = vst [vmem:[%s4135_s4 + $0x30] sm:$0xff] %v1471_v58  ;;  %v1438_v50 = vadd.f32 %v1434_v43, %v1392_v46 }
 0x131   : > { %v1593_v0 = vpop.f32.mrf.mxu3 }
 0x132   : > { %v1468_v4 = vadd.f32 %v1464_v34, %v1438_v50 }
 0x133   : > { %v1537_v3 = vpop.f32.mrf.mxu1  ;;  %v1516_v44 = vpop.f32.mrf.mxu0 }
 0x134   : > { %v1470_v6 = vadd.f32 %v4115_v5, %v1468_v4  ;;  %3237 = vmatmul.msk.bf16.vlgmr.msrb.gmra.mxu2 %vm217_vm1, %v2684_v1  ;;  %v1536_v49 = vadd.f32 %v1535_v61, %v1516_v44 }
 0x136   : > { %v1472_v59 = vmax.f32 %v1470_v6, 0.0  ;;  %3222 = vmatmul.msk.bf16.vlgmr.msrb.gmra.mxu0 %vm217_vm1, %v2604_v62 }
 0x137   : > { %v1563_v8 = vpop.f32.mrf.mxu2 }
 0x138   : > { %3062 = vst [vmem:[%s4135_s4 + $0x38] sm:$0xff] %v1472_v59  ;;  %v1568_v55 = vadd.f32 %v1563_v8, %v1536_v49 }
 0x139   : > { %v1595_v53 = vpop.f32.mrf.mxu3 }
 0x13a   : > { %v1598_v15 = vadd.f32 %v1593_v0, %v1568_v55 }
 0x13b   : > { %v1669_v30 = vpop.f32.mrf.mxu1  ;;  %v1518_v10 = vpop.f32.mrf.mxu0 }
 0x13c   : > { %v1538_v16 = vadd.f32 %v1537_v3, %v1518_v10 }
 0x13f   : > { %v1565_v9 = vpop.f32.mrf.mxu2 }
 0x140   : > { %v1569_v7 = vadd.f32 %v1565_v9, %v1538_v16 }
 0x141   : > { %v1749_v12 = vpop.f32.mrf.mxu3 }
 0x142   : > { %v1599_v25 = vadd.f32 %v1595_v53, %v1569_v7 }
 0x143   : > { %v1671_v13 = vpop.f32.mrf.mxu1  ;;  %v1639_v14 = vpop.f32.mrf.mxu0 }
 0x144   : > { %v1644_v60 = vadd.f32 %v1639_v14, %v1598_v15 }
 0x146   : > { %v1674_v20 = vadd.f32 %v1669_v30, %v1644_v60 }
 0x147   : > { %v1703_v19 = vpop.f32.mrf.mxu2 }
 0x148   : > { %v1708_v18 = vadd.f32 %v1703_v19, %v1674_v20 }
 0x149   : > { %v1751_v11 = vpop.f32.mrf.mxu3 }
 0x14a   : > { %v1754_v29 = vadd.f32 %v1749_v12, %v1708_v18 }
 0x14b   : > { %v1833_v21 = vpop.f32.mrf.mxu1  ;;  %v1641_v24 = vpop.f32.mrf.mxu0 }
 0x14c   : > { %v1645_v26 = vadd.f32 %v1641_v24, %v1599_v25 }
 0x14e   : > { %v1675_v23 = vadd.f32 %v1671_v13, %v1645_v26 }
 0x14f   : > { %v1705_v28 = vpop.f32.mrf.mxu2 }
 0x150   : > { %v1709_v33 = vadd.f32 %v1705_v28, %v1675_v23 }
 0x151   : > { %v1880_v31 = vpop.f32.mrf.mxu3 }
 0x152   : > { %v1755_v42 = vadd.f32 %v1751_v11, %v1709_v33 }
 0x153   : > { %v1835_v22 = vpop.f32.mrf.mxu1  ;;  %v1779_v32 = vpop.f32.mrf.mxu0 }
 0x154   : > { %v1784_v35 = vadd.f32 %v1779_v32, %v1754_v29 }
 0x156   : > { %v1786_v38 = vadd.f32 %v4115_v5, %v1784_v35 }
 0x157   : > { %v1852_v39 = vpop.f32.mrf.mxu2 }
 0x158   : > { %v1788_v34 = vmax.f32 %v1786_v38, 0.0  ;;  %v1853_v37 = vadd.f32 %v1852_v39, %v1833_v21 }
 0x159   : > { %v1882_v40 = vpop.f32.mrf.mxu3 }
 0x15a   : > { %3106 = vst [vmem:[%s4135_s4 + $0x40] sm:$0xff] %v1788_v34  ;;  %v1885_v36 = vadd.f32 %v1880_v31, %v1853_v37 }
 0x15b   : > { %v1956_v41 = vpop.f32.mrf.mxu1  ;;  %v1781_v61 = vpop.f32.mrf.mxu0 }
 0x15c   : > { %v1785_v47 = vadd.f32 %v1781_v61, %v1755_v42 }
 0x15e   : > { %v1787_v51 = vadd.f32 %v4115_v5, %v1785_v47 }
 0x15f   : > { %v1854_v48 = vpop.f32.mrf.mxu2 }
 0x160   : > { %v1789_v52 = vmax.f32 %v1787_v51, 0.0  ;;  %v1855_v57 = vadd.f32 %v1854_v48, %v1835_v22 }
 0x161   : > { %v2020_v2 = vpop.f32.mrf.mxu3 }
 0x162   : > { %3107 = vst [vmem:[%s4135_s4 + $0x48] sm:$0xff] %v1789_v52  ;;  %v1886_v63 = vadd.f32 %v1882_v40, %v1855_v57 }
 0x163   : > { %v1958_v54 = vpop.f32.mrf.mxu1  ;;  %v1910_v27 = vpop.f32.mrf.mxu0 }
 0x164   : > { %v1915_v45 = vadd.f32 %v1910_v27, %v1885_v36 }
 0x166   : > { %v1961_v43 = vadd.f32 %v1956_v41, %v1915_v45 }
 0x167   : > { %v1986_v56 = vpop.f32.mrf.mxu2 }
 0x168   : > { %v1991_v50 = vadd.f32 %v1986_v56, %v1961_v43 }
 0x169   : > { %v2022_v58 = vpop.f32.mrf.mxu3 }
 0x16a   : > { %v2025_v62 = vadd.f32 %v2020_v2, %v1991_v50 }
 0x16b   : > { %v2096_v46 = vpop.f32.mrf.mxu1  ;;  %v1912_v17 = vpop.f32.mrf.mxu0 }
 0x16c   : > { %v1916_v0 = vadd.f32 %v1912_v17, %v1886_v63 }
 0x16e   : > { %v1962_v44 = vadd.f32 %v1958_v54, %v1916_v0 }
 0x16f   : > { %v1988_v1 = vpop.f32.mrf.mxu2 }
 0x170   : > { %v1992_v8 = vadd.f32 %v1988_v1, %v1962_v44 }
 0x171   : > { %v2169_v3 = vpop.f32.mrf.mxu3 }
 0x172   : > { %v2026_v12 = vadd.f32 %v2022_v58, %v1992_v8 }
 0x173   : > { %v2098_v4 = vpop.f32.mrf.mxu1  ;;  %v2066_v6 = vpop.f32.mrf.mxu0 }
 0x174   : > { %v2071_v59 = vadd.f32 %v2066_v6, %v2025_v62 }
 0x176   : > { %v2101_v53 = vadd.f32 %v2096_v46, %v2071_v59 }
 0x177   : > { %v2150_v30 = vpop.f32.mrf.mxu2 }
 0x178   : > { %v2103_v10 = vadd.f32 %v4115_v5, %v2101_v53  ;;  %v2170_v20 = vadd.f32 %v2169_v3, %v2150_v30 }
 0x179   : > { %v2171_v49 = vpop.f32.mrf.mxu3 }
 0x17a   : > { %v2105_v55 = vmax.f32 %v2103_v10, 0.0 }
 0x17b   : > { %v2227_v9 = vpop.f32.mrf.mxu1  ;;  %v2068_v13 = vpop.f32.mrf.mxu0 }
 0x17c   : > { %3151 = vst [vmem:[%s4135_s4 + $0x50] sm:$0xff] %v2105_v55  ;;  %v2072_v14 = vadd.f32 %v2068_v13, %v2026_v12 }
 0x17e   : > { %v2102_v15 = vadd.f32 %v2098_v4, %v2072_v14 }
 0x17f   : > { %v2152_v16 = vpop.f32.mrf.mxu2 }
 0x180   : > { %v2104_v60 = vadd.f32 %v4115_v5, %v2102_v15  ;;  %v2172_v22 = vadd.f32 %v2171_v49, %v2152_v16  ;;  %v3438_v15 = vld [vmem:[%s4444_s2] ss:$0 sm:$0xff] }
 0x181   : > { %v2303_v19 = vpop.f32.mrf.mxu3 }
 0x182   : > { %v2106_v11 = vmax.f32 %v2104_v60, 0.0 }
 0x183   : > { %v2229_v7 = vpop.f32.mrf.mxu1  ;;  %v2197_v21 = vpop.f32.mrf.mxu0 }
 0x184   : > { %3152 = vst [vmem:[%s4135_s4 + $0x58] sm:$0xff] %v2106_v11  ;;  %v2202_v24 = vadd.f32 %v2197_v21, %v2170_v20 }
 0x186   : > { %v2232_v26 = vadd.f32 %v2227_v9, %v2202_v24 }
 0x187   : > { %v2273_v25 = vpop.f32.mrf.mxu2 }
 0x188   : > { %v2278_v23 = vadd.f32 %v2273_v25, %v2232_v26 }
 0x189   : > { %v2305_v18 = vpop.f32.mrf.mxu3 }
 0x18a   : > { %v2308_v38 = vadd.f32 %v2303_v19, %v2278_v23 }
 0x18b   : > { %v2199_v28 = vpop.f32.mrf.mxu0  ;;  %v2383_v31 = vpop.f32.mrf.mxu1 }
 0x18c   : > { %v2203_v29 = vadd.f32 %v2199_v28, %v2172_v22 }
 0x18e   : > { %v2233_v33 = vadd.f32 %v2229_v7, %v2203_v29 }
 0x18f   : > { %v2275_v32 = vpop.f32.mrf.mxu2 }
 0x190   : > { %v2279_v41 = vadd.f32 %v2275_v32, %v2233_v33 }
 0x191   : > { %v2467_v35 = vpop.f32.mrf.mxu3 }
 0x192   : > { %v2309_v37 = vadd.f32 %v2305_v18, %v2279_v41 }
 0x193   : > { %v2337_v39 = vpop.f32.mrf.mxu0  ;;  %v2385_v40 = vpop.f32.mrf.mxu1 }
 0x194   : > { %v2342_v34 = vadd.f32 %v2337_v39, %v2308_v38 }
 0x196   : > { %v2388_v42 = vadd.f32 %v2383_v31, %v2342_v34 }
 0x197   : > { %v2413_v61 = vpop.f32.mrf.mxu2 }
 0x198   : > { %v2418_v47 = vadd.f32 %v2413_v61, %v2388_v42 }
 0x199   : > { %v2469_v51 = vpop.f32.mrf.mxu3 }
 0x19a   : > { %v2420_v48 = vadd.f32 %v4115_v5, %v2418_v47 }
 0x19b   : > { %v2339_v52 = vpop.f32.mrf.mxu0  ;;  %v2514_v36 = vpop.f32.mrf.mxu1 }
 0x19c   : > { %v2422_v2 = vmax.f32 %v2420_v48, 0.0  ;;  %v2343_v54 = vadd.f32 %v2339_v52, %v2309_v37 }
 0x19e   : > { %3196 = vst [vmem:[%s4135_s4 + $0x60] sm:$0xff] %v2422_v2  ;;  %v2389_v27 = vadd.f32 %v2385_v40, %v2343_v54 }
 0x19f   : > { %v2415_v45 = vpop.f32.mrf.mxu2 }
 0x1a0   : > { %v2419_v56 = vadd.f32 %v2415_v45, %v2389_v27 }
 0x1a1   : > { %v2590_v58 = vpop.f32.mrf.mxu3 }
 0x1a2   : > { %v2421_v57 = vadd.f32 %v4115_v5, %v2419_v56 }
 0x1a3   : > { %v2486_v46 = vpop.f32.mrf.mxu0  ;;  %v2516_v50 = vpop.f32.mrf.mxu1 }
 0x1a4   : > { %v2423_v43 = vmax.f32 %v2421_v57, 0.0  ;;  %v2487_v17 = vadd.f32 %v2486_v46, %v2467_v35 }
 0x1a6   : > { %3197 = vst [vmem:[%s4135_s4 + $0x68] sm:$0xff] %v2423_v43  ;;  %v2519_v0 = vadd.f32 %v2514_v36, %v2487_v17 }
 0x1a7   : > { %v2544_v63 = vpop.f32.mrf.mxu2 }
 0x1a8   : > { %v2549_v4 = vadd.f32 %v2544_v63, %v2519_v0 }
 0x1a9   : > { %v2592_v3 = vpop.f32.mrf.mxu3 }
 0x1aa   : > { %v2595_v59 = vadd.f32 %v2590_v58, %v2549_v4 }
 0x1ab   : > { %v2488_v1 = vpop.f32.mrf.mxu0  ;;  %v2654_v8 = vpop.f32.mrf.mxu1 }
 0x1ac   : > { %v2489_v44 = vadd.f32 %v2488_v1, %v2469_v51 }
 0x1ae   : > { %v2520_v6 = vadd.f32 %v2516_v50, %v2489_v44 }
 0x1af   : > { %v2546_v62 = vpop.f32.mrf.mxu2 }
 0x1b0   : > { %v2550_v30 = vadd.f32 %v2546_v62, %v2520_v6 }
 0x1b1   : > { %v2730_v49 = vpop.f32.mrf.mxu3 }
 0x1b2   : > { %v2596_v13 = vadd.f32 %v2592_v3, %v2550_v30 }
 0x1b3   : > { %v2620_v53 = vpop.f32.mrf.mxu0  ;;  %v2656_v19 = vpop.f32.mrf.mxu1 }
 0x1b4   : > { %v2625_v5 = vadd.f32 %v2620_v53, %v2595_v59 }
 0x1b6   : > { %v2659_v10 = vadd.f32 %v2654_v8, %v2625_v5 }
 0x1b7   : > { %v2700_v9 = vpop.f32.mrf.mxu2 }
 0x1b8   : > { %v2705_v55 = vadd.f32 %v2700_v9, %v2659_v10 }
 0x1b9   : > { %v2732_v24 = vpop.f32.mrf.mxu3 }
 0x1ba   : > { %v2735_v12 = vadd.f32 %v2730_v49, %v2705_v55 }
 0x1bb   : > { %v2622_v14 = vpop.f32.mrf.mxu0 }
 0x1bc   : > { %v2737_v16 = vadd.f32 %v3438_v15, %v2735_v12  ;;  %v2626_v60 = vadd.f32 %v2622_v14, %v2596_v13 }
 0x1be   : > { %v2739_v7 = vmax.f32 %v2737_v16, 0.0  ;;  %v2660_v11 = vadd.f32 %v2656_v19, %v2626_v60 }
 0x1bf   : > { %v2702_v21 = vpop.f32.mrf.mxu2 }
 0x1c0   : > { %3241 = vst [vmem:[%s4135_s4 + $0x70] sm:$0xff] %v2739_v7  ;;  %v2706_v20 = vadd.f32 %v2702_v21, %v2660_v11 }
 0x1c2   : > { %v2736_v25 = vadd.f32 %v2732_v24, %v2706_v20 }
 0x1c4   : > { %v2738_v18 = vadd.f32 %v3438_v15, %v2736_v25 }
 0x1c6   : > { %v2740_v26 = vmax.f32 %v2738_v18, 0.0 }
 0x1c8   : > { %3242 = vst [vmem:[%s4135_s4 + $0x78] sm:$0xff] %v2740_v26 }
 0x1c9   : > { %3490 = shalt.err (!%p3487_p6)
}
 0x1ca   : > { %s3571_s7 = smov 128   ;;  %s3572_s4 = smov 8  }
 0x1cb   : > { %3364 = dma.vmem_to_hbm [thread:$0]  (%p3644_p3), %s2761_s28, 2048, %s2763_s21, %s2745_s5, %s3571_s7, %s3571_s7, %s3572_s4  }
 0x1cc PF: > { %p3370_p7 = scmp.ge.s32.totalorder %s3569_s19, 2  ;;  %s2777_s24 = sand.u32 1, %s3541_s12  }
 0x1cd   : > { %s2778_s15 = scalar_lea.sflag [#allocation3], %s2777_s24 }
 0x1ce   : > { %p3367_p9 = pnand %p3370_p7, %p3653_p8 }
 0x1d0   : > { %p3368_p10 = pneg %p3367_p9 }
 0x1d2   : > { %3524 = dma.done.wait (%p3368_p10), %s2778_s15, 2048  }
 0x1d3   : > { %3526 = vsyncadd (%p3368_p10), %s2778_s15, 4294965248  ;;  %s16_s19 = sadd.s32 1, %s3569_s19   ;;  %s4448_s12 = smov %s3545_s13 }
 0x1d4   : > { %p13_p11 = scmp.ge.s32.totalorder %s16_s19, 6   ;;  %s4449_s13 = smov %s3549_s14 }
 0x1d5   : > { %s4450_s14 = smov %s3662_s30  ;;  %s4451_s15 = smov %s3561_s17 }
 0x1d6   : > { %s4452_s16 = smov %s3565_s18  ;;  %s4453_s17 = smov %s4456_s22 }
 0x1d7   : > { %s4454_s18 = smov %s4460_s23  ;;  %15 = sbr.rel (!%p13_p11) target bundleno = 5 (0x5), region = 92 }
 0x1dc   :  { %2784 = vsyncpa [#allocation3], 1 }
 0x1dd   :  { %2786 = vsyncpa [#allocation3 + $0x1], 1 }

</bundles_post_ra>
